<compile_context>
chip_gen: v7x
topology: tpu7x:2x2x1
jax: 0.10.0
libtpu: 0.0.40
codegen_flags: <defaults>
</compile_context>

<pallas_src>
import functools
import math

import jax
import jax.numpy as jnp
from jax.experimental import pallas as pl
from jax.experimental.pallas import tpu as pltpu


def _round_up(x, m):
    return ((x + m - 1) // m) * m


# ----------------------------------------------------------------------------
# Pallas kernels
# ----------------------------------------------------------------------------

def _lstm_fused_kernel(x_ref, wih_ref, whh_ref, b_ref, out_ref, h_ref, c_ref):
    """Fully fused LSTM over one chunk of timesteps.

    x_ref   : (B_TILE, CHUNK_T, Dp)  bf16   batch-major input chunk
    wih_ref : (Dp, 4Hp)              bf16   gate columns packed [i, f, o, g], lane padded
    whh_ref : (Hp, 4Hp)              bf16
    b_ref   : (1, 4Hp)               f32    b_ih + b_hh, packed/padded
    out_ref : (B_TILE, CHUNK_T, Hp)  f32    hidden-state sequence (batch-major)
    h_ref/c_ref : (B_TILE, Hp) f32 VMEM scratch carrying state across time chunks.
    Grid = (batch_tiles 'parallel', time_chunks 'arbitrary').
    """
    Hp = h_ref.shape[-1]
    chunk = x_ref.shape[1]

    @pl.when(pl.program_id(1) == 0)
    def _():
        h_ref[...] = jnp.zeros_like(h_ref)
        c_ref[...] = jnp.zeros_like(c_ref)

    bias = b_ref[...]                      # (1, 4Hp) f32, small; hoisted once per chunk
    h = h_ref[...]                         # carried in registers across the chunk
    c = c_ref[...]
    h_bf = h.astype(jnp.bfloat16)

    for tau in range(chunk):               # static, fully unrolled
        x_t = x_ref[:, tau, :]             # (B_TILE, Dp) bf16
        gates = (
            jnp.dot(x_t, wih_ref[...], preferred_element_type=jnp.float32)
            + jnp.dot(h_bf, whh_ref[...], preferred_element_type=jnp.float32)
            + bias)                        # (B_TILE, 4Hp) f32

        sig = jax.nn.sigmoid(gates[:, :3 * Hp])     # one EUP slab for i, f, o
        i_g = sig[:, 0 * Hp:1 * Hp]
        f_g = sig[:, 1 * Hp:2 * Hp]
        o_g = sig[:, 2 * Hp:3 * Hp]
        g_g = jnp.tanh(gates[:, 3 * Hp:4 * Hp])

        c = f_g * c + i_g * g_g
        h = o_g * jnp.tanh(c)
        h_bf = h.astype(jnp.bfloat16)
        out_ref[:, tau, :] = h             # lane-dense store (Hp multiple of 128)

    h_ref[...] = h                         # single carry writeback per chunk
    c_ref[...] = c


def _matmul_bias_kernel(x_ref, w_ref, b_ref, o_ref):
    """o = x @ W + b  (x, W bf16; f32 accumulation)."""
    o_ref[...] = (
        jnp.dot(x_ref[...], w_ref[...], preferred_element_type=jnp.float32)
        + b_ref[...]
    ).astype(o_ref.dtype)


# ----------------------------------------------------------------------------
# Tiling / VMEM budgeting
# ----------------------------------------------------------------------------

def _pick_lstm_tiling(B, T, Dp, Hp):
    G = 4 * Hp
    try:
        vmem_cap = int(pltpu.get_tpu_info().vmem_capacity_bytes)
    except Exception:
        vmem_cap = 64 << 20            # assume smallest (v7x per-TC) if query unavailable
    budget = min(vmem_cap // 2, 48 << 20)

    def est(b_tile, chunk):
        return (2 * b_tile * chunk * Dp * 2        # x blocks  (bf16, double buffered)
                + 2 * b_tile * chunk * Hp * 4      # out blocks (f32, double buffered)
                + 2 * (Dp + Hp) * G * 2            # W_ih + W_hh (bf16, double buffered)
                + 2 * G * 4                        # bias
                + 2 * b_tile * Hp * 4)             # h/c carry scratch

    if B >= 512:
        b_tile = 256     # fill 256-wide MXU (v6e/v7x) while keeping >= 2 batch tiles
    elif B >= 128:
        b_tile = 128
    else:
        b_tile = _round_up(B, 8)
    while b_tile > 128 and est(b_tile, 8) > budget:
        b_tile //= 2
    Bp = _round_up(B, b_tile)

    chunk_t = 8
    for cand in (32, 24, 16, 8):       # bigger chunks amortize per-grid-step overhead
        if cand <= _round_up(T, 8) and est(b_tile, cand) <= budget:
            chunk_t = cand
            break
    Tp = _round_up(T, chunk_t)
    vmem_limit = int(min(vmem_cap, max(est(b_tile, chunk_t) + (16 << 20), 32 << 20)))
    return b_tile, Bp, chunk_t, Tp, vmem_limit


# ----------------------------------------------------------------------------
# Wrappers
# ----------------------------------------------------------------------------

@functools.partial(jax.jit, static_argnames=("hidden_dim",))
def lstm_forward_pallas(x_btd, wih_p, whh_p, bias_p, hidden_dim):
    """x_btd: (B, T, D).  Returns (B, T, H) like nn.LSTM(batch_first=True)[0]."""
    B, T, D = x_btd.shape
    Dp, G = wih_p.shape                    # G = 4 * Hp
    Hp = G // 4
    H = hidden_dim

    B_tile, Bp, chunk_t, Tp, vmem_limit = _pick_lstm_tiling(B, T, Dp, Hp)

    # bf16 input, padded only when needed.  Padded batch rows / timesteps / feature lanes
    # are zero; padded W rows/cols are zero and padded outputs are sliced off -> harmless.
    x_bf = x_btd.astype(jnp.bfloat16)
    if (Bp, Tp, Dp) != (B, T, D):
        x_bf = jnp.pad(x_bf, ((0, Bp - B), (0, Tp - T), (0, Dp - D)))

    out = pl.pallas_call(
        _lstm_fused_kernel,
        out_shape=jax.ShapeDtypeStruct((Bp, Tp, Hp), jnp.float32),
        grid_spec=pltpu.PrefetchScalarGridSpec(
            num_scalar_prefetch=0,
            grid=(Bp // B_tile, Tp // chunk_t),
            in_specs=[
                pl.BlockSpec((B_tile, chunk_t, Dp), lambda bi, tc: (bi, tc, 0)),
                pl.BlockSpec((Dp, G), lambda bi, tc: (0, 0)),
                pl.BlockSpec((Hp, G), lambda bi, tc: (0, 0)),
                pl.BlockSpec((1, G), lambda bi, tc: (0, 0)),
            ],
            out_specs=pl.BlockSpec((B_tile, chunk_t, Hp), lambda bi, tc: (bi, tc, 0)),
            scratch_shapes=[
                pltpu.VMEM((B_tile, Hp), jnp.float32),   # h carry (per batch tile)
                pltpu.VMEM((B_tile, Hp), jnp.float32),   # c carry (per batch tile)
            ],
        ),
        compiler_params=pltpu.CompilerParams(
            dimension_semantics=("parallel", "arbitrary"),
            vmem_limit_bytes=vmem_limit),
    )(x_bf, wih_p, whh_p, bias_p)

    return out[:B, :T, :H]


@functools.partial(jax.jit, static_argnames=("hidden_dim",))
def linear_forward_pallas(x_btd, w_p, b_p, hidden_dim):
    """x_btd: (B, T, D).  nn.Linear over the last dim -> (B, T, H)."""
    B, T, D = x_btd.shape
    Dp, Hp = w_p.shape
    H = hidden_dim
    rows = B * T
    TM = 512 if rows >= 512 else _round_up(rows, 8)    # mem-bound: big row tiles
    Np = _round_up(rows, TM)

    x2d = x_btd.reshape(rows, D).astype(jnp.bfloat16)  # no extra f32 padded copy
    if (Np, Dp) != (rows, D):
        x2d = jnp.pad(x2d, ((0, Np - rows), (0, Dp - D)))

    out = pl.pallas_call(
        _matmul_bias_kernel,
        out_shape=jax.ShapeDtypeStruct((Np, Hp), jnp.float32),
        grid_spec=pltpu.PrefetchScalarGridSpec(
            num_scalar_prefetch=0,
            grid=(Np // TM,),
            in_specs=[
                pl.BlockSpec((TM, Dp), lambda r: (r, 0)),
                pl.BlockSpec((Dp, Hp), lambda r: (0, 0)),
                pl.BlockSpec((1, Hp), lambda r: (0, 0)),
            ],
            out_specs=pl.BlockSpec((TM, Hp), lambda r: (r, 0)),
        ),
        compiler_params=pltpu.CompilerParams(
            dimension_semantics=("parallel",)),
    )(x2d, w_p, b_p)

    return out[:rows, :H].reshape(B, T, H)


# ----------------------------------------------------------------------------
# One-time weight packing (done in __init__, not per forward call)
# ----------------------------------------------------------------------------

def _pack_lstm_gate_weights(w, H, Hp, in_dim, in_dim_p):
    """w: (4H, in_dim) torch layout, gate rows [i; f; g; o].
    Returns (in_dim_p, 4*Hp) bf16 with columns packed [i, f, o, g], lane-padded."""
    w_t = jnp.transpose(w).astype(jnp.float32)            # (in_dim, 4H)
    gi, gf, gg, go = jnp.split(w_t, 4, axis=1)
    packed = jnp.zeros((in_dim_p, 4 * Hp), jnp.float32)
    for k, blk in enumerate((gi, gf, go, gg)):             # reorder -> i, f, o, g
        packed = packed.at[:in_dim, k * Hp:k * Hp + H].set(blk)
    return packed.astype(jnp.bfloat16)


def _pack_lstm_gate_bias(b, H, Hp):
    bi, bf, bg, bo = jnp.split(b.astype(jnp.float32), 4)
    packed = jnp.zeros((1, 4 * Hp), jnp.float32)
    for k, blk in enumerate((bi, bf, bo, bg)):
        packed = packed.at[0, k * Hp:k * Hp + H].set(blk)
    return packed


# ----------------------------------------------------------------------------
# UserEncoder (JAX / Pallas port)
# ----------------------------------------------------------------------------

class UserEncoder:
    def __init__(self, input_dim, hidden_dim, n_heads=8, n_layers=6,
                 normalization='batch', feed_forward_hidden=512,
                 embedding_type='lstm', key=None):
        self.embedding_type = embedding_type
        self.input_dim = input_dim
        self.hidden_dim = hidden_dim
        if key is None:
            key = jax.random.PRNGKey(0)

        Dp = _round_up(input_dim, 128)
        Hp = _round_up(hidden_dim, 128)

        if embedding_type == 'linear':
            # nn.Linear(input_dim, hidden_dim) default init: U(-1/sqrt(D), 1/sqrt(D))
            bound = 1.0 / math.sqrt(input_dim)
            kw, kb = jax.random.split(key)
            self.w = jax.random.uniform(kw, (hidden_dim, input_dim),
                                        jnp.float32, -bound, bound)
            self.b = jax.random.uniform(kb, (hidden_dim,),
                                        jnp.float32, -bound, bound)
            # One-time packed/padded/bf16 params for the kernel.
            self.w_p = jnp.zeros((Dp, Hp), jnp.float32).at[
                :input_dim, :hidden_dim].set(jnp.transpose(self.w)).astype(jnp.bfloat16)
            self.b_p = jnp.zeros((1, Hp), jnp.float32).at[0, :hidden_dim].set(self.b)
        elif embedding_type == 'lstm':
            # nn.LSTM(input_dim, hidden_dim) default init: U(-1/sqrt(H), 1/sqrt(H))
            bound = 1.0 / math.sqrt(hidden_dim)
            k1, k2, k3, k4 = jax.random.split(key, 4)
            self.w_ih = jax.random.uniform(k1, (4 * hidden_dim, input_dim),
                                           jnp.float32, -bound, bound)
            self.w_hh = jax.random.uniform(k2, (4 * hidden_dim, hidden_dim),
                                           jnp.float32, -bound, bound)
            self.b_ih = jax.random.uniform(k3, (4 * hidden_dim,),
                                           jnp.float32, -bound, bound)
            self.b_hh = jax.random.uniform(k4, (4 * hidden_dim,),
                                           jnp.float32, -bound, bound)
            # One-time packed params: lane-padded, gate order [i,f,o,g], bf16 weights.
            self.wih_p = _pack_lstm_gate_weights(self.w_ih, hidden_dim, Hp, input_dim, Dp)
            self.whh_p = _pack_lstm_gate_weights(self.w_hh, hidden_dim, Hp, hidden_dim, Hp)
            self.bias_p = _pack_lstm_gate_bias(self.b_ih + self.b_hh, hidden_dim, Hp)
        elif embedding_type == 'transformer':
            # TODO(synk): GraphAttentionEncoder source not provided with the module snippet.
            raise NotImplementedError(
                "embedding_type='transformer' (GraphAttentionEncoder) not available here")
        else:
            raise NotImplementedError

    def __call__(self, inputs):
        if self.embedding_type == 'lstm':
            # `embedded, _ = self.embedding(inputs); return embedded`
            return lstm_forward_pallas(inputs, self.wih_p, self.whh_p, self.bias_p,
                                       hidden_dim=self.hidden_dim)
        else:
            return linear_forward_pallas(inputs, self.w_p, self.b_p,
                                         hidden_dim=self.hidden_dim)


# ----------------------------------------------------------------------------
# Pure-JAX f32 references (correctness checking only)
# ----------------------------------------------------------------------------

def _lstm_reference(x, w_ih, w_hh, b_ih, b_hh):
    B, T, D = x.shape
    H = w_hh.shape[1]

    def step(carry, x_t):
        h, c = carry
        gates = x_t @ w_ih.T + b_ih + h @ w_hh.T + b_hh
        i, f, g, o = jnp.split(gates, 4, axis=-1)
        i = jax.nn.sigmoid(i)
        f = jax.nn.sigmoid(f)
        g = jnp.tanh(g)
        o = jax.nn.sigmoid(o)
        c = f * c + i * g
        h = o * jnp.tanh(c)
        return (h, c), h

    h0 = jnp.zeros((B, H), jnp.float32)
    c0 = jnp.zeros((B, H), jnp.float32)
    _, hs = jax.lax.scan(step, (h0, c0), jnp.swapaxes(x, 0, 1))
    return jnp.swapaxes(hs, 0, 1)


def _linear_reference(x, w, b):
    return x @ w.T + b


# ----------------------------------------------------------------------------
# Main
# ----------------------------------------------------------------------------

if __name__ == "__main__":
    B, T, D, H = 2, 8, 16, 32
    key = jax.random.PRNGKey(0)
    k_in, k_lstm, k_lin = jax.random.split(key, 3)

    inputs = jax.random.normal(k_in, (B, T, D), jnp.float32)   # (batch, seq, input_dim)

    # LSTM path (forward explicitly handles this branch).
    enc_lstm = UserEncoder(D, H, embedding_type='lstm', key=k_lstm)
    out_lstm = enc_lstm(inputs)
    jax.block_until_ready(out_lstm)
    ref_lstm = _lstm_reference(inputs, enc_lstm.w_ih, enc_lstm.w_hh,
                               enc_lstm.b_ih, enc_lstm.b_hh)
    assert out_lstm.shape == (B, T, H)
    # bf16 matmul operands (f32 accumulation) => widened tolerance vs f32 reference.
    # NOTE: the recurrent operand h is bf16 for the MXU; error compounds with very long T.
    assert jnp.allclose(out_lstm, ref_lstm, atol=3e-2, rtol=3e-2), "LSTM mismatch"

    # Linear path.
    enc_lin = UserEncoder(D, H, embedding_type='linear', key=k_lin)
    out_lin = enc_lin(inputs)
    jax.block_until_ready(out_lin)
    ref_lin = _linear_reference(inputs, enc_lin.w, enc_lin.b)
    assert out_lin.shape == (B, T, H)
    assert jnp.allclose(out_lin, ref_lin, atol=2e-2, rtol=2e-2), "Linear mismatch"

    print("KERNEL_OK")
</pallas_src>

<mosaic_0001>
module attributes {stable_mosaic.version = 11 : i64} {
  func.func @_lstm_fused_kernel(%arg0: i32, %arg1: i32, %arg2: memref<8x8x128xbf16, #tpu.memory_space<vmem>>, %arg3: memref<128x512xbf16, #tpu.memory_space<vmem>>, %arg4: memref<128x512xbf16, #tpu.memory_space<vmem>>, %arg5: memref<1x512xf32, #tpu.memory_space<vmem>>, %arg6: memref<8x8x128xf32, #tpu.memory_space<vmem>>, %arg7: memref<8x128xf32, #tpu.memory_space<vmem>>, %arg8: memref<8x128xf32, #tpu.memory_space<vmem>>) attributes {dimension_semantics = [#tpu.dimension_semantics<parallel>, #tpu.dimension_semantics<arbitrary>], iteration_bounds = array<i64: 1, 1>, scalar_prefetch = 0 : i64, scratch_operands = 2 : i64, tpu.core_type = #tpu.core_type<tc>, window_params = [{transform_indices = @transform_0, window_bounds = array<i64: 8, 8, 128>}, {pipeline_mode = #tpu.pipeline_mode<synchronous>, transform_indices = @transform_1, window_bounds = array<i64: 128, 512>}, {pipeline_mode = #tpu.pipeline_mode<synchronous>, transform_indices = @transform_2, window_bounds = array<i64: 128, 512>}, {pipeline_mode = #tpu.pipeline_mode<synchronous>, transform_indices = @transform_3, window_bounds = array<i64: 1, 512>}, {transform_indices = @transform_4, window_bounds = array<i64: 8, 8, 128>}]} {
    %c0_i32 = arith.constant 0 : i32
    %0 = arith.cmpi eq, %arg1, %c0_i32 : i32
    %1 = arith.extui %0 : i1 to i32
    %c0_i32_0 = arith.constant 0 : i32
    %2 = arith.cmpi ne, %1, %c0_i32_0 : i32
    scf.if %2 {
      %cst_106 = arith.constant 0.000000e+00 : f32
      %240 = vector.broadcast %cst_106 : f32 to vector<8x128xf32>
      %c0_107 = arith.constant 0 : index
      %c0_108 = arith.constant 0 : index
      %241 = vector.load %arg7[%c0_107, %c0_108] : memref<8x128xf32, #tpu.memory_space<vmem>>, vector<8x128xf32>
      tpu.vector_store %arg7[%c0_107, %c0_108], %240 {strides = array<i32>} : memref<8x128xf32, #tpu.memory_space<vmem>>, vector<8x128xf32>,
      %cst_109 = arith.constant 0.000000e+00 : f32
      %242 = vector.broadcast %cst_109 : f32 to vector<8x128xf32>
      %c0_110 = arith.constant 0 : index
      %c0_111 = arith.constant 0 : index
      %243 = vector.load %arg8[%c0_110, %c0_111] : memref<8x128xf32, #tpu.memory_space<vmem>>, vector<8x128xf32>
      tpu.vector_store %arg8[%c0_110, %c0_111], %242 {strides = array<i32>} : memref<8x128xf32, #tpu.memory_space<vmem>>, vector<8x128xf32>,
    } else {
    }
    %c0 = arith.constant 0 : index
    %c0_1 = arith.constant 0 : index
    %3 = vector.load %arg5[%c0, %c0_1] : memref<1x512xf32, #tpu.memory_space<vmem>>, vector<1x512xf32>
    %c0_2 = arith.constant 0 : index
    %c0_3 = arith.constant 0 : index
    %4 = vector.load %arg7[%c0_2, %c0_3] : memref<8x128xf32, #tpu.memory_space<vmem>>, vector<8x128xf32>
    %c0_4 = arith.constant 0 : index
    %c0_5 = arith.constant 0 : index
    %5 = vector.load %arg8[%c0_4, %c0_5] : memref<8x128xf32, #tpu.memory_space<vmem>>, vector<8x128xf32>
    %6 = arith.truncf %4 : vector<8x128xf32> to vector<8x128xbf16>
    %c0_6 = arith.constant 0 : index
    %c0_7 = arith.constant 0 : index
    %c0_8 = arith.constant 0 : index
    %7 = vector.load %arg2[%c0_6, %c0_7, %c0_8] : memref<8x8x128xbf16, #tpu.memory_space<vmem>>, vector<8x1x128xbf16>
    %8 = vector.shape_cast %7 : vector<8x1x128xbf16> to vector<8x128xbf16>
    %c0_9 = arith.constant 0 : index
    %c0_10 = arith.constant 0 : index
    %9 = vector.load %arg3[%c0_9, %c0_10] : memref<128x512xbf16, #tpu.memory_space<vmem>>, vector<128x512xbf16>
    %cst = arith.constant dense<0.000000e+00> : vector<8x512xf32>
    %10 = tpu.matmul %8, %9, %cst {dimension_numbers = #tpu.dot_dimension_numbers<[1], [0], [0], [1], [0, 0, 1, 1], [], []>} : vector<8x128xbf16>, vector<128x512xbf16>, vector<8x512xf32> -> vector<8x512xf32>
    %c0_11 = arith.constant 0 : index
    %c0_12 = arith.constant 0 : index
    %11 = vector.load %arg4[%c0_11, %c0_12] : memref<128x512xbf16, #tpu.memory_space<vmem>>, vector<128x512xbf16>
    %cst_13 = arith.constant dense<0.000000e+00> : vector<8x512xf32>
    %12 = tpu.matmul %6, %11, %cst_13 {dimension_numbers = #tpu.dot_dimension_numbers<[1], [0], [0], [1], [0, 0, 1, 1], [], []>} : vector<8x128xbf16>, vector<128x512xbf16>, vector<8x512xf32> -> vector<8x512xf32>
    %13 = arith.addf %10, %12 : vector<8x512xf32>
    %14 = vector.broadcast %3 : vector<1x512xf32> to vector<8x512xf32>
    %15 = arith.addf %13, %14 : vector<8x512xf32>
    %16 = vector.extract_strided_slice %15 {offsets = [0, 0], sizes = [8, 384], strides = [1, 1]} : vector<8x512xf32> to vector<8x384xf32>
    %17 = arith.negf %16 : vector<8x384xf32>
    %18 = math.exp %17 : vector<8x384xf32>
    %cst_14 = arith.constant 1.000000e+00 : f32
    %19 = vector.broadcast %cst_14 : f32 to vector<8x384xf32>
    %20 = arith.addf %19, %18 : vector<8x384xf32>
    %21 = arith.divf %19, %20 : vector<8x384xf32>
    %22 = vector.extract_strided_slice %21 {offsets = [0, 0], sizes = [8, 128], strides = [1, 1]} : vector<8x384xf32> to vector<8x128xf32>
    %23 = vector.extract_strided_slice %21 {offsets = [0, 128], sizes = [8, 128], strides = [1, 1]} : vector<8x384xf32> to vector<8x128xf32>
    %24 = vector.extract_strided_slice %21 {offsets = [0, 256], sizes = [8, 128], strides = [1, 1]} : vector<8x384xf32> to vector<8x128xf32>
    %25 = vector.extract_strided_slice %15 {offsets = [0, 384], sizes = [8, 128], strides = [1, 1]} : vector<8x512xf32> to vector<8x128xf32>
    %26 = math.tanh %25 : vector<8x128xf32>
    %27 = arith.mulf %23, %5 : vector<8x128xf32>
    %28 = arith.mulf %22, %26 : vector<8x128xf32>
    %29 = arith.addf %27, %28 : vector<8x128xf32>
    %30 = math.tanh %29 : vector<8x128xf32>
    %31 = arith.mulf %24, %30 : vector<8x128xf32>
    %32 = arith.truncf %31 : vector<8x128xf32> to vector<8x128xbf16>
    %c0_15 = arith.constant 0 : index
    %c0_16 = arith.constant 0 : index
    %c0_17 = arith.constant 0 : index
    %33 = vector.load %arg6[%c0_15, %c0_16, %c0_17] : memref<8x8x128xf32, #tpu.memory_space<vmem>>, vector<8x1x128xf32>
    %34 = vector.shape_cast %33 : vector<8x1x128xf32> to vector<8x128xf32>
    %35 = vector.shape_cast %31 : vector<8x128xf32> to vector<8x1x128xf32>
    tpu.vector_store %arg6[%c0_15, %c0_16, %c0_17], %35 {strides = array<i32>} : memref<8x8x128xf32, #tpu.memory_space<vmem>>, vector<8x1x128xf32>,
    %c0_18 = arith.constant 0 : index
    %c1 = arith.constant 1 : index
    %c0_19 = arith.constant 0 : index
    %36 = vector.load %arg2[%c0_18, %c1, %c0_19] : memref<8x8x128xbf16, #tpu.memory_space<vmem>>, vector<8x1x128xbf16>
    %37 = vector.shape_cast %36 : vector<8x1x128xbf16> to vector<8x128xbf16>
    %c0_20 = arith.constant 0 : index
    %c0_21 = arith.constant 0 : index
    %38 = vector.load %arg3[%c0_20, %c0_21] : memref<128x512xbf16, #tpu.memory_space<vmem>>, vector<128x512xbf16>
    %cst_22 = arith.constant dense<0.000000e+00> : vector<8x512xf32>
    %39 = tpu.matmul %37, %38, %cst_22 {dimension_numbers = #tpu.dot_dimension_numbers<[1], [0], [0], [1], [0, 0, 1, 1], [], []>} : vector<8x128xbf16>, vector<128x512xbf16>, vector<8x512xf32> -> vector<8x512xf32>
    %c0_23 = arith.constant 0 : index
    %c0_24 = arith.constant 0 : index
    %40 = vector.load %arg4[%c0_23, %c0_24] : memref<128x512xbf16, #tpu.memory_space<vmem>>, vector<128x512xbf16>
    %cst_25 = arith.constant dense<0.000000e+00> : vector<8x512xf32>
    %41 = tpu.matmul %32, %40, %cst_25 {dimension_numbers = #tpu.dot_dimension_numbers<[1], [0], [0], [1], [0, 0, 1, 1], [], []>} : vector<8x128xbf16>, vector<128x512xbf16>, vector<8x512xf32> -> vector<8x512xf32>
    %42 = arith.addf %39, %41 : vector<8x512xf32>
    %43 = vector.broadcast %3 : vector<1x512xf32> to vector<8x512xf32>
    %44 = arith.addf %42, %43 : vector<8x512xf32>
    %45 = vector.extract_strided_slice %44 {offsets = [0, 0], sizes = [8, 384], strides = [1, 1]} : vector<8x512xf32> to vector<8x384xf32>
    %46 = arith.negf %45 : vector<8x384xf32>
    %47 = math.exp %46 : vector<8x384xf32>
    %cst_26 = arith.constant 1.000000e+00 : f32
    %48 = vector.broadcast %cst_26 : f32 to vector<8x384xf32>
    %49 = arith.addf %48, %47 : vector<8x384xf32>
    %50 = arith.divf %48, %49 : vector<8x384xf32>
    %51 = vector.extract_strided_slice %50 {offsets = [0, 0], sizes = [8, 128], strides = [1, 1]} : vector<8x384xf32> to vector<8x128xf32>
    %52 = vector.extract_strided_slice %50 {offsets = [0, 128], sizes = [8, 128], strides = [1, 1]} : vector<8x384xf32> to vector<8x128xf32>
    %53 = vector.extract_strided_slice %50 {offsets = [0, 256], sizes = [8, 128], strides = [1, 1]} : vector<8x384xf32> to vector<8x128xf32>
    %54 = vector.extract_strided_slice %44 {offsets = [0, 384], sizes = [8, 128], strides = [1, 1]} : vector<8x512xf32> to vector<8x128xf32>
    %55 = math.tanh %54 : vector<8x128xf32>
    %56 = arith.mulf %52, %29 : vector<8x128xf32>
    %57 = arith.mulf %51, %55 : vector<8x128xf32>
    %58 = arith.addf %56, %57 : vector<8x128xf32>
    %59 = math.tanh %58 : vector<8x128xf32>
    %60 = arith.mulf %53, %59 : vector<8x128xf32>
    %61 = arith.truncf %60 : vector<8x128xf32> to vector<8x128xbf16>
    %c0_27 = arith.constant 0 : index
    %c1_28 = arith.constant 1 : index
    %c0_29 = arith.constant 0 : index
    %62 = vector.load %arg6[%c0_27, %c1_28, %c0_29] : memref<8x8x128xf32, #tpu.memory_space<vmem>>, vector<8x1x128xf32>
    %63 = vector.shape_cast %62 : vector<8x1x128xf32> to vector<8x128xf32>
    %64 = vector.shape_cast %60 : vector<8x128xf32> to vector<8x1x128xf32>
    tpu.vector_store %arg6[%c0_27, %c1_28, %c0_29], %64 {strides = array<i32>} : memref<8x8x128xf32, #tpu.memory_space<vmem>>, vector<8x1x128xf32>,
    %c0_30 = arith.constant 0 : index
    %c2 = arith.constant 2 : index
    %c0_31 = arith.constant 0 : index
    %65 = vector.load %arg2[%c0_30, %c2, %c0_31] : memref<8x8x128xbf16, #tpu.memory_space<vmem>>, vector<8x1x128xbf16>
    %66 = vector.shape_cast %65 : vector<8x1x128xbf16> to vector<8x128xbf16>
    %c0_32 = arith.constant 0 : index
    %c0_33 = arith.constant 0 : index
    %67 = vector.load %arg3[%c0_32, %c0_33] : memref<128x512xbf16, #tpu.memory_space<vmem>>, vector<128x512xbf16>
    %cst_34 = arith.constant dense<0.000000e+00> : vector<8x512xf32>
    %68 = tpu.matmul %66, %67, %cst_34 {dimension_numbers = #tpu.dot_dimension_numbers<[1], [0], [0], [1], [0, 0, 1, 1], [], []>} : vector<8x128xbf16>, vector<128x512xbf16>, vector<8x512xf32> -> vector<8x512xf32>
    %c0_35 = arith.constant 0 : index
    %c0_36 = arith.constant 0 : index
    %69 = vector.load %arg4[%c0_35, %c0_36] : memref<128x512xbf16, #tpu.memory_space<vmem>>, vector<128x512xbf16>
    %cst_37 = arith.constant dense<0.000000e+00> : vector<8x512xf32>
    %70 = tpu.matmul %61, %69, %cst_37 {dimension_numbers = #tpu.dot_dimension_numbers<[1], [0], [0], [1], [0, 0, 1, 1], [], []>} : vector<8x128xbf16>, vector<128x512xbf16>, vector<8x512xf32> -> vector<8x512xf32>
    %71 = arith.addf %68, %70 : vector<8x512xf32>
    %72 = vector.broadcast %3 : vector<1x512xf32> to vector<8x512xf32>
    %73 = arith.addf %71, %72 : vector<8x512xf32>
    %74 = vector.extract_strided_slice %73 {offsets = [0, 0], sizes = [8, 384], strides = [1, 1]} : vector<8x512xf32> to vector<8x384xf32>
    %75 = arith.negf %74 : vector<8x384xf32>
    %76 = math.exp %75 : vector<8x384xf32>
    %cst_38 = arith.constant 1.000000e+00 : f32
    %77 = vector.broadcast %cst_38 : f32 to vector<8x384xf32>
    %78 = arith.addf %77, %76 : vector<8x384xf32>
    %79 = arith.divf %77, %78 : vector<8x384xf32>
    %80 = vector.extract_strided_slice %79 {offsets = [0, 0], sizes = [8, 128], strides = [1, 1]} : vector<8x384xf32> to vector<8x128xf32>
    %81 = vector.extract_strided_slice %79 {offsets = [0, 128], sizes = [8, 128], strides = [1, 1]} : vector<8x384xf32> to vector<8x128xf32>
    %82 = vector.extract_strided_slice %79 {offsets = [0, 256], sizes = [8, 128], strides = [1, 1]} : vector<8x384xf32> to vector<8x128xf32>
    %83 = vector.extract_strided_slice %73 {offsets = [0, 384], sizes = [8, 128], strides = [1, 1]} : vector<8x512xf32> to vector<8x128xf32>
    %84 = math.tanh %83 : vector<8x128xf32>
    %85 = arith.mulf %81, %58 : vector<8x128xf32>
    %86 = arith.mulf %80, %84 : vector<8x128xf32>
    %87 = arith.addf %85, %86 : vector<8x128xf32>
    %88 = math.tanh %87 : vector<8x128xf32>
    %89 = arith.mulf %82, %88 : vector<8x128xf32>
    %90 = arith.truncf %89 : vector<8x128xf32> to vector<8x128xbf16>
    %c0_39 = arith.constant 0 : index
    %c2_40 = arith.constant 2 : index
    %c0_41 = arith.constant 0 : index
    %91 = vector.load %arg6[%c0_39, %c2_40, %c0_41] : memref<8x8x128xf32, #tpu.memory_space<vmem>>, vector<8x1x128xf32>
    %92 = vector.shape_cast %91 : vector<8x1x128xf32> to vector<8x128xf32>
    %93 = vector.shape_cast %89 : vector<8x128xf32> to vector<8x1x128xf32>
    tpu.vector_store %arg6[%c0_39, %c2_40, %c0_41], %93 {strides = array<i32>} : memref<8x8x128xf32, #tpu.memory_space<vmem>>, vector<8x1x128xf32>,
    %c0_42 = arith.constant 0 : index
    %c3 = arith.constant 3 : index
    %c0_43 = arith.constant 0 : index
    %94 = vector.load %arg2[%c0_42, %c3, %c0_43] : memref<8x8x128xbf16, #tpu.memory_space<vmem>>, vector<8x1x128xbf16>
    %95 = vector.shape_cast %94 : vector<8x1x128xbf16> to vector<8x128xbf16>
    %c0_44 = arith.constant 0 : index
    %c0_45 = arith.constant 0 : index
    %96 = vector.load %arg3[%c0_44, %c0_45] : memref<128x512xbf16, #tpu.memory_space<vmem>>, vector<128x512xbf16>
    %cst_46 = arith.constant dense<0.000000e+00> : vector<8x512xf32>
    %97 = tpu.matmul %95, %96, %cst_46 {dimension_numbers = #tpu.dot_dimension_numbers<[1], [0], [0], [1], [0, 0, 1, 1], [], []>} : vector<8x128xbf16>, vector<128x512xbf16>, vector<8x512xf32> -> vector<8x512xf32>
    %c0_47 = arith.constant 0 : index
    %c0_48 = arith.constant 0 : index
    %98 = vector.load %arg4[%c0_47, %c0_48] : memref<128x512xbf16, #tpu.memory_space<vmem>>, vector<128x512xbf16>
    %cst_49 = arith.constant dense<0.000000e+00> : vector<8x512xf32>
    %99 = tpu.matmul %90, %98, %cst_49 {dimension_numbers = #tpu.dot_dimension_numbers<[1], [0], [0], [1], [0, 0, 1, 1], [], []>} : vector<8x128xbf16>, vector<128x512xbf16>, vector<8x512xf32> -> vector<8x512xf32>
    %100 = arith.addf %97, %99 : vector<8x512xf32>
    %101 = vector.broadcast %3 : vector<1x512xf32> to vector<8x512xf32>
    %102 = arith.addf %100, %101 : vector<8x512xf32>
    %103 = vector.extract_strided_slice %102 {offsets = [0, 0], sizes = [8, 384], strides = [1, 1]} : vector<8x512xf32> to vector<8x384xf32>
    %104 = arith.negf %103 : vector<8x384xf32>
    %105 = math.exp %104 : vector<8x384xf32>
    %cst_50 = arith.constant 1.000000e+00 : f32
    %106 = vector.broadcast %cst_50 : f32 to vector<8x384xf32>
    %107 = arith.addf %106, %105 : vector<8x384xf32>
    %108 = arith.divf %106, %107 : vector<8x384xf32>
    %109 = vector.extract_strided_slice %108 {offsets = [0, 0], sizes = [8, 128], strides = [1, 1]} : vector<8x384xf32> to vector<8x128xf32>
    %110 = vector.extract_strided_slice %108 {offsets = [0, 128], sizes = [8, 128], strides = [1, 1]} : vector<8x384xf32> to vector<8x128xf32>
    %111 = vector.extract_strided_slice %108 {offsets = [0, 256], sizes = [8, 128], strides = [1, 1]} : vector<8x384xf32> to vector<8x128xf32>
    %112 = vector.extract_strided_slice %102 {offsets = [0, 384], sizes = [8, 128], strides = [1, 1]} : vector<8x512xf32> to vector<8x128xf32>
    %113 = math.tanh %112 : vector<8x128xf32>
    %114 = arith.mulf %110, %87 : vector<8x128xf32>
    %115 = arith.mulf %109, %113 : vector<8x128xf32>
    %116 = arith.addf %114, %115 : vector<8x128xf32>
    %117 = math.tanh %116 : vector<8x128xf32>
    %118 = arith.mulf %111, %117 : vector<8x128xf32>
    %119 = arith.truncf %118 : vector<8x128xf32> to vector<8x128xbf16>
    %c0_51 = arith.constant 0 : index
    %c3_52 = arith.constant 3 : index
    %c0_53 = arith.constant 0 : index
    %120 = vector.load %arg6[%c0_51, %c3_52, %c0_53] : memref<8x8x128xf32, #tpu.memory_space<vmem>>, vector<8x1x128xf32>
    %121 = vector.shape_cast %120 : vector<8x1x128xf32> to vector<8x128xf32>
    %122 = vector.shape_cast %118 : vector<8x128xf32> to vector<8x1x128xf32>
    tpu.vector_store %arg6[%c0_51, %c3_52, %c0_53], %122 {strides = array<i32>} : memref<8x8x128xf32, #tpu.memory_space<vmem>>, vector<8x1x128xf32>,
    %c0_54 = arith.constant 0 : index
    %c4 = arith.constant 4 : index
    %c0_55 = arith.constant 0 : index
    %123 = vector.load %arg2[%c0_54, %c4, %c0_55] : memref<8x8x128xbf16, #tpu.memory_space<vmem>>, vector<8x1x128xbf16>
    %124 = vector.shape_cast %123 : vector<8x1x128xbf16> to vector<8x128xbf16>
    %c0_56 = arith.constant 0 : index
    %c0_57 = arith.constant 0 : index
    %125 = vector.load %arg3[%c0_56, %c0_57] : memref<128x512xbf16, #tpu.memory_space<vmem>>, vector<128x512xbf16>
    %cst_58 = arith.constant dense<0.000000e+00> : vector<8x512xf32>
    %126 = tpu.matmul %124, %125, %cst_58 {dimension_numbers = #tpu.dot_dimension_numbers<[1], [0], [0], [1], [0, 0, 1, 1], [], []>} : vector<8x128xbf16>, vector<128x512xbf16>, vector<8x512xf32> -> vector<8x512xf32>
    %c0_59 = arith.constant 0 : index
    %c0_60 = arith.constant 0 : index
    %127 = vector.load %arg4[%c0_59, %c0_60] : memref<128x512xbf16, #tpu.memory_space<vmem>>, vector<128x512xbf16>
    %cst_61 = arith.constant dense<0.000000e+00> : vector<8x512xf32>
    %128 = tpu.matmul %119, %127, %cst_61 {dimension_numbers = #tpu.dot_dimension_numbers<[1], [0], [0], [1], [0, 0, 1, 1], [], []>} : vector<8x128xbf16>, vector<128x512xbf16>, vector<8x512xf32> -> vector<8x512xf32>
    %129 = arith.addf %126, %128 : vector<8x512xf32>
    %130 = vector.broadcast %3 : vector<1x512xf32> to vector<8x512xf32>
    %131 = arith.addf %129, %130 : vector<8x512xf32>
    %132 = vector.extract_strided_slice %131 {offsets = [0, 0], sizes = [8, 384], strides = [1, 1]} : vector<8x512xf32> to vector<8x384xf32>
    %133 = arith.negf %132 : vector<8x384xf32>
    %134 = math.exp %133 : vector<8x384xf32>
    %cst_62 = arith.constant 1.000000e+00 : f32
    %135 = vector.broadcast %cst_62 : f32 to vector<8x384xf32>
    %136 = arith.addf %135, %134 : vector<8x384xf32>
    %137 = arith.divf %135, %136 : vector<8x384xf32>
    %138 = vector.extract_strided_slice %137 {offsets = [0, 0], sizes = [8, 128], strides = [1, 1]} : vector<8x384xf32> to vector<8x128xf32>
    %139 = vector.extract_strided_slice %137 {offsets = [0, 128], sizes = [8, 128], strides = [1, 1]} : vector<8x384xf32> to vector<8x128xf32>
    %140 = vector.extract_strided_slice %137 {offsets = [0, 256], sizes = [8, 128], strides = [1, 1]} : vector<8x384xf32> to vector<8x128xf32>
    %141 = vector.extract_strided_slice %131 {offsets = [0, 384], sizes = [8, 128], strides = [1, 1]} : vector<8x512xf32> to vector<8x128xf32>
    %142 = math.tanh %141 : vector<8x128xf32>
    %143 = arith.mulf %139, %116 : vector<8x128xf32>
    %144 = arith.mulf %138, %142 : vector<8x128xf32>
    %145 = arith.addf %143, %144 : vector<8x128xf32>
    %146 = math.tanh %145 : vector<8x128xf32>
    %147 = arith.mulf %140, %146 : vector<8x128xf32>
    %148 = arith.truncf %147 : vector<8x128xf32> to vector<8x128xbf16>
    %c0_63 = arith.constant 0 : index
    %c4_64 = arith.constant 4 : index
    %c0_65 = arith.constant 0 : index
    %149 = vector.load %arg6[%c0_63, %c4_64, %c0_65] : memref<8x8x128xf32, #tpu.memory_space<vmem>>, vector<8x1x128xf32>
    %150 = vector.shape_cast %149 : vector<8x1x128xf32> to vector<8x128xf32>
    %151 = vector.shape_cast %147 : vector<8x128xf32> to vector<8x1x128xf32>
    tpu.vector_store %arg6[%c0_63, %c4_64, %c0_65], %151 {strides = array<i32>} : memref<8x8x128xf32, #tpu.memory_space<vmem>>, vector<8x1x128xf32>,
    %c0_66 = arith.constant 0 : index
    %c5 = arith.constant 5 : index
    %c0_67 = arith.constant 0 : index
    %152 = vector.load %arg2[%c0_66, %c5, %c0_67] : memref<8x8x128xbf16, #tpu.memory_space<vmem>>, vector<8x1x128xbf16>
    %153 = vector.shape_cast %152 : vector<8x1x128xbf16> to vector<8x128xbf16>
    %c0_68 = arith.constant 0 : index
    %c0_69 = arith.constant 0 : index
    %154 = vector.load %arg3[%c0_68, %c0_69] : memref<128x512xbf16, #tpu.memory_space<vmem>>, vector<128x512xbf16>
    %cst_70 = arith.constant dense<0.000000e+00> : vector<8x512xf32>
    %155 = tpu.matmul %153, %154, %cst_70 {dimension_numbers = #tpu.dot_dimension_numbers<[1], [0], [0], [1], [0, 0, 1, 1], [], []>} : vector<8x128xbf16>, vector<128x512xbf16>, vector<8x512xf32> -> vector<8x512xf32>
    %c0_71 = arith.constant 0 : index
    %c0_72 = arith.constant 0 : index
    %156 = vector.load %arg4[%c0_71, %c0_72] : memref<128x512xbf16, #tpu.memory_space<vmem>>, vector<128x512xbf16>
    %cst_73 = arith.constant dense<0.000000e+00> : vector<8x512xf32>
    %157 = tpu.matmul %148, %156, %cst_73 {dimension_numbers = #tpu.dot_dimension_numbers<[1], [0], [0], [1], [0, 0, 1, 1], [], []>} : vector<8x128xbf16>, vector<128x512xbf16>, vector<8x512xf32> -> vector<8x512xf32>
    %158 = arith.addf %155, %157 : vector<8x512xf32>
    %159 = vector.broadcast %3 : vector<1x512xf32> to vector<8x512xf32>
    %160 = arith.addf %158, %159 : vector<8x512xf32>
    %161 = vector.extract_strided_slice %160 {offsets = [0, 0], sizes = [8, 384], strides = [1, 1]} : vector<8x512xf32> to vector<8x384xf32>
    %162 = arith.negf %161 : vector<8x384xf32>
    %163 = math.exp %162 : vector<8x384xf32>
    %cst_74 = arith.constant 1.000000e+00 : f32
    %164 = vector.broadcast %cst_74 : f32 to vector<8x384xf32>
    %165 = arith.addf %164, %163 : vector<8x384xf32>
    %166 = arith.divf %164, %165 : vector<8x384xf32>
    %167 = vector.extract_strided_slice %166 {offsets = [0, 0], sizes = [8, 128], strides = [1, 1]} : vector<8x384xf32> to vector<8x128xf32>
    %168 = vector.extract_strided_slice %166 {offsets = [0, 128], sizes = [8, 128], strides = [1, 1]} : vector<8x384xf32> to vector<8x128xf32>
    %169 = vector.extract_strided_slice %166 {offsets = [0, 256], sizes = [8, 128], strides = [1, 1]} : vector<8x384xf32> to vector<8x128xf32>
    %170 = vector.extract_strided_slice %160 {offsets = [0, 384], sizes = [8, 128], strides = [1, 1]} : vector<8x512xf32> to vector<8x128xf32>
    %171 = math.tanh %170 : vector<8x128xf32>
    %172 = arith.mulf %168, %145 : vector<8x128xf32>
    %173 = arith.mulf %167, %171 : vector<8x128xf32>
    %174 = arith.addf %172, %173 : vector<8x128xf32>
    %175 = math.tanh %174 : vector<8x128xf32>
    %176 = arith.mulf %169, %175 : vector<8x128xf32>
    %177 = arith.truncf %176 : vector<8x128xf32> to vector<8x128xbf16>
    %c0_75 = arith.constant 0 : index
    %c5_76 = arith.constant 5 : index
    %c0_77 = arith.constant 0 : index
    %178 = vector.load %arg6[%c0_75, %c5_76, %c0_77] : memref<8x8x128xf32, #tpu.memory_space<vmem>>, vector<8x1x128xf32>
    %179 = vector.shape_cast %178 : vector<8x1x128xf32> to vector<8x128xf32>
    %180 = vector.shape_cast %176 : vector<8x128xf32> to vector<8x1x128xf32>
    tpu.vector_store %arg6[%c0_75, %c5_76, %c0_77], %180 {strides = array<i32>} : memref<8x8x128xf32, #tpu.memory_space<vmem>>, vector<8x1x128xf32>,
    %c0_78 = arith.constant 0 : index
    %c6 = arith.constant 6 : index
    %c0_79 = arith.constant 0 : index
    %181 = vector.load %arg2[%c0_78, %c6, %c0_79] : memref<8x8x128xbf16, #tpu.memory_space<vmem>>, vector<8x1x128xbf16>
    %182 = vector.shape_cast %181 : vector<8x1x128xbf16> to vector<8x128xbf16>
    %c0_80 = arith.constant 0 : index
    %c0_81 = arith.constant 0 : index
    %183 = vector.load %arg3[%c0_80, %c0_81] : memref<128x512xbf16, #tpu.memory_space<vmem>>, vector<128x512xbf16>
    %cst_82 = arith.constant dense<0.000000e+00> : vector<8x512xf32>
    %184 = tpu.matmul %182, %183, %cst_82 {dimension_numbers = #tpu.dot_dimension_numbers<[1], [0], [0], [1], [0, 0, 1, 1], [], []>} : vector<8x128xbf16>, vector<128x512xbf16>, vector<8x512xf32> -> vector<8x512xf32>
    %c0_83 = arith.constant 0 : index
    %c0_84 = arith.constant 0 : index
    %185 = vector.load %arg4[%c0_83, %c0_84] : memref<128x512xbf16, #tpu.memory_space<vmem>>, vector<128x512xbf16>
    %cst_85 = arith.constant dense<0.000000e+00> : vector<8x512xf32>
    %186 = tpu.matmul %177, %185, %cst_85 {dimension_numbers = #tpu.dot_dimension_numbers<[1], [0], [0], [1], [0, 0, 1, 1], [], []>} : vector<8x128xbf16>, vector<128x512xbf16>, vector<8x512xf32> -> vector<8x512xf32>
    %187 = arith.addf %184, %186 : vector<8x512xf32>
    %188 = vector.broadcast %3 : vector<1x512xf32> to vector<8x512xf32>
    %189 = arith.addf %187, %188 : vector<8x512xf32>
    %190 = vector.extract_strided_slice %189 {offsets = [0, 0], sizes = [8, 384], strides = [1, 1]} : vector<8x512xf32> to vector<8x384xf32>
    %191 = arith.negf %190 : vector<8x384xf32>
    %192 = math.exp %191 : vector<8x384xf32>
    %cst_86 = arith.constant 1.000000e+00 : f32
    %193 = vector.broadcast %cst_86 : f32 to vector<8x384xf32>
    %194 = arith.addf %193, %192 : vector<8x384xf32>
    %195 = arith.divf %193, %194 : vector<8x384xf32>
    %196 = vector.extract_strided_slice %195 {offsets = [0, 0], sizes = [8, 128], strides = [1, 1]} : vector<8x384xf32> to vector<8x128xf32>
    %197 = vector.extract_strided_slice %195 {offsets = [0, 128], sizes = [8, 128], strides = [1, 1]} : vector<8x384xf32> to vector<8x128xf32>
    %198 = vector.extract_strided_slice %195 {offsets = [0, 256], sizes = [8, 128], strides = [1, 1]} : vector<8x384xf32> to vector<8x128xf32>
    %199 = vector.extract_strided_slice %189 {offsets = [0, 384], sizes = [8, 128], strides = [1, 1]} : vector<8x512xf32> to vector<8x128xf32>
    %200 = math.tanh %199 : vector<8x128xf32>
    %201 = arith.mulf %197, %174 : vector<8x128xf32>
    %202 = arith.mulf %196, %200 : vector<8x128xf32>
    %203 = arith.addf %201, %202 : vector<8x128xf32>
    %204 = math.tanh %203 : vector<8x128xf32>
    %205 = arith.mulf %198, %204 : vector<8x128xf32>
    %206 = arith.truncf %205 : vector<8x128xf32> to vector<8x128xbf16>
    %c0_87 = arith.constant 0 : index
    %c6_88 = arith.constant 6 : index
    %c0_89 = arith.constant 0 : index
    %207 = vector.load %arg6[%c0_87, %c6_88, %c0_89] : memref<8x8x128xf32, #tpu.memory_space<vmem>>, vector<8x1x128xf32>
    %208 = vector.shape_cast %207 : vector<8x1x128xf32> to vector<8x128xf32>
    %209 = vector.shape_cast %205 : vector<8x128xf32> to vector<8x1x128xf32>
    tpu.vector_store %arg6[%c0_87, %c6_88, %c0_89], %209 {strides = array<i32>} : memref<8x8x128xf32, #tpu.memory_space<vmem>>, vector<8x1x128xf32>,
    %c0_90 = arith.constant 0 : index
    %c7 = arith.constant 7 : index
    %c0_91 = arith.constant 0 : index
    %210 = vector.load %arg2[%c0_90, %c7, %c0_91] : memref<8x8x128xbf16, #tpu.memory_space<vmem>>, vector<8x1x128xbf16>
    %211 = vector.shape_cast %210 : vector<8x1x128xbf16> to vector<8x128xbf16>
    %c0_92 = arith.constant 0 : index
    %c0_93 = arith.constant 0 : index
    %212 = vector.load %arg3[%c0_92, %c0_93] : memref<128x512xbf16, #tpu.memory_space<vmem>>, vector<128x512xbf16>
    %cst_94 = arith.constant dense<0.000000e+00> : vector<8x512xf32>
    %213 = tpu.matmul %211, %212, %cst_94 {dimension_numbers = #tpu.dot_dimension_numbers<[1], [0], [0], [1], [0, 0, 1, 1], [], []>} : vector<8x128xbf16>, vector<128x512xbf16>, vector<8x512xf32> -> vector<8x512xf32>
    %c0_95 = arith.constant 0 : index
    %c0_96 = arith.constant 0 : index
    %214 = vector.load %arg4[%c0_95, %c0_96] : memref<128x512xbf16, #tpu.memory_space<vmem>>, vector<128x512xbf16>
    %cst_97 = arith.constant dense<0.000000e+00> : vector<8x512xf32>
    %215 = tpu.matmul %206, %214, %cst_97 {dimension_numbers = #tpu.dot_dimension_numbers<[1], [0], [0], [1], [0, 0, 1, 1], [], []>} : vector<8x128xbf16>, vector<128x512xbf16>, vector<8x512xf32> -> vector<8x512xf32>
    %216 = arith.addf %213, %215 : vector<8x512xf32>
    %217 = vector.broadcast %3 : vector<1x512xf32> to vector<8x512xf32>
    %218 = arith.addf %216, %217 : vector<8x512xf32>
    %219 = vector.extract_strided_slice %218 {offsets = [0, 0], sizes = [8, 384], strides = [1, 1]} : vector<8x512xf32> to vector<8x384xf32>
    %220 = arith.negf %219 : vector<8x384xf32>
    %221 = math.exp %220 : vector<8x384xf32>
    %cst_98 = arith.constant 1.000000e+00 : f32
    %222 = vector.broadcast %cst_98 : f32 to vector<8x384xf32>
    %223 = arith.addf %222, %221 : vector<8x384xf32>
    %224 = arith.divf %222, %223 : vector<8x384xf32>
    %225 = vector.extract_strided_slice %224 {offsets = [0, 0], sizes = [8, 128], strides = [1, 1]} : vector<8x384xf32> to vector<8x128xf32>
    %226 = vector.extract_strided_slice %224 {offsets = [0, 128], sizes = [8, 128], strides = [1, 1]} : vector<8x384xf32> to vector<8x128xf32>
    %227 = vector.extract_strided_slice %224 {offsets = [0, 256], sizes = [8, 128], strides = [1, 1]} : vector<8x384xf32> to vector<8x128xf32>
    %228 = vector.extract_strided_slice %218 {offsets = [0, 384], sizes = [8, 128], strides = [1, 1]} : vector<8x512xf32> to vector<8x128xf32>
    %229 = math.tanh %228 : vector<8x128xf32>
    %230 = arith.mulf %226, %203 : vector<8x128xf32>
    %231 = arith.mulf %225, %229 : vector<8x128xf32>
    %232 = arith.addf %230, %231 : vector<8x128xf32>
    %233 = math.tanh %232 : vector<8x128xf32>
    %234 = arith.mulf %227, %233 : vector<8x128xf32>
    %c0_99 = arith.constant 0 : index
    %c7_100 = arith.constant 7 : index
    %c0_101 = arith.constant 0 : index
    %235 = vector.load %arg6[%c0_99, %c7_100, %c0_101] : memref<8x8x128xf32, #tpu.memory_space<vmem>>, vector<8x1x128xf32>
    %236 = vector.shape_cast %235 : vector<8x1x128xf32> to vector<8x128xf32>
    %237 = vector.shape_cast %234 : vector<8x128xf32> to vector<8x1x128xf32>
    tpu.vector_store %arg6[%c0_99, %c7_100, %c0_101], %237 {strides = array<i32>} : memref<8x8x128xf32, #tpu.memory_space<vmem>>, vector<8x1x128xf32>,
    %c0_102 = arith.constant 0 : index
    %c0_103 = arith.constant 0 : index
    %238 = vector.load %arg7[%c0_102, %c0_103] : memref<8x128xf32, #tpu.memory_space<vmem>>, vector<8x128xf32>
    tpu.vector_store %arg7[%c0_102, %c0_103], %234 {strides = array<i32>} : memref<8x128xf32, #tpu.memory_space<vmem>>, vector<8x128xf32>,
    %c0_104 = arith.constant 0 : index
    %c0_105 = arith.constant 0 : index
    %239 = vector.load %arg8[%c0_104, %c0_105] : memref<8x128xf32, #tpu.memory_space<vmem>>, vector<8x128xf32>
    tpu.vector_store %arg8[%c0_104, %c0_105], %232 {strides = array<i32>} : memref<8x128xf32, #tpu.memory_space<vmem>>, vector<8x128xf32>,
    return
  }
  func.func @transform_0(%arg0: i32, %arg1: i32) -> (i32, i32, i32) {
    %c0_i32 = arith.constant 0 : i32
    %c0_i32_0 = arith.constant 0 : i32
    return %arg0, %arg1, %c0_i32 : i32, i32, i32
  }
  func.func @transform_1(%arg0: i32, %arg1: i32) -> (i32, i32) {
    %c0_i32 = arith.constant 0 : i32
    %c0_i32_0 = arith.constant 0 : i32
    %c0_i32_1 = arith.constant 0 : i32
    return %c0_i32, %c0_i32_0 : i32, i32
  }
  func.func @transform_2(%arg0: i32, %arg1: i32) -> (i32, i32) {
    %c0_i32 = arith.constant 0 : i32
    %c0_i32_0 = arith.constant 0 : i32
    %c0_i32_1 = arith.constant 0 : i32
    return %c0_i32, %c0_i32_0 : i32, i32
  }
  func.func @transform_3(%arg0: i32, %arg1: i32) -> (i32, i32) {
    %c0_i32 = arith.constant 0 : i32
    %c0_i32_0 = arith.constant 0 : i32
    %c0_i32_1 = arith.constant 0 : i32
    return %c0_i32, %c0_i32_0 : i32, i32
  }
  func.func @transform_4(%arg0: i32, %arg1: i32) -> (i32, i32, i32) {
    %c0_i32 = arith.constant 0 : i32
    %c0_i32_0 = arith.constant 0 : i32
    return %arg0, %arg1, %c0_i32 : i32, i32, i32
  }
}

</mosaic_0001>

<bundles_post_ra>
// kernel: lstm_forward_pallas.1
= control target key start
LH: loop header
LB: loop body
LE: loop exit
PB: predicated region body
PF: predicated region fallthrough
CT: control target
= control target key end

     0   :  { %9 = vsyncpa [#allocation5], 0  ;;  %s8619_s0 = inlined_call_operand.vmem [shape: bf16[8,8,128], index: 0, kind: input, shape index: {}]   ;;  %s8620_s1 = inlined_call_operand.hbm [shape: bf16[128,512], index: 1, kind: input, shape index: {}]   ;;  %s8621_s2 = inlined_call_operand.hbm [shape: bf16[128,512], index: 2, kind: input, shape index: {}]   ;;  %s8622_s3 = inlined_call_operand.vmem [shape: f32[1,512], index: 3, kind: input, shape index: {}]   ;;  %s8623_s4 = inlined_call_operand.vmem [shape: f32[8,8,128], index: 4, kind: output, shape index: {}]  }
   0x1   :  { %10 = vsyncpa [#allocation7], 0  ;;  %s6946_s15 = smov [#allocation4]   ;;  %s6898_s19 = scalar_lea.hbm %s8620_s1, 4096 }
   0x2   :  { %s18_s16 = sshll.u32 %s6946_s15, 4  ;;  %p6899_p0 = scmp.ne.s32.totalorder %s8620_s1, %s6898_s19  ;;  %s19_s16 = int_to_ptr.vmem [resolvable:$true] %s18_s16 }
   0x3   :  { %p6902_p1 = scmp.lt.u32.totalorder %s6898_s19, %s8620_s1 }
   0x5   :  { %p6904_p2 = pnand %p6902_p1, %p6899_p0 }
   0x7   :  { %6907 = shalt.err (!%p6904_p2)
}
   0x8   :  { %s6908_s24 = scalar_lea.vmem %s19_s16, 4096  ;;  %p6913_p4 = scmp.lt.s32.totalorder %s19_s16, %s19_s16 }
   0x9   :  { %p6909_p3 = scmp.ne.s32.totalorder %s19_s16, %s6908_s24  ;;  %p6914_p5 = scmp.lt.s32.totalorder %s6908_s24, %s6908_s24 }
   0xb   :  { %p6915_p6 = por %p6914_p5, %p6913_p4 }
   0xd   :  { %p6916_p7 = pnand %p6915_p6, %p6909_p3 }
   0xf   :  { %6919 = shalt.err (!%p6916_p7)
}
  0x10   :  { %s6947_s25 = smov 256   ;;  %s6948_s26 = smov 16  }
  0x11   :  { %24 = dma.hbm_to_vmem [thread:$0]  %s8620_s1, 4096, %s19_s16, [#allocation5], %s6947_s25, %s6947_s25, %s6948_s26  }
  0x12   :  { %s6949_s29 = smov [#allocation6]   ;;  %s6920_s7 = scalar_lea.hbm %s8621_s2, 4096 }
  0x13   :  { %s30_s30 = sshll.u32 %s6949_s29, 4  ;;  %p6921_p8 = scmp.ne.s32.totalorder %s8621_s2, %s6920_s7  ;;  %s31_s30 = int_to_ptr.vmem [resolvable:$true] %s30_s30 }
  0x14   :  { %p6924_p9 = scmp.lt.u32.totalorder %s6920_s7, %s8621_s2 }
  0x16   :  { %p6926_p10 = pnand %p6924_p9, %p6921_p8 }
  0x18   :  { %6929 = shalt.err (!%p6926_p10)
}
  0x19   :  { %s6930_s12 = scalar_lea.vmem %s31_s30, 4096  ;;  %p6935_p12 = scmp.lt.s32.totalorder %s31_s30, %s31_s30 }
  0x1a   :  { %p6931_p11 = scmp.ne.s32.totalorder %s31_s30, %s6930_s12  ;;  %p6936_p13 = scmp.lt.s32.totalorder %s6930_s12, %s6930_s12 }
  0x1c   :  { %p6937_p0 = por %p6936_p13, %p6935_p12 }
  0x1e   :  { %p6938_p1 = pnand %p6937_p0, %p6931_p11 }
  0x20   :  { %6941 = shalt.err (!%p6938_p1)
}
  0x21   :  { %36 = dma.hbm_to_vmem [thread:$0]  %s8621_s2, 4096, %s31_s30, [#allocation7], %s6947_s25, %s6947_s25, %s6948_s26  }
  0x22   :  { %6942 = dma.done.wait [#allocation5], 4096  }
  0x23   :  { %6943 = vsyncadd [#allocation5], 4294963200 }
  0x24   :  { %6944 = dma.done.wait [#allocation7], 4096  }
  0x25   :  { %6945 = vsyncadd [#allocation7], 4294963200  ;;  %v8624_v0 = vmov 0   ;;  %v7004_v1 = vld [vmem:[#allocation6 + $0x4] ss:$16 sps:$4 sm:$0xff]   ;;  %v6951_v39 = vmov 0.0|0.0  }
  0x26   :  { %320 = vmatprep.mubr.bf16.mxu0 %v8624_v0  ;;  %361 = vmatprep.mubr.bf16.mxu1 %v8624_v0  ;;  %v7006_v2 = vld [vmem:[#allocation6 + $0xc] ss:$16 sps:$4 sm:$0xff]   ;;  %v7009_v3 = vld [vmem:[#allocation6] ss:$16 sps:$4 sm:$0xff]   ;;  %v7011_v4 = vld [vmem:[#allocation6 + $0x8] ss:$16 sps:$4 sm:$0xff]  }
  0x27   :  { %288 = vmatprep.subr.bf16.mxu0 %v7004_v1  ;;  %329 = vmatprep.subr.bf16.mxu1 %v7006_v2  ;;  %v7014_v5 = vld [vmem:[#allocation6 + $0x24] ss:$16 sps:$4 sm:$0xff]   ;;  %v7018_v6 = vld [vmem:[#allocation6 + $0x2c] ss:$16 sps:$4 sm:$0xff]   ;;  %v7020_v7 = vld [vmem:[#allocation6 + $0x20] ss:$16 sps:$4 sm:$0xff]  }
  0x28   :  { %289 = vmatpush1.bf16.msra.mxu0 %v7009_v3  ;;  %330 = vmatpush1.bf16.msra.mxu1 %v7011_v4  ;;  %v7023_v8 = vld [vmem:[#allocation6 + $0x28] ss:$16 sps:$4 sm:$0xff]   ;;  %v7026_v9 = vld [vmem:[#allocation6 + $0x44] ss:$16 sps:$4 sm:$0xff]   ;;  %v7028_v10 = vld [vmem:[#allocation6 + $0x4c] ss:$16 sps:$4 sm:$0xff]  }
  0x29   :  { %290 = vmatprep.subr.bf16.mxu0 %v7014_v5  ;;  %331 = vmatprep.subr.bf16.mxu1 %v7018_v6  ;;  %v7030_v11 = vld [vmem:[#allocation6 + $0x40] ss:$16 sps:$4 sm:$0xff]   ;;  %v7032_v12 = vld [vmem:[#allocation6 + $0x48] ss:$16 sps:$4 sm:$0xff]   ;;  %v7036_v13 = vld [vmem:[#allocation6 + $0x64] ss:$16 sps:$4 sm:$0xff]  }
  0x2a   :  { %v7040_v14 = vld [vmem:[#allocation6 + $0x6c] ss:$16 sps:$4 sm:$0xff]   ;;  %v7042_v15 = vld [vmem:[#allocation6 + $0x60] ss:$16 sps:$4 sm:$0xff]   ;;  %v7046_v16 = vld [vmem:[#allocation6 + $0x68] ss:$16 sps:$4 sm:$0xff]  }
  0x2b   :  { %v7048_v17 = vld [vmem:[#allocation6 + $0x84] ss:$16 sps:$4 sm:$0xff]   ;;  %v7052_v18 = vld [vmem:[#allocation6 + $0x8c] ss:$16 sps:$4 sm:$0xff]   ;;  %v7054_v19 = vld [vmem:[#allocation6 + $0x80] ss:$16 sps:$4 sm:$0xff]  }
  0x2c   :  { %291 = vmatpush1.bf16.msra.mxu0 %v7020_v7  ;;  %332 = vmatpush1.bf16.msra.mxu1 %v7023_v8  ;;  %v7056_v20 = vld [vmem:[#allocation6 + $0x88] ss:$16 sps:$4 sm:$0xff]   ;;  %v7060_v21 = vld [vmem:[#allocation6 + $0xa4] ss:$16 sps:$4 sm:$0xff]   ;;  %v7064_v22 = vld [vmem:[#allocation6 + $0xac] ss:$16 sps:$4 sm:$0xff]  }
  0x2d   :  { %292 = vmatprep.subr.bf16.mxu0 %v7026_v9  ;;  %333 = vmatprep.subr.bf16.mxu1 %v7028_v10  ;;  %v7066_v23 = vld [vmem:[#allocation6 + $0xa0] ss:$16 sps:$4 sm:$0xff]   ;;  %v7070_v24 = vld [vmem:[#allocation6 + $0xa8] ss:$16 sps:$4 sm:$0xff]   ;;  %v7072_v25 = vld [vmem:[#allocation6 + $0xc4] ss:$16 sps:$4 sm:$0xff]  }
  0x2e   :  { %v7076_v26 = vld [vmem:[#allocation6 + $0xcc] ss:$16 sps:$4 sm:$0xff]   ;;  %v7078_v27 = vld [vmem:[#allocation6 + $0xc0] ss:$16 sps:$4 sm:$0xff]   ;;  %v7080_v28 = vld [vmem:[#allocation6 + $0xc8] ss:$16 sps:$4 sm:$0xff]  }
  0x2f   :  { %v7084_v29 = vld [vmem:[#allocation6 + $0xe4] ss:$16 sps:$4 sm:$0xff]   ;;  %v7088_v30 = vld [vmem:[#allocation6 + $0xec] ss:$16 sps:$4 sm:$0xff]   ;;  %v7090_v31 = vld [vmem:[#allocation6 + $0xe0] ss:$16 sps:$4 sm:$0xff]  }
  0x30   :  { %293 = vmatpush1.bf16.msra.mxu0 %v7030_v11  ;;  %334 = vmatpush1.bf16.msra.mxu1 %v7032_v12  ;;  %v7092_v32 = vld [vmem:[#allocation6 + $0xe8] ss:$16 sps:$4 sm:$0xff]   ;;  %v7096_v33 = vld [vmem:[#allocation4 + $0x4] ss:$16 sps:$4 sm:$0xff]   ;;  %v7100_v34 = vld [vmem:[#allocation4 + $0xc] ss:$16 sps:$4 sm:$0xff]  }
  0x31   :  { %294 = vmatprep.subr.bf16.mxu0 %v7036_v13  ;;  %335 = vmatprep.subr.bf16.mxu1 %v7040_v14  ;;  %v7102_v35 = vld [vmem:[#allocation4] ss:$16 sps:$4 sm:$0xff]   ;;  %v7104_v36 = vld [vmem:[#allocation4 + $0x8] ss:$16 sps:$4 sm:$0xff]   ;;  %v7108_v37 = vld [vmem:[#allocation4 + $0x24] ss:$16 sps:$4 sm:$0xff]  }
  0x32   :  { %v7112_v38 = vld [vmem:[#allocation4 + $0x2c] ss:$16 sps:$4 sm:$0xff]   ;;  %v7114_v40 = vld [vmem:[#allocation4 + $0x20] ss:$16 sps:$4 sm:$0xff]   ;;  %v7116_v41 = vld [vmem:[#allocation4 + $0x28] ss:$16 sps:$4 sm:$0xff]  }
  0x33   :  { %8676 = vst [vmem:[#allocation10_spill] sm:$0xff] %v7116_v41  ;;  %v7120_v42 = vld [vmem:[#allocation4 + $0x44] ss:$16 sps:$4 sm:$0xff]   ;;  %v7124_v43 = vld [vmem:[#allocation4 + $0x4c] ss:$16 sps:$4 sm:$0xff]   ;;  %vm403_vm0 = vcmask 1041409  }
  0x34   :  { %295 = vmatpush1.bf16.msra.mxu0 %v7042_v15  ;;  %336 = vmatpush1.bf16.msra.mxu1 %v7046_v16  ;;  %8677 = vst [vmem:[#allocation11_spill] sm:$0xff] %v7120_v42  ;;  %8678 = vst [vmem:[#allocation12_spill] sm:$0xff] %v7124_v43  ;;  %v7128_v44 = vld [vmem:[#allocation4 + $0x40] ss:$16 sps:$4 sm:$0xff]   ;;  %v7130_v45 = vld [vmem:[#allocation4 + $0x48] ss:$16 sps:$4 sm:$0xff]  }
  0x35   :  { %296 = vmatprep.subr.bf16.mxu0 %v7048_v17  ;;  %337 = vmatprep.subr.bf16.mxu1 %v7052_v18  ;;  %8679 = vst [vmem:[#allocation13_spill] sm:$0xff] %v7128_v44  ;;  %8680 = vst [vmem:[#allocation14_spill] sm:$0xff] %v7130_v45  ;;  %v7134_v46 = vld [vmem:[#allocation4 + $0x64] ss:$16 sps:$4 sm:$0xff]   ;;  %v7138_v47 = vld [vmem:[#allocation4 + $0x6c] ss:$16 sps:$4 sm:$0xff]  }
  0x36   :  { %8681 = vst [vmem:[#allocation15_spill] sm:$0xff] %v7134_v46  ;;  %8682 = vst [vmem:[#allocation16_spill] sm:$0xff] %v7138_v47  ;;  %v7140_v48 = vld [vmem:[#allocation4 + $0x60] ss:$16 sps:$4 sm:$0xff]   ;;  %v7142_v49 = vld [vmem:[#allocation4 + $0x68] ss:$16 sps:$4 sm:$0xff]  }
  0x37   :  { %8683 = vst [vmem:[#allocation17_spill] sm:$0xff] %v7140_v48  ;;  %8684 = vst [vmem:[#allocation18_spill] sm:$0xff] %v7142_v49  ;;  %vm406_vm1 = vcmask 1042434   ;;  %v7144_v50 = vld [vmem:[#allocation4 + $0x84] ss:$16 sps:$4 sm:$0xff]   ;;  %vm409_vm2 = vcmask 1043459  }
  0x38   :  { %297 = vmatpush1.bf16.msra.mxu0 %v7054_v19  ;;  %338 = vmatpush1.bf16.msra.mxu1 %v7056_v20  ;;  %8685 = vst [vmem:[#allocation19_spill] sm:$0xff] %v7144_v50  ;;  %v7146_v51 = vld [vmem:[#allocation4 + $0x8c] ss:$16 sps:$4 sm:$0xff]   ;;  %v6418_v52 = vld [vmem:[%s8619_s0] ss:$0 sps:$4 sm:$0x11]  }
  0x39   :  { %298 = vmatprep.subr.bf16.mxu0 %v7060_v21  ;;  %339 = vmatprep.subr.bf16.mxu1 %v7064_v22  ;;  %8686 = vst [vmem:[#allocation20_spill] sm:$0xff] %v7146_v51  ;;  %v7155_v53 = vld [vmem:[#allocation4 + $0x80] ss:$16 sps:$4 sm:$0xff]   ;;  %v7157_v54 = vld [vmem:[#allocation4 + $0x88] ss:$16 sps:$4 sm:$0xff]   ;;  %v394_v63 = vunpack.c.l.b16 %v6418_v52  ;;  %vm412_vm3 = vcmask 1044484  }
  0x3a   :  { %v6419_v55 = vld [vmem:[%s8619_s0 + $0x4] ss:$0 sps:$4 sm:$0x11]   ;;  %v6420_v56 = vld [vmem:[%s8619_s0 + $0x8] ss:$0 sps:$4 sm:$0x11]  }
  0x3b   :  { %v7165_v57 = vld [vmem:[#allocation4 + $0xa4] ss:$16 sps:$4 sm:$0xff]   ;;  %v7167_v58 = vld [vmem:[#allocation4 + $0xac] ss:$16 sps:$4 sm:$0xff]   ;;  %vm415_vm4 = vcmask 1045509   ;;  %vm418_vm5 = vcmask 1046534  }
  0x3c   :  { %299 = vmatpush1.bf16.msra.mxu0 %v7066_v23  ;;  %340 = vmatpush1.bf16.msra.mxu1 %v7070_v24  ;;  %v6421_v59 = vld [vmem:[%s8619_s0 + $0xc] ss:$0 sps:$4 sm:$0x11]   ;;  %v6422_v60 = vld [vmem:[%s8619_s0 + $0x10] ss:$0 sps:$4 sm:$0x11]  }
  0x3d   :  { %300 = vmatprep.subr.bf16.mxu0 %v7072_v25  ;;  %341 = vmatprep.subr.bf16.mxu1 %v7076_v26  ;;  %v6423_v61 = vld [vmem:[%s8619_s0 + $0x14] ss:$0 sps:$4 sm:$0x11]   ;;  %v6424_v62 = vld [vmem:[%s8619_s0 + $0x18] ss:$0 sps:$4 sm:$0x11]  }
  0x3e   :  { %vm421_vm6 = vcmask 1047559  }
  0x40   :  { %301 = vmatpush1.bf16.msra.mxu0 %v7078_v27  ;;  %342 = vmatpush1.bf16.msra.mxu1 %v7080_v28 }
  0x41   :  { %302 = vmatprep.subr.bf16.mxu0 %v7084_v29  ;;  %343 = vmatprep.subr.bf16.mxu1 %v7088_v30 }
  0x44   :  { %303 = vmatpush1.bf16.msra.mxu0 %v7090_v31  ;;  %344 = vmatpush1.bf16.msra.mxu1 %v7092_v32 }
  0x45   :  { %585 = vmatprep.subr.bf16.mxu0 %v7096_v33  ;;  %626 = vmatprep.subr.bf16.mxu1 %v7100_v34 }
  0x47   :  { %321 = vmatmul.mubr.bf16.vlgmr.msra.gmra.mrb[0].mxu0 %v6951_v39  ;;  %362 = vmatmul.mubr.bf16.vlgmr.msra.gmra.mrb[0].mxu1 %v6951_v39  ;;  %v395_v39 = vunpack.c.l.b16 %v6419_v55  ;;  %v7192_v55 = vld [vmem:[#allocation4 + $0xc4] ss:$16 sps:$4 sm:$0xff]  }
  0x48   :  { %586 = vmatpush1.bf16.msra.mxu0 %v7102_v35  ;;  %627 = vmatpush1.bf16.msra.mxu1 %v7104_v36 }
  0x49   :  { %587 = vmatprep.subr.bf16.mxu0 %v7108_v37  ;;  %628 = vmatprep.subr.bf16.mxu1 %v7112_v38 }
  0x4a   :  { %617 = vmatprep.mubr.bf16.mxu0 %v8624_v0  ;;  %658 = vmatprep.mubr.bf16.mxu1 %v8624_v0  ;;  %v396_v0 = vunpack.c.l.b16 %v6420_v56  ;;  %v7194_v56 = vld [vmem:[#allocation4 + $0xcc] ss:$16 sps:$4 sm:$0xff]  }
  0x4c   :  { %588 = vmatpush1.bf16.msra.mxu0 %v7114_v40  ;;  %629 = vmatpush1.bf16.msra.mxu1 %v7116_v41  ;;  %v405_v52 = vrot.slane %v396_v0, 6 }
  0x4d   :  { %589 = vmatprep.subr.bf16.mxu0 %v7120_v42  ;;  %630 = vmatprep.subr.bf16.mxu1 %v7124_v43  ;;  %v400_v43 = vunpack.c.l.b16 %v6424_v62  ;;  %v402_v42 = vrot.slane %v395_v39, 7  ;;  %v7202_v62 = vld [vmem:[#allocation4 + $0xc0] ss:$16 sps:$4 sm:$0xff]  }
  0x4e   :  { %v7218_v39 = vld [vmem:[#allocation4 + $0xe0] ss:$16 sps:$4 sm:$0xff]  }
  0x50   :  { %590 = vmatpush1.bf16.msra.mxu0 %v7128_v44  ;;  %631 = vmatpush1.bf16.msra.mxu1 %v7130_v45  ;;  %v7190_v45 = vld [vmem:[#allocation4 + $0xa8] ss:$16 sps:$4 sm:$0xff]   ;;  %v399_v44 = vunpack.c.l.b16 %v6423_v61  ;;  %v417_v61 = vrot.slane %v400_v43, 2 }
  0x51   :  { %591 = vmatprep.subr.bf16.mxu0 %v7134_v46  ;;  %632 = vmatprep.subr.bf16.mxu1 %v7138_v47  ;;  %v398_v47 = vunpack.c.l.b16 %v6422_v60  ;;  %v7188_v46 = vld [vmem:[#allocation4 + $0xa0] ss:$16 sps:$4 sm:$0xff]   ;;  %v404_v60 = vsel %vm403_vm0, %v402_v42, %v394_v63  ;;  %v7209_v42 = vld [vmem:[#allocation4 + $0xec] ss:$16 sps:$4 sm:$0xff]  }
  0x52   :  { %v414_v41 = vrot.slane %v399_v44, 3  ;;  %v407_v0 = vsel %vm406_vm1, %v405_v52, %v404_v60  ;;  %v7220_v52 = vld [vmem:[#allocation4 + $0xe8] ss:$16 sps:$4 sm:$0xff]  }
  0x54   :  { %592 = vmatpush1.bf16.msra.mxu0 %v7140_v48  ;;  %633 = vmatpush1.bf16.msra.mxu1 %v7142_v49  ;;  %v6425_v48 = vld [vmem:[%s8619_s0 + $0x1c] ss:$0 sps:$4 sm:$0x11]   ;;  %v397_v49 = vunpack.c.l.b16 %v6421_v59 }
  0x55   :  { %593 = vmatprep.subr.bf16.mxu0 %v7144_v50  ;;  %634 = vmatprep.subr.bf16.mxu1 %v7146_v51  ;;  %v411_v51 = vrot.slane %v398_v47, 4  ;;  %v401_v59 = vunpack.c.l.b16 %v6425_v48  ;;  %v7204_v47 = vld [vmem:[#allocation4 + $0xc8] ss:$16 sps:$4 sm:$0xff]   ;;  %v7207_v48 = vld [vmem:[#allocation4 + $0xe4] ss:$16 sps:$4 sm:$0xff]  }
  0x56   :  { %v408_v50 = vrot.slane %v397_v49, 5 }
  0x57   :  { %v420_v43 = vrot.slane %v401_v59, 1  ;;  %v8687_v59 = vmov 0  }
  0x58   :  { %594 = vmatpush1.bf16.msra.mxu0 %v7155_v53  ;;  %635 = vmatpush1.bf16.msra.mxu1 %v7157_v54  ;;  %v410_v49 = vsel %vm409_vm2, %v408_v50, %v407_v0 }
  0x59   :  { %595 = vmatprep.subr.bf16.mxu0 %v7165_v57  ;;  %636 = vmatprep.subr.bf16.mxu1 %v7167_v58  ;;  %v413_v44 = vsel %vm412_vm3, %v411_v51, %v410_v49 }
  0x5a   :  { %v416_v63 = vsel %vm415_vm4, %v414_v41, %v413_v44 }
  0x5b   :  { %v419_v50 = vsel %vm418_vm5, %v417_v61, %v416_v63 }
  0x5c   :  { %596 = vmatpush1.bf16.msra.mxu0 %v7188_v46  ;;  %637 = vmatpush1.bf16.msra.mxu1 %v7190_v45  ;;  %v422_v51 = vsel %vm421_vm6, %v420_v43, %v419_v50 }
  0x5d   :  { %597 = vmatprep.subr.bf16.mxu0 %v7192_v55  ;;  %638 = vmatprep.subr.bf16.mxu1 %v7194_v56  ;;  %v423_v41 = vpack.c.b16 %v422_v51, %v422_v51 }
  0x60   :  { %598 = vmatpush1.bf16.msra.mxu0 %v7202_v62  ;;  %639 = vmatpush1.bf16.msra.mxu1 %v7204_v47 }
  0x61   :  { %599 = vmatprep.subr.bf16.mxu0 %v7207_v48  ;;  %640 = vmatprep.subr.bf16.mxu1 %v7209_v42 }
  0x64   :  { %600 = vmatpush1.bf16.msra.mxu0 %v7218_v39  ;;  %641 = vmatpush1.bf16.msra.mxu1 %v7220_v52 }
  0x65   :  { %1015 = vmatprep.subr.bf16.mxu0 %v7004_v1  ;;  %1056 = vmatprep.subr.bf16.mxu1 %v7006_v2 }
  0x67   :  { %618 = vmatmul.mubr.bf16.vlgmr.msra.gmra.mrb[4].mxu0 %v423_v41  ;;  %659 = vmatmul.mubr.bf16.vlgmr.msra.gmra.mrb[4].mxu1 %v423_v41 }
  0x68   :  { %1016 = vmatpush1.bf16.msra.mxu0 %v7009_v3  ;;  %1057 = vmatpush1.bf16.msra.mxu1 %v7011_v4 }
  0x69   :  { %1017 = vmatprep.subr.bf16.mxu0 %v7014_v5  ;;  %1058 = vmatprep.subr.bf16.mxu1 %v7018_v6 }
  0x6a   :  { %1047 = vmatprep.mubr.bf16.mxu0 %v8687_v59  ;;  %1088 = vmatprep.mubr.bf16.mxu1 %v8687_v59 }
  0x6c   :  { %1018 = vmatpush1.bf16.msra.mxu0 %v7020_v7  ;;  %1059 = vmatpush1.bf16.msra.mxu1 %v7023_v8 }
  0x6d   :  { %1019 = vmatprep.subr.bf16.mxu0 %v7026_v9  ;;  %1060 = vmatprep.subr.bf16.mxu1 %v7028_v10  ;;  %v668_v9 = vlaneseq }
  0x6f   :  { %v669_v10 = vshrl.u32 %v668_v9, 7 }
  0x70   :  { %1020 = vmatpush1.bf16.msra.mxu0 %v7030_v11  ;;  %1061 = vmatpush1.bf16.msra.mxu1 %v7032_v12  ;;  %v52_v12 = vld [vmem:[%s8622_s3] sm:$0xf] }
  0x71   :  { %1021 = vmatprep.subr.bf16.mxu0 %v7036_v13  ;;  %1062 = vmatprep.subr.bf16.mxu1 %v7040_v14  ;;  %v670_v11 = vsub.s32 0, %v669_v10  ;;  %v674_v13 = vsub.s32 1, %v669_v10 }
  0x73   :  { %v7268_v14 = vrot.slane %v52_v12, %v670_v11 }
  0x74   :  { %1022 = vmatpush1.bf16.msra.mxu0 %v7042_v15  ;;  %1063 = vmatpush1.bf16.msra.mxu1 %v7046_v16 }
  0x75   :  { %1023 = vmatprep.subr.bf16.mxu0 %v7048_v17  ;;  %1064 = vmatprep.subr.bf16.mxu1 %v7052_v18  ;;  %v7270_v17 = vrot.slane %v52_v12, %v674_v13 }
  0x78   :  { %1024 = vmatpush1.bf16.msra.mxu0 %v7054_v19  ;;  %1065 = vmatpush1.bf16.msra.mxu1 %v7056_v20 }
  0x79   :  { %1025 = vmatprep.subr.bf16.mxu0 %v7060_v21  ;;  %1066 = vmatprep.subr.bf16.mxu1 %v7064_v22 }
  0x7c   :  { %1026 = vmatpush1.bf16.msra.mxu0 %v7066_v23  ;;  %1067 = vmatpush1.bf16.msra.mxu1 %v7070_v24 }
  0x7d   :  { %1027 = vmatprep.subr.bf16.mxu0 %v7072_v25  ;;  %1068 = vmatprep.subr.bf16.mxu1 %v7076_v26 }
  0x80   :  { %1028 = vmatpush1.bf16.msra.mxu0 %v7078_v27  ;;  %1069 = vmatpush1.bf16.msra.mxu1 %v7080_v28  ;;  %v678_v27 = vsub.s32 2, %v669_v10 }
  0x81   :  { %1029 = vmatprep.subr.bf16.mxu0 %v7084_v29  ;;  %1070 = vmatprep.subr.bf16.mxu1 %v7088_v30 }
  0x84   :  { %1030 = vmatpush1.bf16.msra.mxu0 %v7090_v31  ;;  %1071 = vmatpush1.bf16.msra.mxu1 %v7092_v32 }
  0x85   :  { %1305 = vmatprep.subr.bf16.mxu0 %v7096_v33  ;;  %1346 = vmatprep.subr.bf16.mxu1 %v7100_v34  ;;  %v682_v33 = vsub.s32 3, %v669_v10  ;;  %v7274_v34 = vrot.slane %v52_v12, %v678_v27 }
  0x87   :  { %v7276_v60 = vrot.slane %v52_v12, %v682_v33 }
 0x11a   :  { %v322_v1 = vpop.f32.mrb[0].mxu0  ;;  %v363_v2 = vpop.f32.mrb[0].mxu1 }
 0x11b   :  { %v324_v3 = vpop.f32.mrb[1].mxu0  ;;  %v365_v4 = vpop.f32.mrb[1].mxu1 }
 0x11c   :  { %v326_v5 = vpop.f32.mrb[2].mxu0  ;;  %v367_v6 = vpop.f32.mrb[2].mxu1 }
 0x11d   :  { %v327_v7 = vpop.f32.mrb[3].mxu0  ;;  %v368_v8 = vpop.f32.mrb[3].mxu1 }
 0x11e   :  { %v6952_v7 = vmov 1966171168  }
 0x11f   :  { %v720_v8 = vunpack.c.l.s4 %v6952_v7 }
 0x121   :  { %v721_v9 = vunpack.c.0.s8 %v720_v8 }
 0x123   :  { %v7283_v12 = vsub.s32 %v721_v9, %v669_v10 }
 0x13a   :  { %v619_v15 = vpop.f32.mrb[4].mxu0  ;;  %v660_v16 = vpop.f32.mrb[4].mxu1 }
 0x13b   :  { %v620_v18 = vadd.f32 %v619_v15, %v322_v1  ;;  %v661_v19 = vadd.f32 %v660_v16, %v363_v2  ;;  %v621_v20 = vpop.f32.mrb[5].mxu0  ;;  %v662_v21 = vpop.f32.mrb[5].mxu1  ;;  %v6426_v15 = vld [vmem:[%s8619_s0] ss:$0 sps:$4 sm:$0x11]  }
 0x13c   :  { %v622_v22 = vadd.f32 %v621_v20, %v324_v3  ;;  %v663_v23 = vadd.f32 %v662_v21, %v365_v4  ;;  %v623_v24 = vpop.f32.mrb[6].mxu0  ;;  %v664_v25 = vpop.f32.mrb[6].mxu1  ;;  %v1121_v10 = vunpack.c.l.b16 %v6426_v15  ;;  %v6433_v15 = vld [vmem:[%s8619_s0 + $0x1c] ss:$0 sps:$4 sm:$0x11]  }
 0x13d   :  { %v688_v26 = vadd.f32 %v7268_v14, %v620_v18  ;;  %v624_v28 = vpop.f32.mrb[7].mxu0  ;;  %v665_v29 = vpop.f32.mrb[7].mxu1  ;;  %v690_v0 = vadd.f32 %v7274_v34, %v661_v19  ;;  %v6428_v18 = vld [vmem:[%s8619_s0 + $0x8] ss:$0 sps:$4 sm:$0x11]  }
 0x13e   :  { %v689_v30 = vadd.f32 %v7270_v17, %v622_v22  ;;  %v691_v61 = vadd.f32 %v7276_v60, %v663_v23  ;;  %v6427_v22 = vld [vmem:[%s8619_s0 + $0x4] ss:$0 sps:$4 sm:$0x11]   ;;  %v1123_v27 = vunpack.c.l.b16 %v6428_v18  ;;  %v8697_v18 = vld [vmem:[#allocation19_spill] sm:$0xff] }
 0x13f   :  { %v5755_v31 = vmul.f32 -1.442695, %v688_v26  ;;  %v5757_v49 = vmul.f32 -1.442695, %v690_v0 }
 0x140   :  { %v5756_v32 = vmul.f32 -1.442695, %v689_v30  ;;  %v6429_v26 = vld [vmem:[%s8619_s0 + $0xc] ss:$0 sps:$4 sm:$0x11]  }
 0x141   :  { %6770 = vpow2.f32 %v5755_v31 }
 0x142   :  { %6772 = vpow2.f32 %v5756_v32 }
 0x143   :  { %6774 = vtanh.f32 %v691_v61  ;;  %v1124_v61 = vunpack.c.l.b16 %v6429_v26  ;;  %v7410_v26 = vld [vmem:[#allocation6 + $0x48] ss:$16 sps:$4 sm:$0xff]  }
 0x144   :  { %6776 = vpow2.f32 %v5757_v49 }
 0x14b   :  { %v6771_v44 = vpop.eup %6770 }
 0x14c   :  { %v701_v63 = vadd.f32 1.0, %v6771_v44  ;;  %v6773_v43 = vpop.eup %6772  ;;  %v8689_v44 = vld [vmem:[#allocation11_spill] sm:$0xff] }
 0x14d   :  { %v702_v50 = vadd.f32 1.0, %v6773_v43  ;;  %v6775_v51 = vpop.eup %6774  ;;  %v1131_v43 = vrot.slane %v1123_v27, 7  ;;  %v7416_v27 = vld [vmem:[#allocation6 + $0x64] ss:$16 sps:$4 sm:$0xff]  }
 0x14e   :  { %6778 = vrcp.f32 %v701_v63  ;;  %v6777_v41 = vpop.eup %6776  ;;  %v8690_v63 = vld [vmem:[#allocation12_spill] sm:$0xff] }
 0x14f   :  { %6780 = vrcp.f32 %v702_v50  ;;  %v703_v4 = vadd.f32 1.0, %v6777_v41  ;;  %v8691_v41 = vld [vmem:[#allocation13_spill] sm:$0xff] }
 0x151   :  { %6782 = vrcp.f32 %v703_v4  ;;  %v8694_v4 = vld [vmem:[#allocation16_spill] sm:$0xff] }
 0x158   :  { %v6779_v1 = vpop.eup %6778 }
 0x159   :  { %v712_v2 = vmul.f32 %v6779_v1, %v6775_v51  ;;  %v6781_v3 = vpop.eup %6780  ;;  %v8692_v1 = vld [vmem:[#allocation14_spill] sm:$0xff] }
 0x15a   :  { %v711_v5 = vmul.f32 0.0, %v6781_v3  ;;  %v8693_v3 = vld [vmem:[#allocation15_spill] sm:$0xff] }
 0x15b   :  { %v6783_v11 = vpop.eup %6782 }
 0x15c   :  { %v7280_v6 = vadd.f32 %v712_v2, %v711_v5  ;;  %v1133_v2 = vrot.slane %v1124_v61, 6  ;;  %v6432_v5 = vld [vmem:[%s8619_s0 + $0x18] ss:$0 sps:$4 sm:$0x11]   ;;  %v7448_v61 = vld [vmem:[#allocation6 + $0xc4] ss:$16 sps:$4 sm:$0xff]  }
 0x15e   :  { %6784 = vtanh.f32 %v7280_v6 }
 0x168   :  { %v6785_v13 = vpop.eup %6784 }
 0x169   :  { %v715_v16 = vmul.f32 %v6785_v13, %v6783_v11  ;;  %v8695_v11 = vld [vmem:[#allocation17_spill] sm:$0xff]  ;;  %v8696_v13 = vld [vmem:[#allocation18_spill] sm:$0xff] }
 0x16b   :  { %v716_v19 = vpack.c.bf16 %v715_v16, %v715_v16  ;;  %v718_v20 = vcombine.high %v715_v16, %v715_v16  ;;  %v725_v21 = vrot.slane %v715_v16, %v7283_v12 }
 0x16d   :  { %v732_v23 = vrot.slane %v718_v20, %v7283_v12  ;;  %v733_v24 = vcombine.high %v725_v21, %v725_v21  ;;  %v741_v25 = vrot.slane %v725_v21, %v7283_v12  ;;  %5758 = vst.sshfl [vmem:[%s8623_s4] sm:$0x1 pattern:$0x73625140] %v725_v21  ;;  %1048 = vmatmul.mubr.bf16.vlgmr.msra.gmra.mrb[8].mxu0 %v716_v19  ;;  %v1127_v20 = vunpack.c.l.b16 %v6432_v5 }
 0x16e   :  { %1089 = vmatmul.mubr.bf16.vlgmr.msra.gmra.mrb[8].mxu1 %v716_v19  ;;  %1306 = vmatpush1.bf16.msra.mxu0 %v7102_v35  ;;  %v1122_v35 = vunpack.c.l.b16 %v6427_v22  ;;  %v8698_v19 = vld [vmem:[#allocation20_spill] sm:$0xff] }
 0x16f   :  { %1347 = vmatpush1.bf16.msra.mxu1 %v7104_v36  ;;  %v734_v28 = vcombine.high %v732_v23, %v732_v23  ;;  %v748_v29 = vrot.slane %v732_v23, %v7283_v12  ;;  %v755_v30 = vrot.slane %v733_v24, %v7283_v12  ;;  %v763_v31 = vcombine.high %v741_v25, %v741_v25 }
 0x170   :  { %5759 = vst.sshfl [vmem:[%s8623_s4 + $0x8] sm:$0x1 pattern:$0x73625140] %v733_v24  ;;  %1307 = vmatprep.subr.bf16.mxu0 %v7108_v37  ;;  %1348 = vmatprep.subr.bf16.mxu1 %v7112_v38  ;;  %v1129_v36 = vrot.slane %v1121_v10, 1  ;;  %v8688_v38 = vld [vmem:[#allocation10_spill] sm:$0xff]  ;;  %v1128_v10 = vunpack.c.l.b16 %v6433_v15 }
 0x171   :  { %5760 = vst.sshfl [vmem:[%s8623_s4 + $0x20] sm:$0x1 pattern:$0x73625140] %v732_v23  ;;  %1337 = vmatprep.mubr.bf16.mxu0 %v8687_v59  ;;  %v762_v32 = vrot.slane %v734_v28, %v7283_v12  ;;  %v764_v33 = vcombine.high %v748_v29, %v748_v29  ;;  %v765_v0 = vcombine.high %v755_v30, %v755_v30  ;;  %777 = vst [vmem:[%s8623_s4 + $0x10] sm:$0x1] %v763_v31 }
 0x172   :  { %5761 = vst.sshfl [vmem:[%s8623_s4 + $0x28] sm:$0x1 pattern:$0x73625140] %v734_v28  ;;  %1378 = vmatprep.mubr.bf16.mxu1 %v8687_v59  ;;  %1308 = vmatpush1.bf16.msra.mxu0 %v7114_v40  ;;  %v1130_v50 = vsel %vm403_vm0, %v1122_v35, %v1129_v36  ;;  %v1139_v23 = vrot.slane %v1127_v20, 3  ;;  %v1141_v25 = vrot.slane %v1128_v10, 2 }
 0x173   :  { %v6430_v37 = vld [vmem:[%s8619_s0 + $0x10] ss:$0 sps:$4 sm:$0x11]   ;;  %1349 = vmatpush1.bf16.msra.mxu1 %v8688_v38  ;;  %v766_v49 = vcombine.high %v762_v32, %v762_v32  ;;  %778 = vst [vmem:[%s8623_s4 + $0x18] sm:$0x1] %v765_v0  ;;  %1309 = vmatprep.subr.bf16.mxu0 %v8689_v44  ;;  %v1132_v7 = vsel %vm406_vm1, %v1131_v43, %v1130_v50 }
 0x174   :  { %781 = vst [vmem:[%s8623_s4 + $0x30] sm:$0x1] %v764_v33  ;;  %1350 = vmatprep.subr.bf16.mxu1 %v8690_v63  ;;  %v6431_v40 = vld [vmem:[%s8619_s0 + $0x14] ss:$0 sps:$4 sm:$0x11]   ;;  %v1125_v51 = vunpack.c.l.b16 %v6430_v37  ;;  %v1134_v16 = vsel %vm409_vm2, %v1133_v2, %v1132_v7 }
 0x175   :  { %782 = vst [vmem:[%s8623_s4 + $0x38] sm:$0x1] %v766_v49  ;;  %v1126_v8 = vunpack.c.l.b16 %v6431_v40  ;;  %v7418_v28 = vld [vmem:[#allocation6 + $0x6c] ss:$16 sps:$4 sm:$0xff]   ;;  %v7420_v29 = vld [vmem:[#allocation6 + $0x60] ss:$16 sps:$4 sm:$0xff]  }
 0x176   :  { %1310 = vmatpush1.bf16.msra.mxu0 %v8691_v41  ;;  %v1135_v9 = vrot.slane %v1125_v51, 5  ;;  %v7422_v30 = vld [vmem:[#allocation6 + $0x68] ss:$16 sps:$4 sm:$0xff]   ;;  %v7428_v31 = vld [vmem:[#allocation6 + $0x84] ss:$16 sps:$4 sm:$0xff]  }
 0x177   :  { %1351 = vmatpush1.bf16.msra.mxu1 %v8692_v1  ;;  %1311 = vmatprep.subr.bf16.mxu0 %v8693_v3  ;;  %v1137_v21 = vrot.slane %v1126_v8, 4  ;;  %v7430_v35 = vld [vmem:[#allocation6 + $0x8c] ss:$16 sps:$4 sm:$0xff]   ;;  %v7432_v36 = vld [vmem:[#allocation6 + $0x80] ss:$16 sps:$4 sm:$0xff]  }
 0x178   :  { %1352 = vmatprep.subr.bf16.mxu1 %v8694_v4  ;;  %v1136_v22 = vsel %vm412_vm3, %v1135_v9, %v1134_v16  ;;  %v7434_v32 = vld [vmem:[#allocation6 + $0x88] ss:$16 sps:$4 sm:$0xff]   ;;  %v7440_v33 = vld [vmem:[#allocation6 + $0xa0] ss:$16 sps:$4 sm:$0xff]   ;;  %v7442_v0 = vld [vmem:[#allocation6 + $0xa4] ss:$16 sps:$4 sm:$0xff]  }
 0x179   :  { %v1138_v24 = vsel %vm415_vm4, %v1137_v21, %v1136_v22  ;;  %v7444_v37 = vld [vmem:[#allocation6 + $0xa8] ss:$16 sps:$4 sm:$0xff]   ;;  %v7446_v38 = vld [vmem:[#allocation6 + $0xac] ss:$16 sps:$4 sm:$0xff]   ;;  %v7455_v44 = vld [vmem:[#allocation6 + $0xc0] ss:$16 sps:$4 sm:$0xff]  }
 0x17a   :  { %1312 = vmatpush1.bf16.msra.mxu0 %v8695_v11  ;;  %v7451_v49 = vld [vmem:[#allocation6 + $0xcc] ss:$16 sps:$4 sm:$0xff]   ;;  %v7459_v63 = vld [vmem:[#allocation6 + $0xc8] ss:$16 sps:$4 sm:$0xff]   ;;  %v7461_v43 = vld [vmem:[#allocation6 + $0xe4] ss:$16 sps:$4 sm:$0xff]  }
 0x17b   :  { %1353 = vmatpush1.bf16.msra.mxu1 %v8696_v13  ;;  %1313 = vmatprep.subr.bf16.mxu0 %v8697_v18  ;;  %v7464_v40 = vld [vmem:[#allocation6 + $0xec] ss:$16 sps:$4 sm:$0xff]   ;;  %v7467_v50 = vld [vmem:[#allocation6 + $0xe0] ss:$16 sps:$4 sm:$0xff]   ;;  %v7471_v51 = vld [vmem:[#allocation6 + $0xe8] ss:$16 sps:$4 sm:$0xff]  }
 0x17c   :  { %1354 = vmatprep.subr.bf16.mxu1 %v8698_v19  ;;  %v7473_v41 = vld [vmem:[#allocation4 + $0x4] ss:$16 sps:$4 sm:$0xff]   ;;  %v7476_v1 = vld [vmem:[#allocation4 + $0xc] ss:$16 sps:$4 sm:$0xff]  }
 0x17e   :  { %1314 = vmatpush1.bf16.msra.mxu0 %v7155_v53  ;;  %v1140_v53 = vsel %vm418_vm5, %v1139_v23, %v1138_v24 }
 0x17f   :  { %1355 = vmatpush1.bf16.msra.mxu1 %v7157_v54  ;;  %1315 = vmatprep.subr.bf16.mxu0 %v7165_v57  ;;  %v1142_v54 = vsel %vm421_vm6, %v1141_v25, %v1140_v53  ;;  %v7382_v57 = vld [vmem:[#allocation6 + $0xc] ss:$16 sps:$4 sm:$0xff]  }
 0x180   :  { %1356 = vmatprep.subr.bf16.mxu1 %v7167_v58  ;;  %v7384_v58 = vld [vmem:[#allocation6] ss:$16 sps:$4 sm:$0xff]  }
 0x182   :  { %1316 = vmatpush1.bf16.msra.mxu0 %v7188_v46  ;;  %v1143_v46 = vpack.c.b16 %v1142_v54, %v1142_v54 }
 0x183   :  { %1357 = vmatpush1.bf16.msra.mxu1 %v7190_v45  ;;  %1317 = vmatprep.subr.bf16.mxu0 %v7192_v55  ;;  %v7380_v45 = vld [vmem:[#allocation6 + $0x4] ss:$16 sps:$4 sm:$0xff]   ;;  %v7386_v55 = vld [vmem:[#allocation6 + $0x8] ss:$16 sps:$4 sm:$0xff]  }
 0x184   :  { %1358 = vmatprep.subr.bf16.mxu1 %v7194_v56  ;;  %v7392_v56 = vld [vmem:[#allocation6 + $0x24] ss:$16 sps:$4 sm:$0xff]  }
 0x186   :  { %1318 = vmatpush1.bf16.msra.mxu0 %v7202_v62  ;;  %v7394_v62 = vld [vmem:[#allocation6 + $0x2c] ss:$16 sps:$4 sm:$0xff]  }
 0x187   :  { %1359 = vmatpush1.bf16.msra.mxu1 %v7204_v47  ;;  %1319 = vmatprep.subr.bf16.mxu0 %v7207_v48  ;;  %v7396_v47 = vld [vmem:[#allocation6 + $0x20] ss:$16 sps:$4 sm:$0xff]   ;;  %v7398_v48 = vld [vmem:[#allocation6 + $0x28] ss:$16 sps:$4 sm:$0xff]  }
 0x188   :  { %1360 = vmatprep.subr.bf16.mxu1 %v7209_v42  ;;  %v7404_v42 = vld [vmem:[#allocation6 + $0x44] ss:$16 sps:$4 sm:$0xff]  }
 0x18a   :  { %1320 = vmatpush1.bf16.msra.mxu0 %v7218_v39  ;;  %v7406_v39 = vld [vmem:[#allocation6 + $0x4c] ss:$16 sps:$4 sm:$0xff]  }
 0x18b   :  { %1361 = vmatpush1.bf16.msra.mxu1 %v7220_v52  ;;  %1714 = vmatprep.subr.bf16.mxu0 %v7380_v45  ;;  %v7408_v52 = vld [vmem:[#allocation6 + $0x40] ss:$16 sps:$4 sm:$0xff]  }
 0x18c   :  { %1755 = vmatprep.subr.bf16.mxu1 %v7382_v57 }
 0x18d   :  { %1338 = vmatmul.mubr.bf16.vlgmr.msra.gmra.mrb[12].mxu0 %v1143_v46 }
 0x18e   :  { %1379 = vmatmul.mubr.bf16.vlgmr.msra.gmra.mrb[12].mxu1 %v1143_v46  ;;  %1746 = vmatprep.mubr.bf16.mxu0 %v8687_v59 }
 0x18f   :  { %1787 = vmatprep.mubr.bf16.mxu1 %v8687_v59  ;;  %1715 = vmatpush1.bf16.msra.mxu0 %v7384_v58 }
 0x190   :  { %1756 = vmatpush1.bf16.msra.mxu1 %v7386_v55  ;;  %1716 = vmatprep.subr.bf16.mxu0 %v7392_v56 }
 0x191   :  { %1757 = vmatprep.subr.bf16.mxu1 %v7394_v62 }
 0x193   :  { %1717 = vmatpush1.bf16.msra.mxu0 %v7396_v47 }
 0x194   :  { %1758 = vmatpush1.bf16.msra.mxu1 %v7398_v48  ;;  %1718 = vmatprep.subr.bf16.mxu0 %v7404_v42 }
 0x195   :  { %1759 = vmatprep.subr.bf16.mxu1 %v7406_v39 }
 0x197   :  { %1719 = vmatpush1.bf16.msra.mxu0 %v7408_v52 }
 0x198   :  { %1760 = vmatpush1.bf16.msra.mxu1 %v7410_v26  ;;  %1720 = vmatprep.subr.bf16.mxu0 %v7416_v27 }
 0x199   :  { %1761 = vmatprep.subr.bf16.mxu1 %v7418_v28 }
 0x19b   :  { %1721 = vmatpush1.bf16.msra.mxu0 %v7420_v29 }
 0x19c   :  { %1762 = vmatpush1.bf16.msra.mxu1 %v7422_v30  ;;  %1722 = vmatprep.subr.bf16.mxu0 %v7428_v31 }
 0x19d   :  { %1763 = vmatprep.subr.bf16.mxu1 %v7430_v35 }
 0x19f   :  { %1723 = vmatpush1.bf16.msra.mxu0 %v7432_v36 }
 0x1a0   :  { %1764 = vmatpush1.bf16.msra.mxu1 %v7434_v32  ;;  %1724 = vmatprep.subr.bf16.mxu0 %v7442_v0 }
 0x1a1   :  { %1765 = vmatprep.subr.bf16.mxu1 %v7446_v38 }
 0x1a3   :  { %1725 = vmatpush1.bf16.msra.mxu0 %v7440_v33 }
 0x1a4   :  { %1766 = vmatpush1.bf16.msra.mxu1 %v7444_v37  ;;  %1726 = vmatprep.subr.bf16.mxu0 %v7448_v61 }
 0x1a5   :  { %1767 = vmatprep.subr.bf16.mxu1 %v7451_v49 }
 0x1a7   :  { %1727 = vmatpush1.bf16.msra.mxu0 %v7455_v44 }
 0x1a8   :  { %1768 = vmatpush1.bf16.msra.mxu1 %v7459_v63  ;;  %1728 = vmatprep.subr.bf16.mxu0 %v7461_v43 }
 0x1a9   :  { %1769 = vmatprep.subr.bf16.mxu1 %v7464_v40 }
 0x1ab   :  { %1729 = vmatpush1.bf16.msra.mxu0 %v7467_v50 }
 0x1ac   :  { %1770 = vmatpush1.bf16.msra.mxu1 %v7471_v51  ;;  %2004 = vmatprep.subr.bf16.mxu0 %v7473_v41 }
 0x1ad   :  { %2045 = vmatprep.subr.bf16.mxu1 %v7476_v1 }
 0x240   :  { %v1049_v2 = vpop.f32.mrb[8].mxu0 }
 0x241   :  { %v1090_v3 = vpop.f32.mrb[8].mxu1  ;;  %v1051_v4 = vpop.f32.mrb[9].mxu0 }
 0x242   :  { %v1092_v5 = vpop.f32.mrb[9].mxu1  ;;  %v1053_v7 = vpop.f32.mrb[10].mxu0 }
 0x243   :  { %v1094_v8 = vpop.f32.mrb[10].mxu1  ;;  %v1054_v9 = vpop.f32.mrb[11].mxu0 }
 0x244   :  { %v1095_v11 = vpop.f32.mrb[11].mxu1 }
 0x260   :  { %v1339_v13 = vpop.f32.mrb[12].mxu0 }
 0x261   :  { %v1380_v15 = vpop.f32.mrb[12].mxu1  ;;  %v1340_v16 = vadd.f32 %v1339_v13, %v1049_v2  ;;  %v1341_v19 = vpop.f32.mrb[13].mxu0 }
 0x262   :  { %v1381_v18 = vadd.f32 %v1380_v15, %v1090_v3  ;;  %v1382_v20 = vpop.f32.mrb[13].mxu1  ;;  %v1342_v21 = vadd.f32 %v1341_v19, %v1051_v4  ;;  %v1343_v10 = vpop.f32.mrb[14].mxu0 }
 0x263   :  { %v1383_v22 = vadd.f32 %v1382_v20, %v1092_v5  ;;  %v1384_v23 = vpop.f32.mrb[14].mxu1  ;;  %v1387_v24 = vadd.f32 %v1340_v16, %v7268_v14  ;;  %v1344_v25 = vpop.f32.mrb[15].mxu0 }
 0x264   :  { %v1385_v53 = vpop.f32.mrb[15].mxu1  ;;  %v1388_v54 = vadd.f32 %v1342_v21, %v7270_v17  ;;  %v1389_v8 = vadd.f32 %v1381_v18, %v7274_v34  ;;  %v6531_v25 = vld [vmem:[%s8619_s0 + $0x4] ss:$0 sps:$4 sm:$0x22]  }
 0x265   :  { %v5834_v46 = vmul.f32 -1.442695, %v1387_v24  ;;  %v1390_v2 = vadd.f32 %v1383_v22, %v7276_v60  ;;  %v6530_v24 = vld [vmem:[%s8619_s0] ss:$0 sps:$4 sm:$0x22]  }
 0x266   :  { %v5835_v7 = vmul.f32 -1.442695, %v1388_v54  ;;  %v5836_v3 = vmul.f32 -1.442695, %v1389_v8  ;;  %v7496_v54 = vld [vmem:[#allocation4] ss:$16 sps:$4 sm:$0xff]  }
 0x267   :  { %6786 = vpow2.f32 %v5834_v46  ;;  %v7498_v46 = vld [vmem:[#allocation4 + $0x8] ss:$16 sps:$4 sm:$0xff]  }
 0x268   :  { %6788 = vpow2.f32 %v5835_v7 }
 0x269   :  { %6790 = vtanh.f32 %v1390_v2  ;;  %v7501_v2 = vld [vmem:[#allocation4 + $0x24] ss:$16 sps:$4 sm:$0xff]  }
 0x26a   :  { %6792 = vpow2.f32 %v5836_v3  ;;  %v7503_v3 = vld [vmem:[#allocation4 + $0x2c] ss:$16 sps:$4 sm:$0xff]  }
 0x271   :  { %v6787_v9 = vpop.eup %6786 }
 0x272   :  { %v1400_v4 = vadd.f32 1.0, %v6787_v9  ;;  %v6789_v5 = vpop.eup %6788  ;;  %v1820_v9 = vunpack.c.l.b16 %v6530_v24  ;;  %v7530_v24 = vld [vmem:[#allocation4 + $0x4c] ss:$16 sps:$4 sm:$0xff]  }
 0x273   :  { %v1401_v11 = vadd.f32 1.0, %v6789_v5  ;;  %v6791_v13 = vpop.eup %6790  ;;  %8701 = vst [vmem:[#allocation12_spill] sm:$0xff] %v7530_v24 }
 0x274   :  { %6794 = vrcp.f32 %v1400_v4  ;;  %v6793_v15 = vpop.eup %6792  ;;  %v1821_v4 = vunpack.c.l.b16 %v6531_v25  ;;  %v6532_v25 = vld [vmem:[%s8619_s0 + $0x8] ss:$0 sps:$4 sm:$0x22]  }
 0x275   :  { %6796 = vrcp.f32 %v1401_v11  ;;  %v1402_v21 = vadd.f32 1.0, %v6793_v15  ;;  %v7510_v15 = vld [vmem:[#allocation4 + $0x20] ss:$16 sps:$4 sm:$0xff]  }
 0x277   :  { %6798 = vrcp.f32 %v1402_v21 }
 0x27e   :  { %v6795_v16 = vpop.eup %6794 }
 0x27f   :  { %v1411_v19 = vmul.f32 %v6795_v16, %v6791_v13  ;;  %v6797_v20 = vpop.eup %6796  ;;  %v7512_v16 = vld [vmem:[#allocation4 + $0x28] ss:$16 sps:$4 sm:$0xff]  }
 0x280   :  { %v1410_v10 = vmul.f32 %v6797_v20, %v7280_v6  ;;  %8699 = vst [vmem:[#allocation10_spill] sm:$0xff] %v7512_v16  ;;  %v6533_v20 = vld [vmem:[%s8619_s0 + $0xc] ss:$0 sps:$4 sm:$0x22]  }
 0x281   :  { %v6799_v22 = vpop.eup %6798 }
 0x282   :  { %v7487_v18 = vadd.f32 %v1411_v19, %v1410_v10  ;;  %v7516_v19 = vld [vmem:[#allocation4 + $0x44] ss:$16 sps:$4 sm:$0xff]  }
 0x283   :  { %8700 = vst [vmem:[#allocation11_spill] sm:$0xff] %v7516_v19 }
 0x284   :  { %6800 = vtanh.f32 %v7487_v18 }
 0x28e   :  { %v6801_v23 = vpop.eup %6800 }
 0x28f   :  { %v1414_v53 = vmul.f32 %v6801_v23, %v6799_v22 }
 0x291   :  { %v1415_v6 = vpack.c.bf16 %v1414_v53, %v1414_v53  ;;  %v1417_v7 = vcombine.high %v1414_v53, %v1414_v53  ;;  %v1424_v8 = vrot.slane %v1414_v53, %v7283_v12  ;;  %v1828_v53 = vrot.slane %v1820_v9, 2  ;;  %v7550_v9 = vld [vmem:[#allocation4 + $0x40] ss:$16 sps:$4 sm:$0xff]  }
 0x292   :  { %8702 = vst [vmem:[#allocation13_spill] sm:$0xff] %v7550_v9 }
 0x293   :  { %v1431_v5 = vrot.slane %v1417_v7, %v7283_v12  ;;  %v1432_v11 = vcombine.high %v1424_v8, %v1424_v8  ;;  %v1440_v13 = vrot.slane %v1424_v8, %v7283_v12  ;;  %5837 = vst.sshfl [vmem:[%s8623_s4 + $0x1] sm:$0x1 pattern:$0x73625140] %v1424_v8  ;;  %1747 = vmatmul.mubr.bf16.vlgmr.msra.gmra.mrb[16].mxu0 %v1415_v6 }
 0x294   :  { %1788 = vmatmul.mubr.bf16.vlgmr.msra.gmra.mrb[16].mxu1 %v1415_v6  ;;  %2005 = vmatpush1.bf16.msra.mxu0 %v7496_v54  ;;  %v1829_v6 = vrot.slane %v1821_v4, 1  ;;  %v7552_v4 = vld [vmem:[#allocation4 + $0x48] ss:$16 sps:$4 sm:$0xff]  }
 0x295   :  { %2046 = vmatpush1.bf16.msra.mxu1 %v7498_v46  ;;  %v1433_v21 = vcombine.high %v1431_v5, %v1431_v5  ;;  %v1447_v10 = vrot.slane %v1431_v5, %v7283_v12  ;;  %v1454_v22 = vrot.slane %v1432_v11, %v7283_v12  ;;  %v1462_v23 = vcombine.high %v1440_v13, %v1440_v13 }
 0x296   :  { %5838 = vst.sshfl [vmem:[%s8623_s4 + $0x9] sm:$0x1 pattern:$0x73625140] %v1432_v11  ;;  %2006 = vmatprep.subr.bf16.mxu0 %v7501_v2  ;;  %2047 = vmatprep.subr.bf16.mxu1 %v7503_v3  ;;  %8703 = vst [vmem:[#allocation14_spill] sm:$0xff] %v7552_v4  ;;  %v1823_v13 = vunpack.c.l.b16 %v6533_v20 }
 0x297   :  { %5839 = vst.sshfl [vmem:[%s8623_s4 + $0x21] sm:$0x1 pattern:$0x73625140] %v1431_v5  ;;  %2036 = vmatprep.mubr.bf16.mxu0 %v8687_v59  ;;  %v1461_v7 = vrot.slane %v1433_v21, %v7283_v12  ;;  %v1463_v8 = vcombine.high %v1447_v10, %v1447_v10  ;;  %v1464_v11 = vcombine.high %v1454_v22, %v1454_v22  ;;  %1476 = vst [vmem:[%s8623_s4 + $0x11] sm:$0x1] %v1462_v23 }
 0x298   :  { %5840 = vst.sshfl [vmem:[%s8623_s4 + $0x29] sm:$0x1 pattern:$0x73625140] %v1433_v21  ;;  %2077 = vmatprep.mubr.bf16.mxu1 %v8687_v59  ;;  %2007 = vmatpush1.bf16.msra.mxu0 %v7510_v15  ;;  %v7562_v21 = vld [vmem:[#allocation4 + $0x64] ss:$16 sps:$4 sm:$0xff]   ;;  %v1822_v23 = vunpack.c.l.b16 %v6532_v25 }
 0x299   :  { %v6534_v5 = vld [vmem:[%s8619_s0 + $0x10] ss:$0 sps:$4 sm:$0x22]   ;;  %2048 = vmatpush1.bf16.msra.mxu1 %v7512_v16  ;;  %v1465_v10 = vcombine.high %v1461_v7, %v1461_v7  ;;  %1477 = vst [vmem:[%s8623_s4 + $0x19] sm:$0x1] %v1464_v11  ;;  %2008 = vmatprep.subr.bf16.mxu0 %v7516_v19  ;;  %8704 = vst [vmem:[#allocation15_spill] sm:$0xff] %v7562_v21  ;;  %v1830_v7 = vsel %vm403_vm0, %v1829_v6, %v1828_v53 }
 0x29a   :  { %1480 = vst [vmem:[%s8623_s4 + $0x31] sm:$0x1] %v1463_v8  ;;  %2049 = vmatprep.subr.bf16.mxu1 %v7530_v24  ;;  %v7564_v22 = vld [vmem:[#allocation4 + $0x6c] ss:$16 sps:$4 sm:$0xff]   ;;  %v7573_v8 = vld [vmem:[#allocation4 + $0x60] ss:$16 sps:$4 sm:$0xff]   ;;  %v1824_v11 = vunpack.c.l.b16 %v6534_v5  ;;  %v1831_v5 = vsel %vm406_vm1, %v1822_v23, %v1830_v7 }
 0x29b   :  { %8705 = vst [vmem:[#allocation16_spill] sm:$0xff] %v7564_v22  ;;  %v6535_v20 = vld [vmem:[%s8619_s0 + $0x14] ss:$0 sps:$4 sm:$0x22]   ;;  %1481 = vst [vmem:[%s8623_s4 + $0x39] sm:$0x1] %v1465_v10 }
 0x29c   :  { %8706 = vst [vmem:[#allocation17_spill] sm:$0xff] %v7573_v8  ;;  %2009 = vmatpush1.bf16.msra.mxu0 %v7550_v9  ;;  %v7577_v24 = vld [vmem:[#allocation4 + $0x68] ss:$16 sps:$4 sm:$0xff]   ;;  %v7579_v25 = vld [vmem:[#allocation4 + $0x84] ss:$16 sps:$4 sm:$0xff]   ;;  %v1832_v19 = vrot.slane %v1823_v13, 7  ;;  %v1825_v10 = vunpack.c.l.b16 %v6535_v20 }
 0x29d   :  { %2050 = vmatpush1.bf16.msra.mxu1 %v7552_v4  ;;  %8707 = vst [vmem:[#allocation18_spill] sm:$0xff] %v7577_v24  ;;  %2010 = vmatprep.subr.bf16.mxu0 %v7562_v21  ;;  %v7583_v53 = vld [vmem:[#allocation4 + $0x8c] ss:$16 sps:$4 sm:$0xff]   ;;  %v6536_v6 = vld [vmem:[%s8619_s0 + $0x18] ss:$0 sps:$4 sm:$0x22]  }
 0x29e   :  { %2051 = vmatprep.subr.bf16.mxu1 %v7564_v22  ;;  %8708 = vst [vmem:[#allocation19_spill] sm:$0xff] %v7583_v53  ;;  %v7589_v9 = vld [vmem:[#allocation4 + $0x80] ss:$16 sps:$4 sm:$0xff]   ;;  %v1834_v4 = vrot.slane %v1824_v11, 6  ;;  %v7593_v13 = vld [vmem:[#allocation4 + $0x88] ss:$16 sps:$4 sm:$0xff]   ;;  %v1833_v21 = vsel %vm409_vm2, %v1832_v19, %v1831_v5  ;;  %v1826_v7 = vunpack.c.l.b16 %v6536_v6 }
 0x29f   :  { %v6537_v22 = vld [vmem:[%s8619_s0 + $0x1c] ss:$0 sps:$4 sm:$0x22]   ;;  %v7601_v23 = vld [vmem:[#allocation4 + $0xa4] ss:$16 sps:$4 sm:$0xff]   ;;  %v1836_v11 = vrot.slane %v1825_v10, 5 }
 0x2a0   :  { %2011 = vmatpush1.bf16.msra.mxu0 %v7573_v8  ;;  %8709 = vst [vmem:[#allocation20_spill] sm:$0xff] %v7601_v23  ;;  %v7603_v20 = vld [vmem:[#allocation4 + $0xac] ss:$16 sps:$4 sm:$0xff]   ;;  %v7608_v8 = vld [vmem:[#allocation4 + $0xa0] ss:$16 sps:$4 sm:$0xff]   ;;  %v1827_v19 = vunpack.c.l.b16 %v6537_v22  ;;  %v1838_v6 = vrot.slane %v1826_v7, 4 }
 0x2a1   :  { %2052 = vmatpush1.bf16.msra.mxu1 %v7577_v24  ;;  %2012 = vmatprep.subr.bf16.mxu0 %v7579_v25  ;;  %8710 = vst [vmem:[#allocation21_spill] sm:$0xff] %v7603_v20  ;;  %v1835_v24 = vsel %vm412_vm3, %v1834_v4, %v1833_v21  ;;  %v7610_v16 = vld [vmem:[#allocation4 + $0xa8] ss:$16 sps:$4 sm:$0xff]   ;;  %v7614_v5 = vld [vmem:[#allocation4 + $0xc4] ss:$16 sps:$4 sm:$0xff]  }
 0x2a2   :  { %2053 = vmatprep.subr.bf16.mxu1 %v7583_v53  ;;  %v7616_v53 = vld [vmem:[#allocation4 + $0xcc] ss:$16 sps:$4 sm:$0xff]   ;;  %v1837_v4 = vsel %vm415_vm4, %v1836_v11, %v1835_v24  ;;  %v7621_v21 = vld [vmem:[#allocation4 + $0xc0] ss:$16 sps:$4 sm:$0xff]   ;;  %v7623_v10 = vld [vmem:[#allocation4 + $0xc8] ss:$16 sps:$4 sm:$0xff]  }
 0x2a3   :  { %8711 = vst [vmem:[#allocation22_spill] sm:$0xff] %v7616_v53  ;;  %v1840_v22 = vrot.slane %v1827_v19, 3  ;;  %v1839_v7 = vsel %vm418_vm5, %v1838_v6, %v1837_v4  ;;  %v7634_v24 = vld [vmem:[#allocation4 + $0xe0] ss:$16 sps:$4 sm:$0xff]   ;;  %v7636_v11 = vld [vmem:[#allocation4 + $0xe8] ss:$16 sps:$4 sm:$0xff]  }
 0x2a4   :  { %2013 = vmatpush1.bf16.msra.mxu0 %v7589_v9 }
 0x2a5   :  { %2054 = vmatpush1.bf16.msra.mxu1 %v7593_v13  ;;  %2014 = vmatprep.subr.bf16.mxu0 %v7601_v23  ;;  %v7629_v23 = vld [vmem:[#allocation4 + $0xec] ss:$16 sps:$4 sm:$0xff]   ;;  %v1841_v19 = vsel %vm421_vm6, %v1840_v22, %v1839_v7 }
 0x2a6   :  { %2055 = vmatprep.subr.bf16.mxu1 %v7603_v20  ;;  %v7627_v20 = vld [vmem:[#allocation4 + $0xe4] ss:$16 sps:$4 sm:$0xff]  }
 0x2a8   :  { %2015 = vmatpush1.bf16.msra.mxu0 %v7608_v8 }
 0x2a9   :  { %2056 = vmatpush1.bf16.msra.mxu1 %v7610_v16  ;;  %2016 = vmatprep.subr.bf16.mxu0 %v7614_v5 }
 0x2aa   :  { %2057 = vmatprep.subr.bf16.mxu1 %v7616_v53  ;;  %v1842_v53 = vpack.c.b16 %v1841_v19, %v1841_v19 }
 0x2ac   :  { %2017 = vmatpush1.bf16.msra.mxu0 %v7621_v21 }
 0x2ad   :  { %2058 = vmatpush1.bf16.msra.mxu1 %v7623_v10  ;;  %2018 = vmatprep.subr.bf16.mxu0 %v7627_v20 }
 0x2ae   :  { %2059 = vmatprep.subr.bf16.mxu1 %v7629_v23 }
 0x2b0   :  { %2019 = vmatpush1.bf16.msra.mxu0 %v7634_v24 }
 0x2b1   :  { %2060 = vmatpush1.bf16.msra.mxu1 %v7636_v11  ;;  %2413 = vmatprep.subr.bf16.mxu0 %v7380_v45 }
 0x2b2   :  { %2454 = vmatprep.subr.bf16.mxu1 %v7382_v57 }
 0x2b3   :  { %2037 = vmatmul.mubr.bf16.vlgmr.msra.gmra.mrb[20].mxu0 %v1842_v53 }
 0x2b4   :  { %2078 = vmatmul.mubr.bf16.vlgmr.msra.gmra.mrb[20].mxu1 %v1842_v53  ;;  %2414 = vmatpush1.bf16.msra.mxu0 %v7384_v58 }
 0x2b5   :  { %2455 = vmatpush1.bf16.msra.mxu1 %v7386_v55  ;;  %2415 = vmatprep.subr.bf16.mxu0 %v7392_v56 }
 0x2b6   :  { %2456 = vmatprep.subr.bf16.mxu1 %v7394_v62  ;;  %2445 = vmatprep.mubr.bf16.mxu0 %v8687_v59 }
 0x2b7   :  { %2486 = vmatprep.mubr.bf16.mxu1 %v8687_v59 }
 0x2b8   :  { %2416 = vmatpush1.bf16.msra.mxu0 %v7396_v47 }
 0x2b9   :  { %2457 = vmatpush1.bf16.msra.mxu1 %v7398_v48  ;;  %2417 = vmatprep.subr.bf16.mxu0 %v7404_v42 }
 0x2ba   :  { %2458 = vmatprep.subr.bf16.mxu1 %v7406_v39 }
 0x2bc   :  { %2418 = vmatpush1.bf16.msra.mxu0 %v7408_v52 }
 0x2bd   :  { %2459 = vmatpush1.bf16.msra.mxu1 %v7410_v26  ;;  %2419 = vmatprep.subr.bf16.mxu0 %v7416_v27 }
 0x2be   :  { %2460 = vmatprep.subr.bf16.mxu1 %v7418_v28 }
 0x2c0   :  { %2420 = vmatpush1.bf16.msra.mxu0 %v7420_v29 }
 0x2c1   :  { %2461 = vmatpush1.bf16.msra.mxu1 %v7422_v30  ;;  %2421 = vmatprep.subr.bf16.mxu0 %v7428_v31 }
 0x2c2   :  { %2462 = vmatprep.subr.bf16.mxu1 %v7430_v35 }
 0x2c4   :  { %2422 = vmatpush1.bf16.msra.mxu0 %v7432_v36 }
 0x2c5   :  { %2463 = vmatpush1.bf16.msra.mxu1 %v7434_v32  ;;  %2423 = vmatprep.subr.bf16.mxu0 %v7442_v0 }
 0x2c6   :  { %2464 = vmatprep.subr.bf16.mxu1 %v7446_v38 }
 0x2c8   :  { %2424 = vmatpush1.bf16.msra.mxu0 %v7440_v33 }
 0x2c9   :  { %2465 = vmatpush1.bf16.msra.mxu1 %v7444_v37  ;;  %2425 = vmatprep.subr.bf16.mxu0 %v7448_v61 }
 0x2ca   :  { %2466 = vmatprep.subr.bf16.mxu1 %v7451_v49 }
 0x2cc   :  { %2426 = vmatpush1.bf16.msra.mxu0 %v7455_v44 }
 0x2cd   :  { %2467 = vmatpush1.bf16.msra.mxu1 %v7459_v63  ;;  %2427 = vmatprep.subr.bf16.mxu0 %v7461_v43 }
 0x2ce   :  { %2468 = vmatprep.subr.bf16.mxu1 %v7464_v40 }
 0x2d0   :  { %2428 = vmatpush1.bf16.msra.mxu0 %v7467_v50 }
 0x2d1   :  { %2469 = vmatpush1.bf16.msra.mxu1 %v7471_v51  ;;  %2703 = vmatprep.subr.bf16.mxu0 %v7473_v41 }
 0x2d2   :  { %2744 = vmatprep.subr.bf16.mxu1 %v7476_v1 }
 0x366   :  { %v1748_v45 = vpop.f32.mrb[16].mxu0 }
 0x367   :  { %v1789_v57 = vpop.f32.mrb[16].mxu1  ;;  %v1750_v58 = vpop.f32.mrb[17].mxu0 }
 0x368   :  { %v1791_v55 = vpop.f32.mrb[17].mxu1  ;;  %v1752_v56 = vpop.f32.mrb[18].mxu0 }
 0x369   :  { %v1793_v62 = vpop.f32.mrb[18].mxu1  ;;  %v1753_v47 = vpop.f32.mrb[19].mxu0 }
 0x36a   :  { %v1794_v48 = vpop.f32.mrb[19].mxu1 }
 0x386   :  { %v2038_v42 = vpop.f32.mrb[20].mxu0 }
 0x387   :  { %v2079_v39 = vpop.f32.mrb[20].mxu1  ;;  %v2039_v52 = vadd.f32 %v2038_v42, %v1748_v45  ;;  %v2040_v27 = vpop.f32.mrb[21].mxu0 }
 0x388   :  { %v2080_v26 = vadd.f32 %v2079_v39, %v1789_v57  ;;  %v2081_v28 = vpop.f32.mrb[21].mxu1  ;;  %v2041_v29 = vadd.f32 %v2040_v27, %v1750_v58  ;;  %v2042_v31 = vpop.f32.mrb[22].mxu0  ;;  %v6538_v57 = vld [vmem:[%s8619_s0] ss:$0 sps:$4 sm:$0x22]  }
 0x389   :  { %v2082_v30 = vadd.f32 %v2081_v28, %v1791_v55  ;;  %v2083_v35 = vpop.f32.mrb[22].mxu1  ;;  %v2086_v36 = vadd.f32 %v2039_v52, %v7268_v14  ;;  %v2043_v32 = vpop.f32.mrb[23].mxu0  ;;  %v6539_v58 = vld [vmem:[%s8619_s0 + $0x4] ss:$0 sps:$4 sm:$0x22]   ;;  %v2519_v48 = vunpack.c.l.b16 %v6538_v57  ;;  %v8721_v57 = vld [vmem:[#allocation19_spill] sm:$0xff] }
 0x38a   :  { %v2084_v33 = vpop.f32.mrb[23].mxu1  ;;  %v2087_v0 = vadd.f32 %v2041_v29, %v7270_v17  ;;  %v2088_v61 = vadd.f32 %v2080_v26, %v7274_v34  ;;  %v2520_v42 = vunpack.c.l.b16 %v6539_v58 }
 0x38b   :  { %v5913_v37 = vmul.f32 -1.442695, %v2086_v36  ;;  %v2089_v49 = vadd.f32 %v2082_v30, %v7276_v60  ;;  %v6541_v33 = vld [vmem:[%s8619_s0 + $0xc] ss:$0 sps:$4 sm:$0x22]  }
 0x38c   :  { %v5914_v38 = vmul.f32 -1.442695, %v2087_v0  ;;  %v5915_v44 = vmul.f32 -1.442695, %v2088_v61 }
 0x38d   :  { %6802 = vpow2.f32 %v5913_v37  ;;  %v8713_v37 = vld [vmem:[#allocation11_spill] sm:$0xff]  ;;  %v6543_v61 = vld [vmem:[%s8619_s0 + $0x14] ss:$0 sps:$4 sm:$0x22]  }
 0x38e   :  { %6804 = vpow2.f32 %v5914_v38  ;;  %v8714_v38 = vld [vmem:[#allocation12_spill] sm:$0xff] }
 0x38f   :  { %6806 = vtanh.f32 %v2089_v49 }
 0x390   :  { %6808 = vpow2.f32 %v5915_v44 }
 0x397   :  { %v6803_v63 = vpop.eup %6802 }
 0x398   :  { %v2099_v43 = vadd.f32 1.0, %v6803_v63  ;;  %v6805_v40 = vpop.eup %6804  ;;  %v8715_v63 = vld [vmem:[#allocation13_spill] sm:$0xff] }
 0x399   :  { %v2100_v50 = vadd.f32 1.0, %v6805_v40  ;;  %v6807_v51 = vpop.eup %6806  ;;  %v2522_v40 = vunpack.c.l.b16 %v6541_v33  ;;  %v7846_v33 = vld [vmem:[#allocation6 + $0xa8] ss:$16 sps:$4 sm:$0xff]  }
 0x39a   :  { %6810 = vrcp.f32 %v2099_v43  ;;  %v6809_v41 = vpop.eup %6808  ;;  %v8716_v43 = vld [vmem:[#allocation14_spill] sm:$0xff] }
 0x39b   :  { %6812 = vrcp.f32 %v2100_v50  ;;  %v2101_v4 = vadd.f32 1.0, %v6809_v41  ;;  %v8717_v50 = vld [vmem:[#allocation15_spill] sm:$0xff]  ;;  %v6544_v41 = vld [vmem:[%s8619_s0 + $0x18] ss:$0 sps:$4 sm:$0x22]  }
 0x39c   :  { %v2525_v58 = vunpack.c.l.b16 %v6544_v41 }
 0x39d   :  { %6814 = vrcp.f32 %v2101_v4  ;;  %v8719_v4 = vld [vmem:[#allocation17_spill] sm:$0xff] }
 0x3a4   :  { %v6811_v1 = vpop.eup %6810 }
 0x3a5   :  { %v2110_v53 = vmul.f32 %v6811_v1, %v6807_v51  ;;  %v6813_v6 = vpop.eup %6812  ;;  %v8718_v51 = vld [vmem:[#allocation16_spill] sm:$0xff] }
 0x3a6   :  { %v2109_v22 = vmul.f32 %v6813_v6, %v7487_v18  ;;  %v6540_v18 = vld [vmem:[%s8619_s0 + $0x8] ss:$0 sps:$4 sm:$0x22]  }
 0x3a7   :  { %v6815_v19 = vpop.eup %6814  ;;  %v2521_v27 = vunpack.c.l.b16 %v6540_v18 }
 0x3a8   :  { %v7684_v7 = vadd.f32 %v2110_v53, %v2109_v22  ;;  %v2524_v53 = vunpack.c.l.b16 %v6543_v61  ;;  %v8720_v22 = vld [vmem:[#allocation18_spill] sm:$0xff]  ;;  %v7861_v61 = vld [vmem:[#allocation6 + $0xc8] ss:$16 sps:$4 sm:$0xff]  }
 0x3aa   :  { %6816 = vtanh.f32 %v7684_v7 }
 0x3b4   :  { %v6817_v45 = vpop.eup %6816 }
 0x3b5   :  { %v2113_v55 = vmul.f32 %v6817_v45, %v6815_v19  ;;  %v6545_v19 = vld [vmem:[%s8619_s0 + $0x1c] ss:$0 sps:$4 sm:$0x22]  }
 0x3b7   :  { %v2114_v56 = vpack.c.bf16 %v2113_v55, %v2113_v55  ;;  %v2116_v62 = vcombine.high %v2113_v55, %v2113_v55  ;;  %v2123_v47 = vrot.slane %v2113_v55, %v7283_v12  ;;  %v2535_v55 = vrot.slane %v2524_v53, 6 }
 0x3b9   :  { %v2130_v39 = vrot.slane %v2116_v62, %v7283_v12  ;;  %v2131_v52 = vcombine.high %v2123_v47, %v2123_v47  ;;  %v2139_v26 = vrot.slane %v2123_v47, %v7283_v12  ;;  %5916 = vst.sshfl [vmem:[%s8623_s4 + $0x2] sm:$0x1 pattern:$0x73625140] %v2123_v47  ;;  %2446 = vmatmul.mubr.bf16.vlgmr.msra.gmra.mrb[24].mxu0 %v2114_v56  ;;  %v8722_v62 = vld [vmem:[#allocation20_spill] sm:$0xff]  ;;  %v8723_v47 = vld [vmem:[#allocation21_spill] sm:$0xff] }
 0x3ba   :  { %2487 = vmatmul.mubr.bf16.vlgmr.msra.gmra.mrb[24].mxu1 %v2114_v56  ;;  %2704 = vmatpush1.bf16.msra.mxu0 %v7496_v54  ;;  %v2527_v54 = vrot.slane %v2519_v48, 3  ;;  %v2526_v56 = vunpack.c.l.b16 %v6545_v19  ;;  %v2537_v48 = vrot.slane %v2525_v58, 5 }
 0x3bb   :  { %2745 = vmatpush1.bf16.msra.mxu1 %v7498_v46  ;;  %v2132_v28 = vcombine.high %v2130_v39, %v2130_v39  ;;  %v2146_v29 = vrot.slane %v2130_v39, %v7283_v12  ;;  %v2153_v30 = vrot.slane %v2131_v52, %v7283_v12  ;;  %v2161_v31 = vcombine.high %v2139_v26, %v2139_v26  ;;  %v7808_v26 = vld [vmem:[#allocation6 + $0x4c] ss:$16 sps:$4 sm:$0xff]  }
 0x3bc   :  { %5917 = vst.sshfl [vmem:[%s8623_s4 + $0xa] sm:$0x1 pattern:$0x73625140] %v2131_v52  ;;  %2705 = vmatprep.subr.bf16.mxu0 %v7501_v2  ;;  %2746 = vmatprep.subr.bf16.mxu1 %v7503_v3  ;;  %v2528_v46 = vrot.slane %v2520_v42, 2  ;;  %v8712_v3 = vld [vmem:[#allocation10_spill] sm:$0xff] }
 0x3bd   :  { %5918 = vst.sshfl [vmem:[%s8623_s4 + $0x22] sm:$0x1 pattern:$0x73625140] %v2130_v39  ;;  %2735 = vmatprep.mubr.bf16.mxu0 %v8687_v59  ;;  %v2160_v35 = vrot.slane %v2132_v28, %v7283_v12  ;;  %v2162_v36 = vcombine.high %v2146_v29, %v2146_v29  ;;  %v2163_v32 = vcombine.high %v2153_v30, %v2153_v30  ;;  %2175 = vst [vmem:[%s8623_s4 + $0x12] sm:$0x1] %v2161_v31 }
 0x3be   :  { %5919 = vst.sshfl [vmem:[%s8623_s4 + $0x2a] sm:$0x1 pattern:$0x73625140] %v2132_v28  ;;  %2776 = vmatprep.mubr.bf16.mxu1 %v8687_v59  ;;  %2706 = vmatpush1.bf16.msra.mxu0 %v7510_v15  ;;  %v2530_v15 = vrot.slane %v2521_v27, 1  ;;  %v2529_v49 = vsel %vm403_vm0, %v2528_v46, %v2527_v54  ;;  %v8724_v39 = vld [vmem:[#allocation22_spill] sm:$0xff] }
 0x3bf   :  { %v6542_v2 = vld [vmem:[%s8619_s0 + $0x10] ss:$0 sps:$4 sm:$0x22]   ;;  %2747 = vmatpush1.bf16.msra.mxu1 %v8712_v3  ;;  %v2164_v0 = vcombine.high %v2160_v35, %v2160_v35  ;;  %2176 = vst [vmem:[%s8623_s4 + $0x1a] sm:$0x1] %v2163_v32  ;;  %2707 = vmatprep.subr.bf16.mxu0 %v8713_v37 }
 0x3c0   :  { %2179 = vst [vmem:[%s8623_s4 + $0x32] sm:$0x1] %v2162_v36  ;;  %2748 = vmatprep.subr.bf16.mxu1 %v8714_v38  ;;  %v2523_v44 = vunpack.c.l.b16 %v6542_v2  ;;  %v2531_v1 = vsel %vm406_vm1, %v2530_v15, %v2529_v49  ;;  %v7806_v52 = vld [vmem:[#allocation6 + $0x44] ss:$16 sps:$4 sm:$0xff]   ;;  %v7810_v27 = vld [vmem:[#allocation6 + $0x40] ss:$16 sps:$4 sm:$0xff]  }
 0x3c1   :  { %2180 = vst [vmem:[%s8623_s4 + $0x3a] sm:$0x1] %v2164_v0  ;;  %v2532_v45 = vsel %vm409_vm2, %v2522_v40, %v2531_v1  ;;  %v7812_v28 = vld [vmem:[#allocation6 + $0x48] ss:$16 sps:$4 sm:$0xff]   ;;  %v7818_v29 = vld [vmem:[#allocation6 + $0x64] ss:$16 sps:$4 sm:$0xff]  }
 0x3c2   :  { %2708 = vmatpush1.bf16.msra.mxu0 %v8715_v63  ;;  %v2533_v6 = vrot.slane %v2523_v44, 7  ;;  %v7820_v30 = vld [vmem:[#allocation6 + $0x6c] ss:$16 sps:$4 sm:$0xff]   ;;  %v7822_v31 = vld [vmem:[#allocation6 + $0x60] ss:$16 sps:$4 sm:$0xff]  }
 0x3c3   :  { %2749 = vmatpush1.bf16.msra.mxu1 %v8716_v43  ;;  %2709 = vmatprep.subr.bf16.mxu0 %v8717_v50  ;;  %v7824_v54 = vld [vmem:[#allocation6 + $0x68] ss:$16 sps:$4 sm:$0xff]   ;;  %v7830_v46 = vld [vmem:[#allocation6 + $0x84] ss:$16 sps:$4 sm:$0xff]   ;;  %v7832_v35 = vld [vmem:[#allocation6 + $0x8c] ss:$16 sps:$4 sm:$0xff]  }
 0x3c4   :  { %2750 = vmatprep.subr.bf16.mxu1 %v8718_v51  ;;  %v2534_v18 = vsel %vm412_vm3, %v2533_v6, %v2532_v45  ;;  %v7834_v36 = vld [vmem:[#allocation6 + $0x80] ss:$16 sps:$4 sm:$0xff]   ;;  %v7836_v32 = vld [vmem:[#allocation6 + $0x88] ss:$16 sps:$4 sm:$0xff]   ;;  %v7844_v3 = vld [vmem:[#allocation6 + $0xa4] ss:$16 sps:$4 sm:$0xff]  }
 0x3c5   :  { %v2536_v42 = vsel %vm415_vm4, %v2535_v55, %v2534_v18  ;;  %v7842_v2 = vld [vmem:[#allocation6 + $0xa0] ss:$16 sps:$4 sm:$0xff]   ;;  %v7848_v0 = vld [vmem:[#allocation6 + $0xac] ss:$16 sps:$4 sm:$0xff]   ;;  %v7850_v37 = vld [vmem:[#allocation6 + $0xc4] ss:$16 sps:$4 sm:$0xff]  }
 0x3c6   :  { %2710 = vmatpush1.bf16.msra.mxu0 %v8719_v4  ;;  %v7853_v38 = vld [vmem:[#allocation6 + $0xcc] ss:$16 sps:$4 sm:$0xff]   ;;  %v7857_v15 = vld [vmem:[#allocation6 + $0xc0] ss:$16 sps:$4 sm:$0xff]   ;;  %v7863_v49 = vld [vmem:[#allocation6 + $0xe4] ss:$16 sps:$4 sm:$0xff]  }
 0x3c7   :  { %2751 = vmatpush1.bf16.msra.mxu1 %v8720_v22  ;;  %2711 = vmatprep.subr.bf16.mxu0 %v7579_v25  ;;  %v2539_v25 = vrot.slane %v2526_v56, 4  ;;  %v7866_v44 = vld [vmem:[#allocation6 + $0xec] ss:$16 sps:$4 sm:$0xff]   ;;  %v7869_v63 = vld [vmem:[#allocation6 + $0xe0] ss:$16 sps:$4 sm:$0xff]  }
 0x3c8   :  { %2752 = vmatprep.subr.bf16.mxu1 %v8721_v57  ;;  %v7873_v43 = vld [vmem:[#allocation6 + $0xe8] ss:$16 sps:$4 sm:$0xff]   ;;  %v7875_v40 = vld [vmem:[#allocation4 + $0x4] ss:$16 sps:$4 sm:$0xff]   ;;  %v7878_v50 = vld [vmem:[#allocation4 + $0xc] ss:$16 sps:$4 sm:$0xff]  }
 0x3ca   :  { %2712 = vmatpush1.bf16.msra.mxu0 %v7589_v9  ;;  %v2538_v9 = vsel %vm418_vm5, %v2537_v48, %v2536_v42 }
 0x3cb   :  { %2753 = vmatpush1.bf16.msra.mxu1 %v7593_v13  ;;  %2713 = vmatprep.subr.bf16.mxu0 %v8722_v62  ;;  %v2540_v13 = vsel %vm421_vm6, %v2539_v25, %v2538_v9 }
 0x3cc   :  { %2754 = vmatprep.subr.bf16.mxu1 %v8723_v47 }
 0x3ce   :  { %2714 = vmatpush1.bf16.msra.mxu0 %v7608_v8  ;;  %v2541_v8 = vpack.c.b16 %v2540_v13, %v2540_v13 }
 0x3cf   :  { %2755 = vmatpush1.bf16.msra.mxu1 %v7610_v16  ;;  %2715 = vmatprep.subr.bf16.mxu0 %v7614_v5  ;;  %v7782_v16 = vld [vmem:[#allocation6 + $0x4] ss:$16 sps:$4 sm:$0xff]   ;;  %v7784_v5 = vld [vmem:[#allocation6 + $0xc] ss:$16 sps:$4 sm:$0xff]  }
 0x3d0   :  { %2756 = vmatprep.subr.bf16.mxu1 %v8724_v39 }
 0x3d2   :  { %2716 = vmatpush1.bf16.msra.mxu0 %v7621_v21  ;;  %v7786_v21 = vld [vmem:[#allocation6] ss:$16 sps:$4 sm:$0xff]  }
 0x3d3   :  { %2757 = vmatpush1.bf16.msra.mxu1 %v7623_v10  ;;  %2717 = vmatprep.subr.bf16.mxu0 %v7627_v20  ;;  %v7788_v20 = vld [vmem:[#allocation6 + $0x8] ss:$16 sps:$4 sm:$0xff]   ;;  %v7796_v10 = vld [vmem:[#allocation6 + $0x2c] ss:$16 sps:$4 sm:$0xff]  }
 0x3d4   :  { %2758 = vmatprep.subr.bf16.mxu1 %v7629_v23  ;;  %v7794_v23 = vld [vmem:[#allocation6 + $0x24] ss:$16 sps:$4 sm:$0xff]  }
 0x3d6   :  { %2718 = vmatpush1.bf16.msra.mxu0 %v7634_v24  ;;  %v7798_v24 = vld [vmem:[#allocation6 + $0x20] ss:$16 sps:$4 sm:$0xff]  }
 0x3d7   :  { %2759 = vmatpush1.bf16.msra.mxu1 %v7636_v11  ;;  %3112 = vmatprep.subr.bf16.mxu0 %v7782_v16  ;;  %v7800_v11 = vld [vmem:[#allocation6 + $0x28] ss:$16 sps:$4 sm:$0xff]  }
 0x3d8   :  { %3153 = vmatprep.subr.bf16.mxu1 %v7784_v5 }
 0x3d9   :  { %2736 = vmatmul.mubr.bf16.vlgmr.msra.gmra.mrb[28].mxu0 %v2541_v8 }
 0x3da   :  { %2777 = vmatmul.mubr.bf16.vlgmr.msra.gmra.mrb[28].mxu1 %v2541_v8  ;;  %3144 = vmatprep.mubr.bf16.mxu0 %v8687_v59 }
 0x3db   :  { %3185 = vmatprep.mubr.bf16.mxu1 %v8687_v59  ;;  %3113 = vmatpush1.bf16.msra.mxu0 %v7786_v21 }
 0x3dc   :  { %3154 = vmatpush1.bf16.msra.mxu1 %v7788_v20  ;;  %3114 = vmatprep.subr.bf16.mxu0 %v7794_v23 }
 0x3dd   :  { %3155 = vmatprep.subr.bf16.mxu1 %v7796_v10 }
 0x3df   :  { %3115 = vmatpush1.bf16.msra.mxu0 %v7798_v24 }
 0x3e0   :  { %3156 = vmatpush1.bf16.msra.mxu1 %v7800_v11  ;;  %3116 = vmatprep.subr.bf16.mxu0 %v7806_v52 }
 0x3e1   :  { %3157 = vmatprep.subr.bf16.mxu1 %v7808_v26 }
 0x3e3   :  { %3117 = vmatpush1.bf16.msra.mxu0 %v7810_v27 }
 0x3e4   :  { %3158 = vmatpush1.bf16.msra.mxu1 %v7812_v28  ;;  %3118 = vmatprep.subr.bf16.mxu0 %v7818_v29 }
 0x3e5   :  { %3159 = vmatprep.subr.bf16.mxu1 %v7820_v30 }
 0x3e7   :  { %3119 = vmatpush1.bf16.msra.mxu0 %v7822_v31 }
 0x3e8   :  { %3160 = vmatpush1.bf16.msra.mxu1 %v7824_v54  ;;  %3120 = vmatprep.subr.bf16.mxu0 %v7830_v46 }
 0x3e9   :  { %3161 = vmatprep.subr.bf16.mxu1 %v7832_v35 }
 0x3eb   :  { %3121 = vmatpush1.bf16.msra.mxu0 %v7834_v36 }
 0x3ec   :  { %3162 = vmatpush1.bf16.msra.mxu1 %v7836_v32  ;;  %3122 = vmatprep.subr.bf16.mxu0 %v7844_v3 }
 0x3ed   :  { %3163 = vmatprep.subr.bf16.mxu1 %v7848_v0 }
 0x3ef   :  { %3123 = vmatpush1.bf16.msra.mxu0 %v7842_v2 }
 0x3f0   :  { %3164 = vmatpush1.bf16.msra.mxu1 %v7846_v33  ;;  %3124 = vmatprep.subr.bf16.mxu0 %v7850_v37 }
 0x3f1   :  { %3165 = vmatprep.subr.bf16.mxu1 %v7853_v38 }
 0x3f3   :  { %3125 = vmatpush1.bf16.msra.mxu0 %v7857_v15 }
 0x3f4   :  { %3166 = vmatpush1.bf16.msra.mxu1 %v7861_v61  ;;  %3126 = vmatprep.subr.bf16.mxu0 %v7863_v49 }
 0x3f5   :  { %3167 = vmatprep.subr.bf16.mxu1 %v7866_v44 }
 0x3f7   :  { %3127 = vmatpush1.bf16.msra.mxu0 %v7869_v63 }
 0x3f8   :  { %3168 = vmatpush1.bf16.msra.mxu1 %v7873_v43  ;;  %3402 = vmatprep.subr.bf16.mxu0 %v7875_v40 }
 0x3f9   :  { %3443 = vmatprep.subr.bf16.mxu1 %v7878_v50 }
 0x48c   :  { %v2447_v51 = vpop.f32.mrb[24].mxu0 }
 0x48d   :  { %v2488_v41 = vpop.f32.mrb[24].mxu1  ;;  %v2449_v1 = vpop.f32.mrb[25].mxu0 }
 0x48e   :  { %v2490_v53 = vpop.f32.mrb[25].mxu1  ;;  %v2451_v6 = vpop.f32.mrb[26].mxu0 }
 0x48f   :  { %v2492_v4 = vpop.f32.mrb[26].mxu1  ;;  %v2452_v22 = vpop.f32.mrb[27].mxu0 }
 0x490   :  { %v2493_v19 = vpop.f32.mrb[27].mxu1 }
 0x4ac   :  { %v2737_v45 = vpop.f32.mrb[28].mxu0 }
 0x4ad   :  { %v2778_v57 = vpop.f32.mrb[28].mxu1  ;;  %v2738_v58 = vadd.f32 %v2737_v45, %v2447_v51  ;;  %v2739_v18 = vpop.f32.mrb[29].mxu0 }
 0x4ae   :  { %v2779_v55 = vadd.f32 %v2778_v57, %v2488_v41  ;;  %v2780_v56 = vpop.f32.mrb[29].mxu1  ;;  %v2740_v62 = vadd.f32 %v2739_v18, %v2449_v1  ;;  %v2741_v48 = vpop.f32.mrb[30].mxu0 }
 0x4af   :  { %v2781_v47 = vadd.f32 %v2780_v56, %v2490_v53  ;;  %v2782_v42 = vpop.f32.mrb[30].mxu1  ;;  %v2785_v25 = vadd.f32 %v2738_v58, %v7268_v14  ;;  %v2742_v39 = vpop.f32.mrb[31].mxu0 }
 0x4b0   :  { %v2783_v9 = vpop.f32.mrb[31].mxu1  ;;  %v2786_v13 = vadd.f32 %v2740_v62, %v7270_v17  ;;  %v2787_v4 = vadd.f32 %v2779_v55, %v7274_v34  ;;  %v6643_v39 = vld [vmem:[%s8619_s0 + $0x4] ss:$0 sps:$4 sm:$0x44]  }
 0x4b1   :  { %v5992_v8 = vmul.f32 -1.442695, %v2785_v25  ;;  %v2788_v51 = vadd.f32 %v2781_v47, %v7276_v60  ;;  %v6642_v25 = vld [vmem:[%s8619_s0] ss:$0 sps:$4 sm:$0x44]  }
 0x4b2   :  { %v5993_v6 = vmul.f32 -1.442695, %v2786_v13  ;;  %v5994_v41 = vmul.f32 -1.442695, %v2787_v4  ;;  %v7898_v9 = vld [vmem:[#allocation4] ss:$16 sps:$4 sm:$0xff]  }
 0x4b3   :  { %6818 = vpow2.f32 %v5992_v8  ;;  %v7900_v8 = vld [vmem:[#allocation4 + $0x8] ss:$16 sps:$4 sm:$0xff]  }
 0x4b4   :  { %6820 = vpow2.f32 %v5993_v6 }
 0x4b5   :  { %6822 = vtanh.f32 %v2788_v51 }
 0x4b6   :  { %6824 = vpow2.f32 %v5994_v41  ;;  %v7906_v41 = vld [vmem:[#allocation4 + $0x24] ss:$16 sps:$4 sm:$0xff]  }
 0x4bd   :  { %v6819_v22 = vpop.eup %6818 }
 0x4be   :  { %v2798_v1 = vadd.f32 1.0, %v6819_v22  ;;  %v6821_v53 = vpop.eup %6820  ;;  %v7908_v22 = vld [vmem:[#allocation4 + $0x2c] ss:$16 sps:$4 sm:$0xff]  }
 0x4bf   :  { %v2799_v19 = vadd.f32 1.0, %v6821_v53  ;;  %v6823_v45 = vpop.eup %6822  ;;  %v3219_v53 = vunpack.c.l.b16 %v6643_v39  ;;  %v7933_v39 = vld [vmem:[#allocation4 + $0x44] ss:$16 sps:$4 sm:$0xff]  }
 0x4c0   :  { %6826 = vrcp.f32 %v2798_v1  ;;  %v6825_v57 = vpop.eup %6824  ;;  %v3218_v1 = vunpack.c.l.b16 %v6642_v25  ;;  %8726 = vst [vmem:[#allocation11_spill] sm:$0xff] %v7933_v39 }
 0x4c1   :  { %6828 = vrcp.f32 %v2799_v19  ;;  %v2800_v62 = vadd.f32 1.0, %v6825_v57 }
 0x4c3   :  { %6830 = vrcp.f32 %v2800_v62 }
 0x4ca   :  { %v6827_v58 = vpop.eup %6826 }
 0x4cb   :  { %v2809_v18 = vmul.f32 %v6827_v58, %v6823_v45  ;;  %v6829_v56 = vpop.eup %6828  ;;  %v7915_v58 = vld [vmem:[#allocation4 + $0x20] ss:$16 sps:$4 sm:$0xff]  }
 0x4cc   :  { %v2808_v48 = vmul.f32 %v6829_v56, %v7684_v7  ;;  %v6644_v7 = vld [vmem:[%s8619_s0 + $0x8] ss:$0 sps:$4 sm:$0x44]   ;;  %v6645_v56 = vld [vmem:[%s8619_s0 + $0xc] ss:$0 sps:$4 sm:$0x44]  }
 0x4cd   :  { %v6831_v47 = vpop.eup %6830  ;;  %v3220_v62 = vunpack.c.l.b16 %v6644_v7  ;;  %v3226_v7 = vrot.slane %v3218_v1, 4  ;;  %v7949_v1 = vld [vmem:[#allocation4 + $0x40] ss:$16 sps:$4 sm:$0xff]  }
 0x4ce   :  { %v7889_v55 = vadd.f32 %v2809_v18, %v2808_v48  ;;  %v7919_v18 = vld [vmem:[#allocation4 + $0x28] ss:$16 sps:$4 sm:$0xff]   ;;  %8728 = vst [vmem:[#allocation13_spill] sm:$0xff] %v7949_v1 }
 0x4cf   :  { %8725 = vst [vmem:[#allocation10_spill] sm:$0xff] %v7919_v18 }
 0x4d0   :  { %6832 = vtanh.f32 %v7889_v55 }
 0x4da   :  { %v6833_v42 = vpop.eup %6832 }
 0x4db   :  { %v2812_v13 = vmul.f32 %v6833_v42, %v6831_v47 }
 0x4dd   :  { %v2813_v6 = vpack.c.bf16 %v2812_v13, %v2812_v13  ;;  %v2815_v4 = vcombine.high %v2812_v13, %v2812_v13  ;;  %v2822_v51 = vrot.slane %v2812_v13, %v7283_v12  ;;  %v7935_v13 = vld [vmem:[#allocation4 + $0x4c] ss:$16 sps:$4 sm:$0xff]  }
 0x4de   :  { %8727 = vst [vmem:[#allocation12_spill] sm:$0xff] %v7935_v13 }
 0x4df   :  { %v2829_v19 = vrot.slane %v2815_v4, %v7283_v12  ;;  %v2830_v45 = vcombine.high %v2822_v51, %v2822_v51  ;;  %v2838_v57 = vrot.slane %v2822_v51, %v7283_v12  ;;  %5995 = vst.sshfl [vmem:[%s8623_s4 + $0x3] sm:$0x1 pattern:$0x73625140] %v2822_v51  ;;  %3145 = vmatmul.mubr.bf16.vlgmr.msra.gmra.mrb[32].mxu0 %v2813_v6 }
 0x4e0   :  { %3186 = vmatmul.mubr.bf16.vlgmr.msra.gmra.mrb[32].mxu1 %v2813_v6  ;;  %3403 = vmatpush1.bf16.msra.mxu0 %v7898_v9  ;;  %v3227_v6 = vrot.slane %v3219_v53, 3  ;;  %v7951_v53 = vld [vmem:[#allocation4 + $0x48] ss:$16 sps:$4 sm:$0xff]  }
 0x4e1   :  { %3444 = vmatpush1.bf16.msra.mxu1 %v7900_v8  ;;  %v2831_v48 = vcombine.high %v2829_v19, %v2829_v19  ;;  %v2845_v47 = vrot.slane %v2829_v19, %v7283_v12  ;;  %v2852_v42 = vrot.slane %v2830_v45, %v7283_v12  ;;  %v2860_v25 = vcombine.high %v2838_v57, %v2838_v57 }
 0x4e2   :  { %5996 = vst.sshfl [vmem:[%s8623_s4 + $0xb] sm:$0x1 pattern:$0x73625140] %v2830_v45  ;;  %3404 = vmatprep.subr.bf16.mxu0 %v7906_v41  ;;  %3445 = vmatprep.subr.bf16.mxu1 %v7908_v22  ;;  %8729 = vst [vmem:[#allocation14_spill] sm:$0xff] %v7951_v53 }
 0x4e3   :  { %5997 = vst.sshfl [vmem:[%s8623_s4 + $0x23] sm:$0x1 pattern:$0x73625140] %v2829_v19  ;;  %3434 = vmatprep.mubr.bf16.mxu0 %v8687_v59  ;;  %v2859_v4 = vrot.slane %v2831_v48, %v7283_v12  ;;  %v2861_v51 = vcombine.high %v2845_v47, %v2845_v47  ;;  %v2862_v45 = vcombine.high %v2852_v42, %v2852_v42  ;;  %2874 = vst [vmem:[%s8623_s4 + $0x13] sm:$0x1] %v2860_v25 }
 0x4e4   :  { %5998 = vst.sshfl [vmem:[%s8623_s4 + $0x2b] sm:$0x1 pattern:$0x73625140] %v2831_v48  ;;  %3475 = vmatprep.mubr.bf16.mxu1 %v8687_v59  ;;  %3405 = vmatpush1.bf16.msra.mxu0 %v7915_v58  ;;  %v3221_v19 = vunpack.c.l.b16 %v6645_v56  ;;  %v7961_v48 = vld [vmem:[#allocation4 + $0x64] ss:$16 sps:$4 sm:$0xff]   ;;  %v3228_v25 = vsel %vm403_vm0, %v3227_v6, %v3226_v7 }
 0x4e5   :  { %3446 = vmatpush1.bf16.msra.mxu1 %v7919_v18  ;;  %v2863_v57 = vcombine.high %v2859_v4, %v2859_v4  ;;  %2875 = vst [vmem:[%s8623_s4 + $0x1b] sm:$0x1] %v2862_v45  ;;  %2878 = vst [vmem:[%s8623_s4 + $0x33] sm:$0x1] %v2861_v51  ;;  %3406 = vmatprep.subr.bf16.mxu0 %v7933_v39  ;;  %v7963_v47 = vld [vmem:[#allocation4 + $0x6c] ss:$16 sps:$4 sm:$0xff]  }
 0x4e6   :  { %3447 = vmatprep.subr.bf16.mxu1 %v7935_v13  ;;  %8730 = vst [vmem:[#allocation15_spill] sm:$0xff] %v7961_v48  ;;  %8731 = vst [vmem:[#allocation16_spill] sm:$0xff] %v7963_v47  ;;  %v3229_v42 = vrot.slane %v3220_v62, 2  ;;  %v6647_v56 = vld [vmem:[%s8619_s0 + $0x14] ss:$0 sps:$4 sm:$0x44]  }
 0x4e7   :  { %2879 = vst [vmem:[%s8623_s4 + $0x3b] sm:$0x1] %v2863_v57  ;;  %v7972_v4 = vld [vmem:[#allocation4 + $0x60] ss:$16 sps:$4 sm:$0xff]   ;;  %v7979_v62 = vld [vmem:[#allocation4 + $0x68] ss:$16 sps:$4 sm:$0xff]  }
 0x4e8   :  { %8732 = vst [vmem:[#allocation17_spill] sm:$0xff] %v7972_v4  ;;  %v6646_v51 = vld [vmem:[%s8619_s0 + $0x10] ss:$0 sps:$4 sm:$0x44]   ;;  %3407 = vmatpush1.bf16.msra.mxu0 %v7949_v1  ;;  %8733 = vst [vmem:[#allocation18_spill] sm:$0xff] %v7979_v62  ;;  %v3231_v13 = vrot.slane %v3221_v19, 1  ;;  %v3230_v57 = vsel %vm406_vm1, %v3229_v42, %v3228_v25  ;;  %v3223_v1 = vunpack.c.l.b16 %v6647_v56 }
 0x4e9   :  { %3448 = vmatpush1.bf16.msra.mxu1 %v7951_v53  ;;  %v7981_v45 = vld [vmem:[#allocation4 + $0x84] ss:$16 sps:$4 sm:$0xff]   ;;  %3408 = vmatprep.subr.bf16.mxu0 %v7961_v48  ;;  %v7985_v7 = vld [vmem:[#allocation4 + $0x8c] ss:$16 sps:$4 sm:$0xff]   ;;  %v7991_v39 = vld [vmem:[#allocation4 + $0x80] ss:$16 sps:$4 sm:$0xff]   ;;  %v3222_v53 = vunpack.c.l.b16 %v6646_v51 }
 0x4ea   :  { %3449 = vmatprep.subr.bf16.mxu1 %v7963_v47  ;;  %8734 = vst [vmem:[#allocation19_spill] sm:$0xff] %v7985_v7  ;;  %v6648_v6 = vld [vmem:[%s8619_s0 + $0x18] ss:$0 sps:$4 sm:$0x44]   ;;  %v3232_v48 = vsel %vm409_vm2, %v3231_v13, %v3230_v57  ;;  %v8003_v42 = vld [vmem:[#allocation4 + $0xa4] ss:$16 sps:$4 sm:$0xff]  }
 0x4eb   :  { %v7995_v19 = vld [vmem:[#allocation4 + $0x88] ss:$16 sps:$4 sm:$0xff]   ;;  %v6649_v47 = vld [vmem:[%s8619_s0 + $0x1c] ss:$0 sps:$4 sm:$0x44]   ;;  %8735 = vst [vmem:[#allocation20_spill] sm:$0xff] %v8003_v42  ;;  %v3224_v25 = vunpack.c.l.b16 %v6648_v6 }
 0x4ec   :  { %3409 = vmatpush1.bf16.msra.mxu0 %v7972_v4  ;;  %v8005_v56 = vld [vmem:[#allocation4 + $0xac] ss:$16 sps:$4 sm:$0xff]   ;;  %v3234_v51 = vrot.slane %v3223_v1, 7  ;;  %v8010_v4 = vld [vmem:[#allocation4 + $0xa0] ss:$16 sps:$4 sm:$0xff]   ;;  %v3225_v13 = vunpack.c.l.b16 %v6649_v47 }
 0x4ed   :  { %3450 = vmatpush1.bf16.msra.mxu1 %v7979_v62  ;;  %3410 = vmatprep.subr.bf16.mxu0 %v7981_v45  ;;  %8736 = vst [vmem:[#allocation21_spill] sm:$0xff] %v8005_v56  ;;  %v3233_v62 = vsel %vm412_vm3, %v3222_v53, %v3232_v48  ;;  %v8012_v18 = vld [vmem:[#allocation4 + $0xa8] ss:$16 sps:$4 sm:$0xff]   ;;  %v8016_v57 = vld [vmem:[#allocation4 + $0xc4] ss:$16 sps:$4 sm:$0xff]   ;;  %v3236_v1 = vrot.slane %v3224_v25, 6 }
 0x4ee   :  { %3451 = vmatprep.subr.bf16.mxu1 %v7985_v7  ;;  %v8018_v7 = vld [vmem:[#allocation4 + $0xcc] ss:$16 sps:$4 sm:$0xff]   ;;  %v3235_v53 = vsel %vm415_vm4, %v3234_v51, %v3233_v62  ;;  %v8023_v48 = vld [vmem:[#allocation4 + $0xc0] ss:$16 sps:$4 sm:$0xff]   ;;  %v8025_v6 = vld [vmem:[#allocation4 + $0xc8] ss:$16 sps:$4 sm:$0xff]  }
 0x4ef   :  { %8737 = vst [vmem:[#allocation22_spill] sm:$0xff] %v8018_v7  ;;  %v3238_v47 = vrot.slane %v3225_v13, 5  ;;  %v3237_v25 = vsel %vm418_vm5, %v3236_v1, %v3235_v53  ;;  %v8036_v62 = vld [vmem:[#allocation4 + $0xe0] ss:$16 sps:$4 sm:$0xff]   ;;  %v8038_v51 = vld [vmem:[#allocation4 + $0xe8] ss:$16 sps:$4 sm:$0xff]  }
 0x4f0   :  { %3411 = vmatpush1.bf16.msra.mxu0 %v7991_v39 }
 0x4f1   :  { %3452 = vmatpush1.bf16.msra.mxu1 %v7995_v19  ;;  %3412 = vmatprep.subr.bf16.mxu0 %v8003_v42  ;;  %v8031_v42 = vld [vmem:[#allocation4 + $0xec] ss:$16 sps:$4 sm:$0xff]   ;;  %v3239_v13 = vsel %vm421_vm6, %v3238_v47, %v3237_v25 }
 0x4f2   :  { %3453 = vmatprep.subr.bf16.mxu1 %v8005_v56  ;;  %v8029_v56 = vld [vmem:[#allocation4 + $0xe4] ss:$16 sps:$4 sm:$0xff]  }
 0x4f4   :  { %3413 = vmatpush1.bf16.msra.mxu0 %v8010_v4 }
 0x4f5   :  { %3454 = vmatpush1.bf16.msra.mxu1 %v8012_v18  ;;  %3414 = vmatprep.subr.bf16.mxu0 %v8016_v57 }
 0x4f6   :  { %3455 = vmatprep.subr.bf16.mxu1 %v8018_v7  ;;  %v3240_v7 = vpack.c.b16 %v3239_v13, %v3239_v13 }
 0x4f8   :  { %3415 = vmatpush1.bf16.msra.mxu0 %v8023_v48 }
 0x4f9   :  { %3456 = vmatpush1.bf16.msra.mxu1 %v8025_v6  ;;  %3416 = vmatprep.subr.bf16.mxu0 %v8029_v56 }
 0x4fa   :  { %3457 = vmatprep.subr.bf16.mxu1 %v8031_v42 }
 0x4fc   :  { %3417 = vmatpush1.bf16.msra.mxu0 %v8036_v62 }
 0x4fd   :  { %3458 = vmatpush1.bf16.msra.mxu1 %v8038_v51  ;;  %3811 = vmatprep.subr.bf16.mxu0 %v7782_v16 }
 0x4fe   :  { %3852 = vmatprep.subr.bf16.mxu1 %v7784_v5 }
 0x4ff   :  { %3435 = vmatmul.mubr.bf16.vlgmr.msra.gmra.mrb[36].mxu0 %v3240_v7 }
 0x500   :  { %3476 = vmatmul.mubr.bf16.vlgmr.msra.gmra.mrb[36].mxu1 %v3240_v7  ;;  %3812 = vmatpush1.bf16.msra.mxu0 %v7786_v21 }
 0x501   :  { %3853 = vmatpush1.bf16.msra.mxu1 %v7788_v20  ;;  %3813 = vmatprep.subr.bf16.mxu0 %v7794_v23 }
 0x502   :  { %3854 = vmatprep.subr.bf16.mxu1 %v7796_v10  ;;  %3843 = vmatprep.mubr.bf16.mxu0 %v8687_v59 }
 0x503   :  { %3884 = vmatprep.mubr.bf16.mxu1 %v8687_v59 }
 0x504   :  { %3814 = vmatpush1.bf16.msra.mxu0 %v7798_v24 }
 0x505   :  { %3855 = vmatpush1.bf16.msra.mxu1 %v7800_v11  ;;  %3815 = vmatprep.subr.bf16.mxu0 %v7806_v52 }
 0x506   :  { %3856 = vmatprep.subr.bf16.mxu1 %v7808_v26 }
 0x508   :  { %3816 = vmatpush1.bf16.msra.mxu0 %v7810_v27 }
 0x509   :  { %3857 = vmatpush1.bf16.msra.mxu1 %v7812_v28  ;;  %3817 = vmatprep.subr.bf16.mxu0 %v7818_v29 }
 0x50a   :  { %3858 = vmatprep.subr.bf16.mxu1 %v7820_v30 }
 0x50c   :  { %3818 = vmatpush1.bf16.msra.mxu0 %v7822_v31 }
 0x50d   :  { %3859 = vmatpush1.bf16.msra.mxu1 %v7824_v54  ;;  %3819 = vmatprep.subr.bf16.mxu0 %v7830_v46 }
 0x50e   :  { %3860 = vmatprep.subr.bf16.mxu1 %v7832_v35 }
 0x510   :  { %3820 = vmatpush1.bf16.msra.mxu0 %v7834_v36 }
 0x511   :  { %3861 = vmatpush1.bf16.msra.mxu1 %v7836_v32  ;;  %3821 = vmatprep.subr.bf16.mxu0 %v7844_v3 }
 0x512   :  { %3862 = vmatprep.subr.bf16.mxu1 %v7848_v0 }
 0x514   :  { %3822 = vmatpush1.bf16.msra.mxu0 %v7842_v2 }
 0x515   :  { %3863 = vmatpush1.bf16.msra.mxu1 %v7846_v33  ;;  %3823 = vmatprep.subr.bf16.mxu0 %v7850_v37 }
 0x516   :  { %3864 = vmatprep.subr.bf16.mxu1 %v7853_v38 }
 0x518   :  { %3824 = vmatpush1.bf16.msra.mxu0 %v7857_v15 }
 0x519   :  { %3865 = vmatpush1.bf16.msra.mxu1 %v7861_v61  ;;  %3825 = vmatprep.subr.bf16.mxu0 %v7863_v49 }
 0x51a   :  { %3866 = vmatprep.subr.bf16.mxu1 %v7866_v44 }
 0x51c   :  { %3826 = vmatpush1.bf16.msra.mxu0 %v7869_v63 }
 0x51d   :  { %3867 = vmatpush1.bf16.msra.mxu1 %v7873_v43  ;;  %4101 = vmatprep.subr.bf16.mxu0 %v7875_v40 }
 0x51e   :  { %4142 = vmatprep.subr.bf16.mxu1 %v7878_v50 }
 0x5b2   :  { %v3146_v16 = vpop.f32.mrb[32].mxu0 }
 0x5b3   :  { %v3187_v5 = vpop.f32.mrb[32].mxu1  ;;  %v3148_v21 = vpop.f32.mrb[33].mxu0 }
 0x5b4   :  { %v3189_v20 = vpop.f32.mrb[33].mxu1  ;;  %v3150_v23 = vpop.f32.mrb[34].mxu0 }
 0x5b5   :  { %v3191_v10 = vpop.f32.mrb[34].mxu1  ;;  %v3151_v24 = vpop.f32.mrb[35].mxu0 }
 0x5b6   :  { %v3192_v11 = vpop.f32.mrb[35].mxu1 }
 0x5d2   :  { %v3436_v52 = vpop.f32.mrb[36].mxu0 }
 0x5d3   :  { %v3477_v26 = vpop.f32.mrb[36].mxu1  ;;  %v3437_v27 = vadd.f32 %v3436_v52, %v3146_v16  ;;  %v3438_v29 = vpop.f32.mrb[37].mxu0 }
 0x5d4   :  { %v3478_v28 = vadd.f32 %v3477_v26, %v3187_v5  ;;  %v3479_v30 = vpop.f32.mrb[37].mxu1  ;;  %v3439_v31 = vadd.f32 %v3438_v29, %v3148_v21  ;;  %v3440_v46 = vpop.f32.mrb[38].mxu0  ;;  %v6650_v5 = vld [vmem:[%s8619_s0] ss:$0 sps:$4 sm:$0x44]  }
 0x5d5   :  { %v3480_v54 = vadd.f32 %v3479_v30, %v3189_v20  ;;  %v3481_v35 = vpop.f32.mrb[38].mxu1  ;;  %v3484_v36 = vadd.f32 %v3437_v27, %v7268_v14  ;;  %v3441_v32 = vpop.f32.mrb[39].mxu0  ;;  %v6651_v21 = vld [vmem:[%s8619_s0 + $0x4] ss:$0 sps:$4 sm:$0x44]   ;;  %v3917_v11 = vunpack.c.l.b16 %v6650_v5  ;;  %v8747_v5 = vld [vmem:[#allocation19_spill] sm:$0xff] }
 0x5d6   :  { %v3482_v2 = vpop.f32.mrb[39].mxu1  ;;  %v3485_v3 = vadd.f32 %v3439_v31, %v7270_v17  ;;  %v3486_v37 = vadd.f32 %v3478_v28, %v7274_v34  ;;  %v3918_v52 = vunpack.c.l.b16 %v6651_v21  ;;  %v6653_v29 = vld [vmem:[%s8619_s0 + $0xc] ss:$0 sps:$4 sm:$0x44]  }
 0x5d7   :  { %v6071_v33 = vmul.f32 -1.442695, %v3484_v36  ;;  %v3487_v38 = vadd.f32 %v3480_v54, %v7276_v60 }
 0x5d8   :  { %v6072_v0 = vmul.f32 -1.442695, %v3485_v3  ;;  %v6073_v15 = vmul.f32 -1.442695, %v3486_v37  ;;  %v3920_v3 = vunpack.c.l.b16 %v6653_v29  ;;  %v8740_v37 = vld [vmem:[#allocation12_spill] sm:$0xff] }
 0x5d9   :  { %6834 = vpow2.f32 %v6071_v33  ;;  %v8212_v29 = vld [vmem:[#allocation6 + $0x40] ss:$16 sps:$4 sm:$0xff]  }
 0x5da   :  { %6836 = vpow2.f32 %v6072_v0  ;;  %v8739_v0 = vld [vmem:[#allocation11_spill] sm:$0xff] }
 0x5db   :  { %6838 = vtanh.f32 %v3487_v38 }
 0x5dc   :  { %6840 = vpow2.f32 %v6073_v15 }
 0x5e3   :  { %v6835_v61 = vpop.eup %6834 }
 0x5e4   :  { %v3497_v49 = vadd.f32 1.0, %v6835_v61  ;;  %v6837_v44 = vpop.eup %6836  ;;  %v8741_v61 = vld [vmem:[#allocation13_spill] sm:$0xff] }
 0x5e5   :  { %v3498_v63 = vadd.f32 1.0, %v6837_v44  ;;  %v6839_v43 = vpop.eup %6838  ;;  %v3930_v44 = vrot.slane %v3920_v3, 2  ;;  %v8250_v3 = vld [vmem:[#allocation6 + $0xac] ss:$16 sps:$4 sm:$0xff]  }
 0x5e6   :  { %6842 = vrcp.f32 %v3497_v49  ;;  %v6841_v40 = vpop.eup %6840  ;;  %v8742_v49 = vld [vmem:[#allocation14_spill] sm:$0xff] }
 0x5e7   :  { %6844 = vrcp.f32 %v3498_v63  ;;  %v3499_v53 = vadd.f32 1.0, %v6841_v40  ;;  %v8743_v63 = vld [vmem:[#allocation15_spill] sm:$0xff]  ;;  %v6656_v40 = vld [vmem:[%s8619_s0 + $0x18] ss:$0 sps:$4 sm:$0x44]  }
 0x5e8   :  { %v3923_v21 = vunpack.c.l.b16 %v6656_v40 }
 0x5e9   :  { %6846 = vrcp.f32 %v3499_v53  ;;  %v8745_v53 = vld [vmem:[#allocation17_spill] sm:$0xff] }
 0x5f0   :  { %v6843_v50 = vpop.eup %6842 }
 0x5f1   :  { %v3508_v7 = vmul.f32 %v6843_v50, %v6839_v43  ;;  %v6845_v1 = vpop.eup %6844  ;;  %v8744_v43 = vld [vmem:[#allocation16_spill] sm:$0xff] }
 0x5f2   :  { %v3507_v47 = vmul.f32 %v6845_v1, %v7889_v55  ;;  %v6652_v55 = vld [vmem:[%s8619_s0 + $0x8] ss:$0 sps:$4 sm:$0x44]  }
 0x5f3   :  { %v6847_v13 = vpop.eup %6846  ;;  %v3919_v30 = vunpack.c.l.b16 %v6652_v55 }
 0x5f4   :  { %v8086_v25 = vadd.f32 %v3508_v7, %v3507_v47  ;;  %v6655_v7 = vld [vmem:[%s8619_s0 + $0x14] ss:$0 sps:$4 sm:$0x44]   ;;  %v8746_v47 = vld [vmem:[#allocation18_spill] sm:$0xff] }
 0x5f5   :  { %v3928_v38 = vrot.slane %v3919_v30, 3  ;;  %v8214_v30 = vld [vmem:[#allocation6 + $0x48] ss:$16 sps:$4 sm:$0xff]  }
 0x5f6   :  { %6848 = vtanh.f32 %v8086_v25 }
 0x600   :  { %v6849_v16 = vpop.eup %6848 }
 0x601   :  { %v3511_v20 = vmul.f32 %v6849_v16, %v6847_v13  ;;  %v6657_v13 = vld [vmem:[%s8619_s0 + $0x1c] ss:$0 sps:$4 sm:$0x44]  }
 0x603   :  { %v3512_v23 = vpack.c.bf16 %v3511_v20, %v3511_v20  ;;  %v3514_v10 = vcombine.high %v3511_v20, %v3511_v20  ;;  %v3521_v24 = vrot.slane %v3511_v20, %v7283_v12  ;;  %v3922_v20 = vunpack.c.l.b16 %v6655_v7 }
 0x605   :  { %v3528_v26 = vrot.slane %v3514_v10, %v7283_v12  ;;  %v3529_v27 = vcombine.high %v3521_v24, %v3521_v24  ;;  %v3537_v28 = vrot.slane %v3521_v24, %v7283_v12  ;;  %6074 = vst.sshfl [vmem:[%s8623_s4 + $0x4] sm:$0x1 pattern:$0x73625140] %v3521_v24  ;;  %3844 = vmatmul.mubr.bf16.vlgmr.msra.gmra.mrb[40].mxu0 %v3512_v23  ;;  %v8748_v10 = vld [vmem:[#allocation20_spill] sm:$0xff]  ;;  %v8749_v24 = vld [vmem:[#allocation21_spill] sm:$0xff] }
 0x606   :  { %3885 = vmatmul.mubr.bf16.vlgmr.msra.gmra.mrb[40].mxu1 %v3512_v23  ;;  %4102 = vmatpush1.bf16.msra.mxu0 %v7898_v9  ;;  %v3925_v9 = vrot.slane %v3917_v11, 5  ;;  %v3924_v23 = vunpack.c.l.b16 %v6657_v13  ;;  %v3935_v11 = vrot.slane %v3923_v21, 7 }
 0x607   :  { %4143 = vmatpush1.bf16.msra.mxu1 %v7900_v8  ;;  %v3530_v31 = vcombine.high %v3528_v26, %v3528_v26  ;;  %v3544_v54 = vrot.slane %v3528_v26, %v7283_v12  ;;  %v3551_v46 = vrot.slane %v3529_v27, %v7283_v12  ;;  %v3559_v35 = vcombine.high %v3537_v28, %v3537_v28  ;;  %v8210_v28 = vld [vmem:[#allocation6 + $0x4c] ss:$16 sps:$4 sm:$0xff]  }
 0x608   :  { %6075 = vst.sshfl [vmem:[%s8623_s4 + $0xc] sm:$0x1 pattern:$0x73625140] %v3529_v27  ;;  %4103 = vmatprep.subr.bf16.mxu0 %v7906_v41  ;;  %4144 = vmatprep.subr.bf16.mxu1 %v7908_v22  ;;  %v3926_v8 = vrot.slane %v3918_v52, 4  ;;  %v8738_v22 = vld [vmem:[#allocation10_spill] sm:$0xff] }
 0x609   :  { %6076 = vst.sshfl [vmem:[%s8623_s4 + $0x24] sm:$0x1 pattern:$0x73625140] %v3528_v26  ;;  %4133 = vmatprep.mubr.bf16.mxu0 %v8687_v59  ;;  %v3558_v36 = vrot.slane %v3530_v31, %v7283_v12  ;;  %v3560_v32 = vcombine.high %v3544_v54, %v3544_v54  ;;  %v3561_v2 = vcombine.high %v3551_v46, %v3551_v46  ;;  %3573 = vst [vmem:[%s8623_s4 + $0x14] sm:$0x1] %v3559_v35 }
 0x60a   :  { %6077 = vst.sshfl [vmem:[%s8623_s4 + $0x2c] sm:$0x1 pattern:$0x73625140] %v3530_v31  ;;  %4174 = vmatprep.mubr.bf16.mxu1 %v8687_v59  ;;  %4104 = vmatpush1.bf16.msra.mxu0 %v7915_v58  ;;  %v3927_v15 = vsel %vm403_vm0, %v3926_v8, %v3925_v9  ;;  %v8750_v26 = vld [vmem:[#allocation22_spill] sm:$0xff] }
 0x60b   :  { %v6654_v41 = vld [vmem:[%s8619_s0 + $0x10] ss:$0 sps:$4 sm:$0x44]   ;;  %4145 = vmatpush1.bf16.msra.mxu1 %v8738_v22  ;;  %v3562_v33 = vcombine.high %v3558_v36, %v3558_v36  ;;  %3574 = vst [vmem:[%s8623_s4 + $0x1c] sm:$0x1] %v3561_v2  ;;  %4105 = vmatprep.subr.bf16.mxu0 %v8739_v0  ;;  %v3929_v50 = vsel %vm406_vm1, %v3928_v38, %v3927_v15 }
 0x60c   :  { %3577 = vst [vmem:[%s8623_s4 + $0x34] sm:$0x1] %v3560_v32  ;;  %4146 = vmatprep.subr.bf16.mxu1 %v8740_v37  ;;  %v3921_v58 = vunpack.c.l.b16 %v6654_v41  ;;  %v3931_v16 = vsel %vm409_vm2, %v3930_v44, %v3929_v50  ;;  %v8208_v27 = vld [vmem:[#allocation6 + $0x44] ss:$16 sps:$4 sm:$0xff]   ;;  %v8222_v54 = vld [vmem:[#allocation6 + $0x6c] ss:$16 sps:$4 sm:$0xff]  }
 0x60d   :  { %3578 = vst [vmem:[%s8623_s4 + $0x3c] sm:$0x1] %v3562_v33  ;;  %v8220_v31 = vld [vmem:[#allocation6 + $0x64] ss:$16 sps:$4 sm:$0xff]   ;;  %v8224_v46 = vld [vmem:[#allocation6 + $0x60] ss:$16 sps:$4 sm:$0xff]  }
 0x60e   :  { %4106 = vmatpush1.bf16.msra.mxu0 %v8741_v61  ;;  %v3932_v1 = vrot.slane %v3921_v58, 1  ;;  %v8226_v35 = vld [vmem:[#allocation6 + $0x68] ss:$16 sps:$4 sm:$0xff]   ;;  %v8232_v9 = vld [vmem:[#allocation6 + $0x84] ss:$16 sps:$4 sm:$0xff]  }
 0x60f   :  { %4147 = vmatpush1.bf16.msra.mxu1 %v8742_v49  ;;  %4107 = vmatprep.subr.bf16.mxu0 %v8743_v63  ;;  %v8234_v8 = vld [vmem:[#allocation6 + $0x8c] ss:$16 sps:$4 sm:$0xff]   ;;  %v8236_v36 = vld [vmem:[#allocation6 + $0x80] ss:$16 sps:$4 sm:$0xff]   ;;  %v8238_v32 = vld [vmem:[#allocation6 + $0x88] ss:$16 sps:$4 sm:$0xff]  }
 0x610   :  { %4148 = vmatprep.subr.bf16.mxu1 %v8744_v43  ;;  %v3933_v55 = vsel %vm412_vm3, %v3932_v1, %v3931_v16  ;;  %v8244_v2 = vld [vmem:[#allocation6 + $0xa0] ss:$16 sps:$4 sm:$0xff]   ;;  %v8246_v41 = vld [vmem:[#allocation6 + $0xa4] ss:$16 sps:$4 sm:$0xff]   ;;  %v8248_v22 = vld [vmem:[#allocation6 + $0xa8] ss:$16 sps:$4 sm:$0xff]  }
 0x611   :  { %v3934_v52 = vsel %vm415_vm4, %v3922_v20, %v3933_v55  ;;  %v8252_v33 = vld [vmem:[#allocation6 + $0xc4] ss:$16 sps:$4 sm:$0xff]   ;;  %v8255_v0 = vld [vmem:[#allocation6 + $0xcc] ss:$16 sps:$4 sm:$0xff]   ;;  %v8259_v37 = vld [vmem:[#allocation6 + $0xc0] ss:$16 sps:$4 sm:$0xff]  }
 0x612   :  { %4108 = vmatpush1.bf16.msra.mxu0 %v8745_v53  ;;  %v8263_v38 = vld [vmem:[#allocation6 + $0xc8] ss:$16 sps:$4 sm:$0xff]   ;;  %v8265_v15 = vld [vmem:[#allocation6 + $0xe4] ss:$16 sps:$4 sm:$0xff]   ;;  %v8268_v58 = vld [vmem:[#allocation6 + $0xec] ss:$16 sps:$4 sm:$0xff]  }
 0x613   :  { %4149 = vmatpush1.bf16.msra.mxu1 %v8746_v47  ;;  %4109 = vmatprep.subr.bf16.mxu0 %v7981_v45  ;;  %v3937_v45 = vrot.slane %v3924_v23, 6  ;;  %v8271_v61 = vld [vmem:[#allocation6 + $0xe0] ss:$16 sps:$4 sm:$0xff]   ;;  %v8275_v49 = vld [vmem:[#allocation6 + $0xe8] ss:$16 sps:$4 sm:$0xff]  }
 0x614   :  { %4150 = vmatprep.subr.bf16.mxu1 %v8747_v5  ;;  %v8277_v44 = vld [vmem:[#allocation4 + $0x4] ss:$16 sps:$4 sm:$0xff]   ;;  %v8280_v63 = vld [vmem:[#allocation4 + $0xc] ss:$16 sps:$4 sm:$0xff]  }
 0x616   :  { %4110 = vmatpush1.bf16.msra.mxu0 %v7991_v39  ;;  %v3936_v39 = vsel %vm418_vm5, %v3935_v11, %v3934_v52 }
 0x617   :  { %4151 = vmatpush1.bf16.msra.mxu1 %v7995_v19  ;;  %4111 = vmatprep.subr.bf16.mxu0 %v8748_v10  ;;  %v3938_v19 = vsel %vm421_vm6, %v3937_v45, %v3936_v39 }
 0x618   :  { %4152 = vmatprep.subr.bf16.mxu1 %v8749_v24 }
 0x61a   :  { %4112 = vmatpush1.bf16.msra.mxu0 %v8010_v4  ;;  %v3939_v4 = vpack.c.b16 %v3938_v19, %v3938_v19 }
 0x61b   :  { %4153 = vmatpush1.bf16.msra.mxu1 %v8012_v18  ;;  %4113 = vmatprep.subr.bf16.mxu0 %v8016_v57  ;;  %v8184_v18 = vld [vmem:[#allocation6 + $0x4] ss:$16 sps:$4 sm:$0xff]   ;;  %v8186_v57 = vld [vmem:[#allocation6 + $0xc] ss:$16 sps:$4 sm:$0xff]  }
 0x61c   :  { %4154 = vmatprep.subr.bf16.mxu1 %v8750_v26 }
 0x61e   :  { %4114 = vmatpush1.bf16.msra.mxu0 %v8023_v48  ;;  %v8188_v48 = vld [vmem:[#allocation6] ss:$16 sps:$4 sm:$0xff]  }
 0x61f   :  { %4155 = vmatpush1.bf16.msra.mxu1 %v8025_v6  ;;  %4115 = vmatprep.subr.bf16.mxu0 %v8029_v56  ;;  %v8190_v56 = vld [vmem:[#allocation6 + $0x8] ss:$16 sps:$4 sm:$0xff]   ;;  %v8198_v6 = vld [vmem:[#allocation6 + $0x2c] ss:$16 sps:$4 sm:$0xff]  }
 0x620   :  { %4156 = vmatprep.subr.bf16.mxu1 %v8031_v42  ;;  %v8196_v42 = vld [vmem:[#allocation6 + $0x24] ss:$16 sps:$4 sm:$0xff]  }
 0x622   :  { %4116 = vmatpush1.bf16.msra.mxu0 %v8036_v62  ;;  %v8200_v62 = vld [vmem:[#allocation6 + $0x20] ss:$16 sps:$4 sm:$0xff]  }
 0x623   :  { %4157 = vmatpush1.bf16.msra.mxu1 %v8038_v51  ;;  %4510 = vmatprep.subr.bf16.mxu0 %v8184_v18  ;;  %v8202_v51 = vld [vmem:[#allocation6 + $0x28] ss:$16 sps:$4 sm:$0xff]  }
 0x624   :  { %4551 = vmatprep.subr.bf16.mxu1 %v8186_v57 }
 0x625   :  { %4134 = vmatmul.mubr.bf16.vlgmr.msra.gmra.mrb[44].mxu0 %v3939_v4 }
 0x626   :  { %4175 = vmatmul.mubr.bf16.vlgmr.msra.gmra.mrb[44].mxu1 %v3939_v4  ;;  %4542 = vmatprep.mubr.bf16.mxu0 %v8687_v59 }
 0x627   :  { %4583 = vmatprep.mubr.bf16.mxu1 %v8687_v59  ;;  %4511 = vmatpush1.bf16.msra.mxu0 %v8188_v48 }
 0x628   :  { %4552 = vmatpush1.bf16.msra.mxu1 %v8190_v56  ;;  %4512 = vmatprep.subr.bf16.mxu0 %v8196_v42 }
 0x629   :  { %4553 = vmatprep.subr.bf16.mxu1 %v8198_v6 }
 0x62b   :  { %4513 = vmatpush1.bf16.msra.mxu0 %v8200_v62 }
 0x62c   :  { %4554 = vmatpush1.bf16.msra.mxu1 %v8202_v51  ;;  %4514 = vmatprep.subr.bf16.mxu0 %v8208_v27 }
 0x62d   :  { %4555 = vmatprep.subr.bf16.mxu1 %v8210_v28 }
 0x62f   :  { %4515 = vmatpush1.bf16.msra.mxu0 %v8212_v29 }
 0x630   :  { %4556 = vmatpush1.bf16.msra.mxu1 %v8214_v30  ;;  %4516 = vmatprep.subr.bf16.mxu0 %v8220_v31 }
 0x631   :  { %4557 = vmatprep.subr.bf16.mxu1 %v8222_v54 }
 0x633   :  { %4517 = vmatpush1.bf16.msra.mxu0 %v8224_v46 }
 0x634   :  { %4558 = vmatpush1.bf16.msra.mxu1 %v8226_v35  ;;  %4518 = vmatprep.subr.bf16.mxu0 %v8232_v9 }
 0x635   :  { %4559 = vmatprep.subr.bf16.mxu1 %v8234_v8 }
 0x637   :  { %4519 = vmatpush1.bf16.msra.mxu0 %v8236_v36 }
 0x638   :  { %4560 = vmatpush1.bf16.msra.mxu1 %v8238_v32  ;;  %4520 = vmatprep.subr.bf16.mxu0 %v8246_v41 }
 0x639   :  { %4561 = vmatprep.subr.bf16.mxu1 %v8250_v3 }
 0x63b   :  { %4521 = vmatpush1.bf16.msra.mxu0 %v8244_v2 }
 0x63c   :  { %4562 = vmatpush1.bf16.msra.mxu1 %v8248_v22  ;;  %4522 = vmatprep.subr.bf16.mxu0 %v8252_v33 }
 0x63d   :  { %4563 = vmatprep.subr.bf16.mxu1 %v8255_v0 }
 0x63f   :  { %4523 = vmatpush1.bf16.msra.mxu0 %v8259_v37 }
 0x640   :  { %4564 = vmatpush1.bf16.msra.mxu1 %v8263_v38  ;;  %4524 = vmatprep.subr.bf16.mxu0 %v8265_v15 }
 0x641   :  { %4565 = vmatprep.subr.bf16.mxu1 %v8268_v58 }
 0x643   :  { %4525 = vmatpush1.bf16.msra.mxu0 %v8271_v61 }
 0x644   :  { %4566 = vmatpush1.bf16.msra.mxu1 %v8275_v49  ;;  %4800 = vmatprep.subr.bf16.mxu0 %v8277_v44 }
 0x645   :  { %4841 = vmatprep.subr.bf16.mxu1 %v8280_v63 }
 0x6d8   :  { %v3845_v43 = vpop.f32.mrb[40].mxu0 }
 0x6d9   :  { %v3886_v40 = vpop.f32.mrb[40].mxu1  ;;  %v3847_v50 = vpop.f32.mrb[41].mxu0 }
 0x6da   :  { %v3888_v7 = vpop.f32.mrb[41].mxu1  ;;  %v3849_v1 = vpop.f32.mrb[42].mxu0 }
 0x6db   :  { %v3890_v53 = vpop.f32.mrb[42].mxu1  ;;  %v3850_v47 = vpop.f32.mrb[43].mxu0 }
 0x6dc   :  { %v3891_v13 = vpop.f32.mrb[43].mxu1 }
 0x6f8   :  { %v4135_v16 = vpop.f32.mrb[44].mxu0 }
 0x6f9   :  { %v4176_v5 = vpop.f32.mrb[44].mxu1  ;;  %v4136_v21 = vadd.f32 %v4135_v16, %v3845_v43  ;;  %v4137_v55 = vpop.f32.mrb[45].mxu0 }
 0x6fa   :  { %v4177_v20 = vadd.f32 %v4176_v5, %v3886_v40  ;;  %v4178_v23 = vpop.f32.mrb[45].mxu1  ;;  %v4138_v10 = vadd.f32 %v4137_v55, %v3847_v50  ;;  %v4139_v11 = vpop.f32.mrb[46].mxu0 }
 0x6fb   :  { %v4179_v24 = vadd.f32 %v4178_v23, %v3888_v7  ;;  %v4180_v52 = vpop.f32.mrb[46].mxu1  ;;  %v4183_v45 = vadd.f32 %v4136_v21, %v7268_v14  ;;  %v4140_v26 = vpop.f32.mrb[47].mxu0 }
 0x6fc   :  { %v4181_v39 = vpop.f32.mrb[47].mxu1  ;;  %v4184_v19 = vadd.f32 %v4138_v10, %v7270_v17  ;;  %v4185_v53 = vadd.f32 %v4177_v20, %v7274_v34  ;;  %v6755_v26 = vld [vmem:[%s8619_s0 + $0x4] ss:$0 sps:$4 sm:$0x88]  }
 0x6fd   :  { %v6150_v4 = vmul.f32 -1.442695, %v4183_v45  ;;  %v4186_v43 = vadd.f32 %v4179_v24, %v7276_v60  ;;  %v6754_v45 = vld [vmem:[%s8619_s0] ss:$0 sps:$4 sm:$0x88]  }
 0x6fe   :  { %v6151_v1 = vmul.f32 -1.442695, %v4184_v19  ;;  %v6152_v40 = vmul.f32 -1.442695, %v4185_v53  ;;  %v8300_v39 = vld [vmem:[#allocation4] ss:$16 sps:$4 sm:$0xff]  }
 0x6ff   :  { %6850 = vpow2.f32 %v6150_v4  ;;  %v8302_v4 = vld [vmem:[#allocation4 + $0x8] ss:$16 sps:$4 sm:$0xff]  }
 0x700   :  { %6852 = vpow2.f32 %v6151_v1 }
 0x701   :  { %6854 = vtanh.f32 %v4186_v43 }
 0x702   :  { %6856 = vpow2.f32 %v6152_v40  ;;  %v8308_v40 = vld [vmem:[#allocation4 + $0x24] ss:$16 sps:$4 sm:$0xff]  }
 0x709   :  { %v6851_v47 = vpop.eup %6850 }
 0x70a   :  { %v4196_v50 = vadd.f32 1.0, %v6851_v47  ;;  %v6853_v7 = vpop.eup %6852  ;;  %v8310_v47 = vld [vmem:[#allocation4 + $0x2c] ss:$16 sps:$4 sm:$0xff]  }
 0x70b   :  { %v4197_v13 = vadd.f32 1.0, %v6853_v7  ;;  %v6855_v16 = vpop.eup %6854  ;;  %v4617_v7 = vunpack.c.l.b16 %v6755_v26  ;;  %v8335_v26 = vld [vmem:[#allocation4 + $0x44] ss:$16 sps:$4 sm:$0xff]  }
 0x70c   :  { %6858 = vrcp.f32 %v4196_v50  ;;  %v6857_v5 = vpop.eup %6856  ;;  %v4616_v50 = vunpack.c.l.b16 %v6754_v45  ;;  %8751 = vst [vmem:[#allocation10_spill] sm:$0xff] %v8335_v26 }
 0x70d   :  { %6860 = vrcp.f32 %v4197_v13  ;;  %v4198_v10 = vadd.f32 1.0, %v6857_v5 }
 0x70f   :  { %6862 = vrcp.f32 %v4198_v10 }
 0x716   :  { %v6859_v21 = vpop.eup %6858 }
 0x717   :  { %v4207_v55 = vmul.f32 %v6859_v21, %v6855_v16  ;;  %v6861_v23 = vpop.eup %6860  ;;  %v8317_v21 = vld [vmem:[#allocation4 + $0x20] ss:$16 sps:$4 sm:$0xff]  }
 0x718   :  { %v4206_v11 = vmul.f32 %v6861_v23, %v8086_v25  ;;  %v6756_v25 = vld [vmem:[%s8619_s0 + $0x8] ss:$0 sps:$4 sm:$0x88]   ;;  %v6757_v23 = vld [vmem:[%s8619_s0 + $0xc] ss:$0 sps:$4 sm:$0x88]  }
 0x719   :  { %v6863_v24 = vpop.eup %6862  ;;  %v4618_v10 = vunpack.c.l.b16 %v6756_v25  ;;  %v4624_v25 = vrot.slane %v4616_v50, 6  ;;  %v8354_v50 = vld [vmem:[#allocation4 + $0x40] ss:$16 sps:$4 sm:$0xff]  }
 0x71a   :  { %v8291_v20 = vadd.f32 %v4207_v55, %v4206_v11  ;;  %v8321_v55 = vld [vmem:[#allocation4 + $0x28] ss:$16 sps:$4 sm:$0xff]   ;;  %8753 = vst [vmem:[#allocation12_spill] sm:$0xff] %v8354_v50 }
 0x71c   :  { %6864 = vtanh.f32 %v8291_v20 }
 0x726   :  { %v6865_v52 = vpop.eup %6864 }
 0x727   :  { %v4210_v19 = vmul.f32 %v6865_v52, %v6863_v24 }
 0x729   :  { %v4211_v1 = vpack.c.bf16 %v4210_v19, %v4210_v19  ;;  %v4213_v53 = vcombine.high %v4210_v19, %v4210_v19  ;;  %v4220_v43 = vrot.slane %v4210_v19, %v7283_v12  ;;  %v8337_v19 = vld [vmem:[#allocation4 + $0x4c] ss:$16 sps:$4 sm:$0xff]  }
 0x72a   :  { %8752 = vst [vmem:[#allocation11_spill] sm:$0xff] %v8337_v19 }
 0x72b   :  { %v4227_v13 = vrot.slane %v4213_v53, %v7283_v12  ;;  %v4228_v16 = vcombine.high %v4220_v43, %v4220_v43  ;;  %v4236_v5 = vrot.slane %v4220_v43, %v7283_v12  ;;  %6153 = vst.sshfl [vmem:[%s8623_s4 + $0x5] sm:$0x1 pattern:$0x73625140] %v4220_v43  ;;  %4543 = vmatmul.mubr.bf16.vlgmr.msra.gmra.mrb[48].mxu0 %v4211_v1 }
 0x72c   :  { %4584 = vmatmul.mubr.bf16.vlgmr.msra.gmra.mrb[48].mxu1 %v4211_v1  ;;  %4801 = vmatpush1.bf16.msra.mxu0 %v8300_v39  ;;  %v4625_v1 = vrot.slane %v4617_v7, 5  ;;  %v8356_v7 = vld [vmem:[#allocation4 + $0x48] ss:$16 sps:$4 sm:$0xff]  }
 0x72d   :  { %4842 = vmatpush1.bf16.msra.mxu1 %v8302_v4  ;;  %v4229_v11 = vcombine.high %v4227_v13, %v4227_v13  ;;  %v4243_v24 = vrot.slane %v4227_v13, %v7283_v12  ;;  %v4250_v52 = vrot.slane %v4228_v16, %v7283_v12  ;;  %v4258_v45 = vcombine.high %v4236_v5, %v4236_v5 }
 0x72e   :  { %6154 = vst.sshfl [vmem:[%s8623_s4 + $0xd] sm:$0x1 pattern:$0x73625140] %v4228_v16  ;;  %4802 = vmatprep.subr.bf16.mxu0 %v8308_v40  ;;  %4843 = vmatprep.subr.bf16.mxu1 %v8310_v47  ;;  %8754 = vst [vmem:[#allocation13_spill] sm:$0xff] %v8356_v7  ;;  %v4619_v5 = vunpack.c.l.b16 %v6757_v23 }
 0x72f   :  { %6155 = vst.sshfl [vmem:[%s8623_s4 + $0x25] sm:$0x1 pattern:$0x73625140] %v4227_v13  ;;  %4832 = vmatprep.mubr.bf16.mxu0 %v8687_v59  ;;  %v4257_v53 = vrot.slane %v4229_v11, %v7283_v12  ;;  %v4259_v43 = vcombine.high %v4243_v24, %v4243_v24  ;;  %v4260_v16 = vcombine.high %v4250_v52, %v4250_v52  ;;  %4272 = vst [vmem:[%s8623_s4 + $0x15] sm:$0x1] %v4258_v45 }
 0x730   :  { %6156 = vst.sshfl [vmem:[%s8623_s4 + $0x2d] sm:$0x1 pattern:$0x73625140] %v4229_v11  ;;  %4873 = vmatprep.mubr.bf16.mxu1 %v8687_v59  ;;  %4803 = vmatpush1.bf16.msra.mxu0 %v8317_v21  ;;  %v8366_v11 = vld [vmem:[#allocation4 + $0x64] ss:$16 sps:$4 sm:$0xff]  }
 0x731   :  { %v6758_v13 = vld [vmem:[%s8619_s0 + $0x10] ss:$0 sps:$4 sm:$0x88]   ;;  %4844 = vmatpush1.bf16.msra.mxu1 %v8321_v55  ;;  %v4261_v24 = vcombine.high %v4257_v53, %v4257_v53  ;;  %4273 = vst [vmem:[%s8623_s4 + $0x1d] sm:$0x1] %v4260_v16  ;;  %4804 = vmatprep.subr.bf16.mxu0 %v8335_v26  ;;  %8755 = vst [vmem:[#allocation14_spill] sm:$0xff] %v8366_v11  ;;  %v4626_v53 = vsel %vm403_vm0, %v4625_v1, %v4624_v25 }
 0x732   :  { %4276 = vst [vmem:[%s8623_s4 + $0x35] sm:$0x1] %v4259_v43  ;;  %4845 = vmatprep.subr.bf16.mxu1 %v8337_v19  ;;  %v8368_v52 = vld [vmem:[#allocation4 + $0x6c] ss:$16 sps:$4 sm:$0xff]   ;;  %v4627_v45 = vrot.slane %v4618_v10, 4  ;;  %v4620_v43 = vunpack.c.l.b16 %v6758_v13  ;;  %v4629_v10 = vrot.slane %v4619_v5, 3 }
 0x733   :  { %8756 = vst [vmem:[#allocation15_spill] sm:$0xff] %v8368_v52  ;;  %v6759_v23 = vld [vmem:[%s8619_s0 + $0x14] ss:$0 sps:$4 sm:$0x88]   ;;  %4277 = vst [vmem:[%s8623_s4 + $0x3d] sm:$0x1] %v4261_v24 }
 0x734   :  { %4805 = vmatpush1.bf16.msra.mxu0 %v8354_v50  ;;  %v8379_v16 = vld [vmem:[#allocation4 + $0x60] ss:$16 sps:$4 sm:$0xff]   ;;  %v8381_v19 = vld [vmem:[#allocation4 + $0x68] ss:$16 sps:$4 sm:$0xff]   ;;  %v8385_v26 = vld [vmem:[#allocation4 + $0x84] ss:$16 sps:$4 sm:$0xff]   ;;  %v4628_v1 = vsel %vm406_vm1, %v4627_v45, %v4626_v53  ;;  %v4621_v13 = vunpack.c.l.b16 %v6759_v23 }
 0x735   :  { %4846 = vmatpush1.bf16.msra.mxu1 %v8356_v7  ;;  %8757 = vst [vmem:[#allocation16_spill] sm:$0xff] %v8381_v19  ;;  %4806 = vmatprep.subr.bf16.mxu0 %v8366_v11  ;;  %8758 = vst [vmem:[#allocation17_spill] sm:$0xff] %v8385_v26  ;;  %v8387_v25 = vld [vmem:[#allocation4 + $0x8c] ss:$16 sps:$4 sm:$0xff]   ;;  %v8390_v24 = vld [vmem:[#allocation4 + $0x80] ss:$16 sps:$4 sm:$0xff]   ;;  %v4630_v11 = vsel %vm409_vm2, %v4629_v10, %v4628_v1 }
 0x736   :  { %4847 = vmatprep.subr.bf16.mxu1 %v8368_v52  ;;  %8759 = vst [vmem:[#allocation18_spill] sm:$0xff] %v8387_v25  ;;  %v8392_v50 = vld [vmem:[#allocation4 + $0x88] ss:$16 sps:$4 sm:$0xff]   ;;  %v4631_v7 = vrot.slane %v4620_v43, 2  ;;  %v8396_v5 = vld [vmem:[#allocation4 + $0xa4] ss:$16 sps:$4 sm:$0xff]  }
 0x737   :  { %8760 = vst [vmem:[#allocation19_spill] sm:$0xff] %v8392_v50  ;;  %8761 = vst [vmem:[#allocation20_spill] sm:$0xff] %v8396_v5  ;;  %v6761_v52 = vld [vmem:[%s8619_s0 + $0x1c] ss:$0 sps:$4 sm:$0x88]   ;;  %v4633_v53 = vrot.slane %v4621_v13, 1 }
 0x738   :  { %4807 = vmatpush1.bf16.msra.mxu0 %v8379_v16  ;;  %v8404_v45 = vld [vmem:[#allocation4 + $0xac] ss:$16 sps:$4 sm:$0xff]   ;;  %v6760_v23 = vld [vmem:[%s8619_s0 + $0x18] ss:$0 sps:$4 sm:$0x88]   ;;  %v4632_v43 = vsel %vm412_vm3, %v4631_v7, %v4630_v11  ;;  %v4623_v1 = vunpack.c.l.b16 %v6761_v52 }
 0x739   :  { %4848 = vmatpush1.bf16.msra.mxu1 %v8381_v19  ;;  %4808 = vmatprep.subr.bf16.mxu0 %v8385_v26  ;;  %8762 = vst [vmem:[#allocation21_spill] sm:$0xff] %v8404_v45  ;;  %v8412_v19 = vld [vmem:[#allocation4 + $0xa0] ss:$16 sps:$4 sm:$0xff]   ;;  %v8414_v10 = vld [vmem:[#allocation4 + $0xa8] ss:$16 sps:$4 sm:$0xff]   ;;  %v4622_v13 = vunpack.c.l.b16 %v6760_v23  ;;  %v4634_v7 = vsel %vm415_vm4, %v4633_v53, %v4632_v43 }
 0x73a   :  { %4849 = vmatprep.subr.bf16.mxu1 %v8387_v25  ;;  %v8418_v25 = vld [vmem:[#allocation4 + $0xc4] ss:$16 sps:$4 sm:$0xff]   ;;  %v8420_v26 = vld [vmem:[#allocation4 + $0xcc] ss:$16 sps:$4 sm:$0xff]   ;;  %v8425_v11 = vld [vmem:[#allocation4 + $0xc0] ss:$16 sps:$4 sm:$0xff]  }
 0x73b   :  { %8763 = vst [vmem:[#allocation22_spill] sm:$0xff] %v8420_v26  ;;  %v4636_v52 = vrot.slane %v4623_v1, 7  ;;  %v4635_v23 = vsel %vm418_vm5, %v4622_v13, %v4634_v7  ;;  %v8438_v53 = vld [vmem:[#allocation4 + $0xe0] ss:$16 sps:$4 sm:$0xff]   ;;  %v8440_v43 = vld [vmem:[#allocation4 + $0xe8] ss:$16 sps:$4 sm:$0xff]  }
 0x73c   :  { %4809 = vmatpush1.bf16.msra.mxu0 %v8390_v24 }
 0x73d   :  { %4850 = vmatpush1.bf16.msra.mxu1 %v8392_v50  ;;  %4810 = vmatprep.subr.bf16.mxu0 %v8396_v5  ;;  %v8427_v50 = vld [vmem:[#allocation4 + $0xc8] ss:$16 sps:$4 sm:$0xff]   ;;  %v8433_v5 = vld [vmem:[#allocation4 + $0xec] ss:$16 sps:$4 sm:$0xff]   ;;  %v4637_v1 = vsel %vm421_vm6, %v4636_v52, %v4635_v23 }
 0x73e   :  { %4851 = vmatprep.subr.bf16.mxu1 %v8404_v45  ;;  %v8431_v45 = vld [vmem:[#allocation4 + $0xe4] ss:$16 sps:$4 sm:$0xff]  }
 0x740   :  { %4811 = vmatpush1.bf16.msra.mxu0 %v8412_v19 }
 0x741   :  { %4852 = vmatpush1.bf16.msra.mxu1 %v8414_v10  ;;  %4812 = vmatprep.subr.bf16.mxu0 %v8418_v25 }
 0x742   :  { %4853 = vmatprep.subr.bf16.mxu1 %v8420_v26  ;;  %v4638_v26 = vpack.c.b16 %v4637_v1, %v4637_v1 }
 0x744   :  { %4813 = vmatpush1.bf16.msra.mxu0 %v8425_v11 }
 0x745   :  { %4854 = vmatpush1.bf16.msra.mxu1 %v8427_v50  ;;  %4814 = vmatprep.subr.bf16.mxu0 %v8431_v45 }
 0x746   :  { %4855 = vmatprep.subr.bf16.mxu1 %v8433_v5 }
 0x748   :  { %4815 = vmatpush1.bf16.msra.mxu0 %v8438_v53 }
 0x749   :  { %4856 = vmatpush1.bf16.msra.mxu1 %v8440_v43  ;;  %5209 = vmatprep.subr.bf16.mxu0 %v8184_v18 }
 0x74a   :  { %5250 = vmatprep.subr.bf16.mxu1 %v8186_v57 }
 0x74b   :  { %4833 = vmatmul.mubr.bf16.vlgmr.msra.gmra.mrb[52].mxu0 %v4638_v26 }
 0x74c   :  { %4874 = vmatmul.mubr.bf16.vlgmr.msra.gmra.mrb[52].mxu1 %v4638_v26  ;;  %5210 = vmatpush1.bf16.msra.mxu0 %v8188_v48 }
 0x74d   :  { %5251 = vmatpush1.bf16.msra.mxu1 %v8190_v56  ;;  %5211 = vmatprep.subr.bf16.mxu0 %v8196_v42 }
 0x74e   :  { %5252 = vmatprep.subr.bf16.mxu1 %v8198_v6  ;;  %5241 = vmatprep.mubr.bf16.mxu0 %v8687_v59 }
 0x74f   :  { %5282 = vmatprep.mubr.bf16.mxu1 %v8687_v59 }
 0x750   :  { %5212 = vmatpush1.bf16.msra.mxu0 %v8200_v62 }
 0x751   :  { %5253 = vmatpush1.bf16.msra.mxu1 %v8202_v51  ;;  %5213 = vmatprep.subr.bf16.mxu0 %v8208_v27 }
 0x752   :  { %5254 = vmatprep.subr.bf16.mxu1 %v8210_v28 }
 0x754   :  { %5214 = vmatpush1.bf16.msra.mxu0 %v8212_v29 }
 0x755   :  { %5255 = vmatpush1.bf16.msra.mxu1 %v8214_v30  ;;  %5215 = vmatprep.subr.bf16.mxu0 %v8220_v31 }
 0x756   :  { %5256 = vmatprep.subr.bf16.mxu1 %v8222_v54 }
 0x758   :  { %5216 = vmatpush1.bf16.msra.mxu0 %v8224_v46 }
 0x759   :  { %5257 = vmatpush1.bf16.msra.mxu1 %v8226_v35  ;;  %5217 = vmatprep.subr.bf16.mxu0 %v8232_v9 }
 0x75a   :  { %5258 = vmatprep.subr.bf16.mxu1 %v8234_v8 }
 0x75c   :  { %5218 = vmatpush1.bf16.msra.mxu0 %v8236_v36 }
 0x75d   :  { %5259 = vmatpush1.bf16.msra.mxu1 %v8238_v32  ;;  %5219 = vmatprep.subr.bf16.mxu0 %v8246_v41 }
 0x75e   :  { %5260 = vmatprep.subr.bf16.mxu1 %v8250_v3 }
 0x760   :  { %5220 = vmatpush1.bf16.msra.mxu0 %v8244_v2 }
 0x761   :  { %5261 = vmatpush1.bf16.msra.mxu1 %v8248_v22  ;;  %5221 = vmatprep.subr.bf16.mxu0 %v8252_v33 }
 0x762   :  { %5262 = vmatprep.subr.bf16.mxu1 %v8255_v0 }
 0x764   :  { %5222 = vmatpush1.bf16.msra.mxu0 %v8259_v37 }
 0x765   :  { %5263 = vmatpush1.bf16.msra.mxu1 %v8263_v38  ;;  %5223 = vmatprep.subr.bf16.mxu0 %v8265_v15 }
 0x766   :  { %5264 = vmatprep.subr.bf16.mxu1 %v8268_v58 }
 0x768   :  { %5224 = vmatpush1.bf16.msra.mxu0 %v8271_v61 }
 0x769   :  { %5265 = vmatpush1.bf16.msra.mxu1 %v8275_v49  ;;  %5499 = vmatprep.subr.bf16.mxu0 %v8277_v44 }
 0x76a   :  { %5540 = vmatprep.subr.bf16.mxu1 %v8280_v63 }
 0x7fe   :  { %v4544_v18 = vpop.f32.mrb[48].mxu0 }
 0x7ff   :  { %v4585_v57 = vpop.f32.mrb[48].mxu1  ;;  %v4546_v48 = vpop.f32.mrb[49].mxu0 }
 0x800   :  { %v4587_v56 = vpop.f32.mrb[49].mxu1  ;;  %v4548_v42 = vpop.f32.mrb[50].mxu0 }
 0x801   :  { %v4589_v6 = vpop.f32.mrb[50].mxu1  ;;  %v4549_v62 = vpop.f32.mrb[51].mxu0 }
 0x802   :  { %v4590_v51 = vpop.f32.mrb[51].mxu1 }
 0x81e   :  { %v4834_v27 = vpop.f32.mrb[52].mxu0 }
 0x81f   :  { %v4875_v28 = vpop.f32.mrb[52].mxu1  ;;  %v4835_v29 = vadd.f32 %v4834_v27, %v4544_v18  ;;  %v4836_v31 = vpop.f32.mrb[53].mxu0 }
 0x820   :  { %v4876_v30 = vadd.f32 %v4875_v28, %v4585_v57  ;;  %v4877_v54 = vpop.f32.mrb[53].mxu1  ;;  %v4837_v46 = vadd.f32 %v4836_v31, %v4546_v48  ;;  %v4838_v9 = vpop.f32.mrb[54].mxu0  ;;  %v6762_v57 = vld [vmem:[%s8619_s0] ss:$0 sps:$4 sm:$0x88]  }
 0x821   :  { %v4878_v35 = vadd.f32 %v4877_v54, %v4587_v56  ;;  %v4879_v8 = vpop.f32.mrb[54].mxu1  ;;  %v4882_v36 = vadd.f32 %v4835_v29, %v7268_v14  ;;  %v4839_v32 = vpop.f32.mrb[55].mxu0  ;;  %v6763_v48 = vld [vmem:[%s8619_s0 + $0x4] ss:$0 sps:$4 sm:$0x88]   ;;  %v5315_v51 = vunpack.c.l.b16 %v6762_v57 }
 0x822   :  { %v4880_v2 = vpop.f32.mrb[55].mxu1  ;;  %v4883_v41 = vadd.f32 %v4837_v46, %v7270_v17  ;;  %v4884_v33 = vadd.f32 %v4876_v30, %v7274_v34  ;;  %v5316_v27 = vunpack.c.l.b16 %v6763_v48  ;;  %v6765_v31 = vld [vmem:[%s8619_s0 + $0xc] ss:$0 sps:$4 sm:$0x88]  }
 0x823   :  { %v6229_v22 = vmul.f32 -1.442695, %v4882_v36  ;;  %v4885_v0 = vadd.f32 %v4878_v35, %v7276_v60  ;;  %v8773_v48 = vld [vmem:[#allocation19_spill] sm:$0xff] }
 0x824   :  { %v6230_v3 = vmul.f32 -1.442695, %v4883_v41  ;;  %v6231_v37 = vmul.f32 -1.442695, %v4884_v33 }
 0x825   :  { %6866 = vpow2.f32 %v6229_v22  ;;  %v8764_v22 = vld [vmem:[#allocation10_spill] sm:$0xff] }
 0x826   :  { %6868 = vpow2.f32 %v6230_v3 }
 0x827   :  { %6870 = vtanh.f32 %v4885_v0  ;;  %v8766_v0 = vld [vmem:[#allocation12_spill] sm:$0xff] }
 0x828   :  { %6872 = vpow2.f32 %v6231_v37  ;;  %v8767_v37 = vld [vmem:[#allocation13_spill] sm:$0xff] }
 0x82f   :  { %v6867_v38 = vpop.eup %6866 }
 0x830   :  { %v4895_v15 = vadd.f32 1.0, %v6867_v38  ;;  %v6869_v58 = vpop.eup %6868 }
 0x831   :  { %v4896_v61 = vadd.f32 1.0, %v6869_v58  ;;  %v6871_v49 = vpop.eup %6870  ;;  %v8769_v58 = vld [vmem:[#allocation15_spill] sm:$0xff] }
 0x832   :  { %6874 = vrcp.f32 %v4895_v15  ;;  %v6873_v44 = vpop.eup %6872  ;;  %v8768_v15 = vld [vmem:[#allocation14_spill] sm:$0xff] }
 0x833   :  { %6876 = vrcp.f32 %v4896_v61  ;;  %v4897_v7 = vadd.f32 1.0, %v6873_v44  ;;  %v6768_v61 = vld [vmem:[%s8619_s0 + $0x18] ss:$0 sps:$4 sm:$0x88]  }
 0x835   :  { %6878 = vrcp.f32 %v4897_v7  ;;  %v8771_v7 = vld [vmem:[#allocation17_spill] sm:$0xff] }
 0x83c   :  { %v6875_v63 = vpop.eup %6874 }
 0x83d   :  { %v4906_v26 = vmul.f32 %v6875_v63, %v6871_v49  ;;  %v6877_v13 = vpop.eup %6876 }
 0x83e   :  { %v4905_v52 = vmul.f32 %v6877_v13, %v8291_v20  ;;  %v6764_v20 = vld [vmem:[%s8619_s0 + $0x8] ss:$0 sps:$4 sm:$0x88]  }
 0x83f   :  { %v6879_v1 = vpop.eup %6878  ;;  %v5317_v54 = vunpack.c.l.b16 %v6764_v20  ;;  %v8775_v20 = vld [vmem:[#allocation21_spill] sm:$0xff] }
 0x840   :  { %v8488_v23 = vadd.f32 %v4906_v26, %v4905_v52  ;;  %v8770_v26 = vld [vmem:[#allocation16_spill] sm:$0xff]  ;;  %v8772_v52 = vld [vmem:[#allocation18_spill] sm:$0xff] }
 0x841   :  { %v5326_v3 = vrot.slane %v5317_v54, 5 }
 0x842   :  { %6880 = vtanh.f32 %v8488_v23 }
 0x84c   :  { %v6881_v18 = vpop.eup %6880 }
 0x84d   :  { %v4909_v56 = vmul.f32 %v6881_v18, %v6879_v1  ;;  %v5321_v1 = vunpack.c.l.b16 %v6768_v61 }
 0x84f   :  { %v4910_v42 = vpack.c.bf16 %v4909_v56, %v4909_v56  ;;  %v4912_v6 = vcombine.high %v4909_v56, %v4909_v56  ;;  %v4919_v62 = vrot.slane %v4909_v56, %v7283_v12  ;;  %v8774_v56 = vld [vmem:[#allocation20_spill] sm:$0xff] }
 0x851   :  { %v4926_v28 = vrot.slane %v4912_v6, %v7283_v12  ;;  %v4927_v29 = vcombine.high %v4919_v62, %v4919_v62  ;;  %v4935_v30 = vrot.slane %v4919_v62, %v7283_v12  ;;  %6232 = vst.sshfl [vmem:[%s8623_s4 + $0x6] sm:$0x1 pattern:$0x73625140] %v4919_v62  ;;  %5242 = vmatmul.mubr.bf16.vlgmr.msra.gmra.mrb[56].mxu0 %v4910_v42 }
 0x852   :  { %5283 = vmatmul.mubr.bf16.vlgmr.msra.gmra.mrb[56].mxu1 %v4910_v42  ;;  %5500 = vmatpush1.bf16.msra.mxu0 %v8300_v39  ;;  %v5323_v39 = vrot.slane %v5315_v51, 7  ;;  %v5334_v42 = vrot.slane %v5321_v1, 1 }
 0x853   :  { %5541 = vmatpush1.bf16.msra.mxu1 %v8302_v4  ;;  %v4928_v46 = vcombine.high %v4926_v28, %v4926_v28  ;;  %v4942_v35 = vrot.slane %v4926_v28, %v7283_v12  ;;  %v4949_v9 = vrot.slane %v4927_v29, %v7283_v12  ;;  %v4957_v8 = vcombine.high %v4935_v30, %v4935_v30 }
 0x854   :  { %6233 = vst.sshfl [vmem:[%s8623_s4 + $0xe] sm:$0x1 pattern:$0x73625140] %v4927_v29  ;;  %5501 = vmatprep.subr.bf16.mxu0 %v8308_v40  ;;  %5542 = vmatprep.subr.bf16.mxu1 %v8310_v47  ;;  %v5324_v4 = vrot.slane %v5316_v27, 6  ;;  %v5318_v47 = vunpack.c.l.b16 %v6765_v31 }
 0x855   :  { %6234 = vst.sshfl [vmem:[%s8623_s4 + $0x26] sm:$0x1 pattern:$0x73625140] %v4926_v28  ;;  %5531 = vmatprep.mubr.bf16.mxu0 %v8687_v59  ;;  %v4956_v36 = vrot.slane %v4928_v46, %v7283_v12  ;;  %v4958_v32 = vcombine.high %v4942_v35, %v4942_v35  ;;  %v4959_v2 = vcombine.high %v4949_v9, %v4949_v9  ;;  %4971 = vst [vmem:[%s8623_s4 + $0x16] sm:$0x1] %v4957_v8 }
 0x856   :  { %6235 = vst.sshfl [vmem:[%s8623_s4 + $0x2e] sm:$0x1 pattern:$0x73625140] %v4928_v46  ;;  %5572 = vmatprep.mubr.bf16.mxu1 %v8687_v59  ;;  %5502 = vmatpush1.bf16.msra.mxu0 %v8317_v21  ;;  %v8765_v59 = vld [vmem:[#allocation11_spill] sm:$0xff]  ;;  %v5328_v38 = vrot.slane %v5318_v47, 4 }
 0x857   :  { %v6766_v40 = vld [vmem:[%s8619_s0 + $0x10] ss:$0 sps:$4 sm:$0x88]   ;;  %5543 = vmatpush1.bf16.msra.mxu1 %v8321_v55  ;;  %v4960_v41 = vcombine.high %v4956_v36, %v4956_v36  ;;  %4972 = vst [vmem:[%s8623_s4 + $0x1e] sm:$0x1] %v4959_v2  ;;  %5503 = vmatprep.subr.bf16.mxu0 %v8764_v22  ;;  %v5325_v55 = vsel %vm403_vm0, %v5324_v4, %v5323_v39 }
 0x858   :  { %4975 = vst [vmem:[%s8623_s4 + $0x36] sm:$0x1] %v4958_v32  ;;  %5544 = vmatprep.subr.bf16.mxu1 %v8765_v59  ;;  %v6767_v21 = vld [vmem:[%s8619_s0 + $0x14] ss:$0 sps:$4 sm:$0x88]   ;;  %v5319_v33 = vunpack.c.l.b16 %v6766_v40  ;;  %v5327_v49 = vsel %vm406_vm1, %v5326_v3, %v5325_v55 }
 0x859   :  { %4976 = vst [vmem:[%s8623_s4 + $0x3e] sm:$0x1] %v4960_v41  ;;  %v5320_v44 = vunpack.c.l.b16 %v6767_v21  ;;  %v5329_v13 = vsel %vm409_vm2, %v5328_v38, %v5327_v49 }
 0x85a   :  { %5504 = vmatpush1.bf16.msra.mxu0 %v8766_v0  ;;  %v5330_v63 = vrot.slane %v5319_v33, 3 }
 0x85b   :  { %5545 = vmatpush1.bf16.msra.mxu1 %v8767_v37  ;;  %5505 = vmatprep.subr.bf16.mxu0 %v8768_v15  ;;  %v5332_v18 = vrot.slane %v5320_v44, 2 }
 0x85c   :  { %5546 = vmatprep.subr.bf16.mxu1 %v8769_v58  ;;  %v5331_v57 = vsel %vm412_vm3, %v5330_v63, %v5329_v13 }
 0x85d   :  { %v5333_v6 = vsel %vm415_vm4, %v5332_v18, %v5331_v57 }
 0x85e   :  { %5506 = vmatpush1.bf16.msra.mxu0 %v8379_v16  ;;  %v6769_v16 = vld [vmem:[%s8619_s0 + $0x1c] ss:$0 sps:$4 sm:$0x88]   ;;  %v5335_v51 = vsel %vm418_vm5, %v5334_v42, %v5333_v6 }
 0x85f   :  { %5547 = vmatpush1.bf16.msra.mxu1 %v8770_v26  ;;  %5507 = vmatprep.subr.bf16.mxu0 %v8771_v7  ;;  %v5322_v62 = vunpack.c.l.b16 %v6769_v16 }
 0x860   :  { %5548 = vmatprep.subr.bf16.mxu1 %v8772_v52 }
 0x861   :  { %v5336_v27 = vsel %vm421_vm6, %v5322_v62, %v5335_v51 }
 0x862   :  { %5508 = vmatpush1.bf16.msra.mxu0 %v8390_v24  ;;  %v8776_v24 = vld [vmem:[#allocation22_spill] sm:$0xff] }
 0x863   :  { %5549 = vmatpush1.bf16.msra.mxu1 %v8773_v48  ;;  %5509 = vmatprep.subr.bf16.mxu0 %v8774_v56 }
 0x864   :  { %5550 = vmatprep.subr.bf16.mxu1 %v8775_v20 }
 0x866   :  { %5510 = vmatpush1.bf16.msra.mxu0 %v8412_v19  ;;  %v5337_v19 = vpack.c.b16 %v5336_v27, %v5336_v27 }
 0x867   :  { %5551 = vmatpush1.bf16.msra.mxu1 %v8414_v10  ;;  %5511 = vmatprep.subr.bf16.mxu0 %v8418_v25 }
 0x868   :  { %5552 = vmatprep.subr.bf16.mxu1 %v8776_v24 }
 0x86a   :  { %5512 = vmatpush1.bf16.msra.mxu0 %v8425_v11 }
 0x86b   :  { %5553 = vmatpush1.bf16.msra.mxu1 %v8427_v50  ;;  %5513 = vmatprep.subr.bf16.mxu0 %v8431_v45 }
 0x86c   :  { %5554 = vmatprep.subr.bf16.mxu1 %v8433_v5 }
 0x86e   :  { %5514 = vmatpush1.bf16.msra.mxu0 %v8438_v53 }
 0x86f   :  { %5555 = vmatpush1.bf16.msra.mxu1 %v8440_v43 }
 0x871   :  { %5532 = vmatmul.mubr.bf16.vlgmr.msra.gmra.mrb[60].mxu0 %v5337_v19 }
 0x872   :  { %5573 = vmatmul.mubr.bf16.vlgmr.msra.gmra.mrb[60].mxu1 %v5337_v19 }
 0x924   :  { %v5243_v25 = vpop.f32.mrb[56].mxu0 }
 0x925   :  { %v5284_v10 = vpop.f32.mrb[56].mxu1  ;;  %v5245_v28 = vpop.f32.mrb[57].mxu0 }
 0x926   :  { %v5286_v29 = vpop.f32.mrb[57].mxu1  ;;  %v5247_v11 = vpop.f32.mrb[58].mxu0 }
 0x927   :  { %v5288_v30 = vpop.f32.mrb[58].mxu1  ;;  %v5248_v50 = vpop.f32.mrb[59].mxu0 }
 0x928   :  { %v5289_v31 = vpop.f32.mrb[59].mxu1 }
 0x944   :  { %v5533_v54 = vpop.f32.mrb[60].mxu0 }
 0x945   :  { %v5574_v46 = vpop.f32.mrb[60].mxu1  ;;  %v5534_v45 = vadd.f32 %v5533_v54, %v5243_v25  ;;  %v5535_v5 = vpop.f32.mrb[61].mxu0 }
 0x946   :  { %v5575_v35 = vadd.f32 %v5574_v46, %v5284_v10  ;;  %v5576_v9 = vpop.f32.mrb[61].mxu1  ;;  %v5536_v8 = vadd.f32 %v5535_v5, %v5245_v28  ;;  %v5537_v39 = vpop.f32.mrb[62].mxu0 }
 0x947   :  { %v5577_v53 = vadd.f32 %v5576_v9, %v5286_v29  ;;  %v5578_v43 = vpop.f32.mrb[62].mxu1  ;;  %v5581_v4 = vadd.f32 %v5534_v45, %v7268_v14  ;;  %v5538_v36 = vpop.f32.mrb[63].mxu0 }
 0x948   :  { %v5579_v32 = vpop.f32.mrb[63].mxu1  ;;  %v5582_v2 = vadd.f32 %v5536_v8, %v7270_v17  ;;  %v5583_v41 = vadd.f32 %v5575_v35, %v7274_v34 }
 0x949   :  { %v6308_v40 = vmul.f32 -1.442695, %v5581_v4  ;;  %v5584_v22 = vadd.f32 %v5577_v53, %v7276_v60 }
 0x94a   :  { %v6309_v47 = vmul.f32 -1.442695, %v5582_v2  ;;  %v6310_v59 = vmul.f32 -1.442695, %v5583_v41 }
 0x94b   :  { %6882 = vpow2.f32 %v6308_v40 }
 0x94c   :  { %6884 = vpow2.f32 %v6309_v47 }
 0x94d   :  { %6886 = vtanh.f32 %v5584_v22 }
 0x94e   :  { %6888 = vpow2.f32 %v6310_v59 }
 0x955   :  { %v6883_v3 = vpop.eup %6882 }
 0x956   :  { %v5594_v21 = vadd.f32 1.0, %v6883_v3  ;;  %v6885_v55 = vpop.eup %6884 }
 0x957   :  { %v5595_v14 = vadd.f32 1.0, %v6885_v55  ;;  %v6887_v33 = vpop.eup %6886 }
 0x958   :  { %6890 = vrcp.f32 %v5594_v21  ;;  %v6889_v0 = vpop.eup %6888 }
 0x959   :  { %6892 = vrcp.f32 %v5595_v14  ;;  %v5596_v15 = vadd.f32 1.0, %v6889_v0 }
 0x95b   :  { %6894 = vrcp.f32 %v5596_v15 }
 0x962   :  { %v6891_v17 = vpop.eup %6890 }
 0x963   :  { %v5605_v37 = vmul.f32 %v6891_v17, %v6887_v33  ;;  %v6893_v38 = vpop.eup %6892 }
 0x964   :  { %v5604_v58 = vmul.f32 %v6893_v38, %v8488_v23 }
 0x965   :  { %v6895_v60 = vpop.eup %6894 }
 0x966   :  { %v5606_v34 = vadd.f32 %v5605_v37, %v5604_v58 }
 0x968   :  { %6896 = vtanh.f32 %v5606_v34 }
 0x972   :  { %v6897_v61 = vpop.eup %6896 }
 0x973   :  { %v5608_v49 = vmul.f32 %v6897_v61, %v6895_v60 }
 0x975   :  { %v5610_v44 = vcombine.high %v5608_v49, %v5608_v49  ;;  %v5617_v63 = vrot.slane %v5608_v49, %v7283_v12 }
 0x977   :  { %v5624_v26 = vrot.slane %v5610_v44, %v7283_v12  ;;  %v5625_v13 = vcombine.high %v5617_v63, %v5617_v63  ;;  %v5633_v7 = vrot.slane %v5617_v63, %v7283_v12  ;;  %6311 = vst.sshfl [vmem:[%s8623_s4 + $0x7] sm:$0x1 pattern:$0x73625140] %v5617_v63 }
 0x979   :  { %v5626_v52 = vcombine.high %v5624_v26, %v5624_v26  ;;  %v5640_v23 = vrot.slane %v5624_v26, %v7283_v12  ;;  %v5647_v1 = vrot.slane %v5625_v13, %v7283_v12  ;;  %v5655_v18 = vcombine.high %v5633_v7, %v5633_v7  ;;  %6312 = vst.sshfl [vmem:[%s8623_s4 + $0xf] sm:$0x1 pattern:$0x73625140] %v5625_v13 }
 0x97a   :  { %6313 = vst.sshfl [vmem:[%s8623_s4 + $0x27] sm:$0x1 pattern:$0x73625140] %v5624_v26 }
 0x97b   :  { %v5654_v57 = vrot.slane %v5626_v52, %v7283_v12  ;;  %v5656_v48 = vcombine.high %v5640_v23, %v5640_v23  ;;  %v5657_v16 = vcombine.high %v5647_v1, %v5647_v1  ;;  %5669 = vst [vmem:[%s8623_s4 + $0x17] sm:$0x1] %v5655_v18  ;;  %6314 = vst.sshfl [vmem:[%s8623_s4 + $0x2f] sm:$0x1 pattern:$0x73625140] %v5626_v52 }
 0x97d   :  { %v5658_v56 = vcombine.high %v5654_v57, %v5654_v57  ;;  %5670 = vst [vmem:[%s8623_s4 + $0x1f] sm:$0x1] %v5657_v16  ;;  %5673 = vst [vmem:[%s8623_s4 + $0x37] sm:$0x1] %v5656_v48 }
 0x97f   :  { %5674 = vst [vmem:[%s8623_s4 + $0x3f] sm:$0x1] %v5658_v56 }
 0x980   :  { %5681 = vsyncpa [#allocation5], 1 }
 0x981   :  { %5682 = vsyncpa [#allocation7], 1 }

</bundles_post_ra>
